<compile_context>
chip_gen: v7x
topology: tpu7x:2x2x1
jax: 0.10.0
libtpu: 0.0.40
codegen_flags: <defaults>
</compile_context>

<pallas_src>
import jax
import jax.numpy as jnp
from jax import lax
from jax.experimental import pallas as pl
from jax.experimental.pallas import tpu as pltpu


def _round_up(v: int, m: int) -> int:
    return ((v + m - 1) // m) * m


def _round_down(v: int, m: int) -> int:
    return (v // m) * m


def _tpu_info():
    """Best-effort (vmem_bytes, prefer_256_tiles, multi_tensorcore, is_v7)."""
    vmem_bytes = 128 << 20
    kind = ""
    try:
        kind = jax.devices()[0].device_kind.lower()
    except Exception:
        pass
    prefer_256 = ("v6" in kind) or ("v7" in kind)   # 2x256x256 MXUs
    is_v7 = "v7" in kind
    multi_tc = is_v7 or ("v3" in kind) or ("v4" in kind)
    if is_v7:
        vmem_bytes = 64 << 20                        # 64 MiB per TensorCore
    try:
        cap = getattr(pltpu.get_tpu_info(), "vmem_capacity_bytes", None)
        if cap:
            vmem_bytes = int(cap)
    except Exception:
        pass
    return vmem_bytes, prefer_256, multi_tc, is_v7


def _matmul_kernel_inplace(x_ref, w_ref, o_ref):
    """f32 output: accumulate directly into the resident output block."""
    @pl.when(pl.program_id(2) == 0)
    def _init():
        o_ref[...] = jnp.zeros_like(o_ref)

    # x_ref: (tm, tk), w_ref: (tn, tk) -> contract last dims = x @ w.T
    o_ref[...] += lax.dot_general(
        x_ref[...], w_ref[...],
        dimension_numbers=(((1,), (1,)), ((), ())),
        preferred_element_type=jnp.float32,
    )


def _matmul_kernel_scratch(x_ref, w_ref, o_ref, acc_ref):
    """Narrow output dtype: f32 scratch accumulator, cast at the last k step."""
    @pl.when(pl.program_id(2) == 0)
    def _init():
        acc_ref[...] = jnp.zeros_like(acc_ref)

    acc_ref[...] += lax.dot_general(
        x_ref[...], w_ref[...],
        dimension_numbers=(((1,), (1,)), ((), ())),
        preferred_element_type=jnp.float32,
    )

    @pl.when(pl.program_id(2) == pl.num_programs(2) - 1)
    def _finalize():
        o_ref[...] = acc_ref[...].astype(o_ref.dtype)


def _pallas_linear(x: jax.Array, weight: jax.Array,
                   *, tm_pref: int | None = None, tn_pref: int | None = None,
                   tk_pref: int | None = None) -> jax.Array:
    """x: (M, K), weight: (N, K)  ->  (M, N) = x @ weight.T on the MXU."""
    M, K = x.shape
    N, Kw = weight.shape
    assert K == Kw, "in_features mismatch"

    in_itemsize = jnp.dtype(x.dtype).itemsize
    out_dtype = x.dtype
    out_itemsize = jnp.dtype(out_dtype).itemsize

    vmem_bytes, prefer_256, multi_tc, is_v7 = _tpu_info()

    sublane = {4: 8, 2: 16, 1: 32}.get(in_itemsize, 8)
    lane_gran = 256 if prefer_256 else 128

    # Large default tiles: bigger tm/tn cuts HBM re-streaming of x (read N/tn
    # times) and weight (read M/tm times); bigger tk amortizes per-step cost.
    tm_pref = 512 if tm_pref is None else tm_pref
    tn_pref = 512 if tn_pref is None else tn_pref
    tk_pref = (1024 if in_itemsize <= 2 else 512) if tk_pref is None else tk_pref

    def pick(dim, pref, gran):
        # Largest multiple of gran (falling back to 128) that is <= min(pref, dim).
        g = gran if dim >= gran else 128
        return max(g, min(pref, _round_down(dim, g)))

    tm = max(sublane, min(tm_pref, _round_down(M, sublane)))
    tn = pick(N, tn_pref, lane_gran)
    tk = pick(K, tk_pref, lane_gran)

    # Multi-TensorCore chips (v7x): keep the parallel grid product >= 2 so
    # dimension_semantics=("parallel","parallel",...) can use both cores.
    if multi_tc:
        while pl.cdiv(M, tm) * pl.cdiv(N, tn) < 2 and tm > sublane:
            tm = max(sublane, _round_down(tm // 2, sublane))

    use_scratch = out_dtype != jnp.float32

    def footprint(tm_, tn_, tk_):
        fp = 2 * (tm_ * tk_ + tk_ * tn_) * in_itemsize   # double-buffered inputs
        fp += 2 * tm_ * tn_ * out_itemsize                # double-buffered output
        if use_scratch:
            fp += tm_ * tn_ * 4                           # f32 accumulator scratch
        return fp

    # Cap the in-flight footprint: generous on v5e/v6e (128 MiB VMEM), tighter
    # on v7x (64 MiB per TC).
    budget = min(int(vmem_bytes * 0.55), 40 << 20)
    while footprint(tm, tn, tk) > budget:
        if tk > lane_gran:
            tk = max(lane_gran, _round_down(tk // 2, lane_gran))
        elif tn > lane_gran:
            tn = max(lane_gran, _round_down(tn // 2, lane_gran))
        elif tm > sublane:
            tm = max(sublane, _round_down(tm // 2, sublane))
        else:
            break

    # Only K needs zero padding (K-tail garbage would corrupt valid outputs);
    # M/N edge blocks are handled by boundary DMAs and masked writeback.
    Kp = _round_up(K, tk)
    if Kp != K:
        x = jnp.pad(x, ((0, 0), (0, Kp - K)))
        weight = jnp.pad(weight, ((0, 0), (0, Kp - K)))

    grid = (pl.cdiv(M, tm), pl.cdiv(N, tn), Kp // tk)

    # Weight blocked directly in its native (N, K) layout -> no wrapper transpose.
    w_spec = pl.BlockSpec((tn, tk), lambda i, j, k: (j, k))
    if is_v7 and grid[2] >= 4:
        try:  # deeper buffering hides occasional exposed weight DMA on v7x
            w_spec = pl.BlockSpec((tn, tk), lambda i, j, k: (j, k),
                                  pipeline_mode=pl.Buffered(3))
        except TypeError:
            pass

    kernel = _matmul_kernel_scratch if use_scratch else _matmul_kernel_inplace
    scratch_shapes = [pltpu.VMEM((tm, tn), jnp.float32)] if use_scratch else []

    vmem_limit = int(min(vmem_bytes - (8 << 20),
                         max(2 * footprint(tm, tn, tk) + (4 << 20), 32 << 20)))

    out = pl.pallas_call(
        kernel,
        out_shape=jax.ShapeDtypeStruct((M, N), out_dtype),
        grid_spec=pltpu.PrefetchScalarGridSpec(
            num_scalar_prefetch=0,
            grid=grid,
            in_specs=[pl.BlockSpec((tm, tk), lambda i, j, k: (i, k)), w_spec],
            out_specs=pl.BlockSpec((tm, tn), lambda i, j, k: (i, j)),
            scratch_shapes=scratch_shapes,
        ),
        compiler_params=pltpu.CompilerParams(
            dimension_semantics=("parallel", "parallel", "arbitrary"),
            vmem_limit_bytes=vmem_limit,
        ),
        cost_estimate=pl.CostEstimate(
            flops=2 * M * N * Kp,
            transcendentals=0,
            bytes_accessed=in_itemsize * (M * Kp + N * Kp) + out_itemsize * M * N,
        ),
    )(x, weight)
    return out


def linear1d_forward(x: jax.Array, weight: jax.Array,
                     bias: jax.Array | None = None) -> jax.Array:
    """Pallas implementation of Linear1D.forward.

    x:      (batch, in_features)
    weight: (out_features, in_features)  -- native PyTorch layout, NOT transposed.
    bias:   accepted for module parity only.
    """
    # TODO(synk): bias exists on the module but Linear1D.forward never applies it; intentionally not added.
    M, K = x.shape
    N, Kw = weight.shape
    assert K == Kw, "in_features mismatch"

    # Below one lane-dense tile the pallas_call launch/DMA overhead dominates.
    if M < 128 or N < 128 or K < 128:
        return x @ weight.T

    return _pallas_linear(x, weight)


if __name__ == "__main__":
    key = jax.random.PRNGKey(0)
    k1, k2, k3, k4, k5, k6, k7 = jax.random.split(key, 7)

    # --- Main path: exercises the tiled Pallas kernel (f32, in-place acc). ---
    batch, in_features, out_features = 512, 1024, 512
    x = jax.random.normal(k1, (batch, in_features), dtype=jnp.float32)
    weight = jax.random.normal(k2, (out_features, in_features), dtype=jnp.float32)
    bias = jax.random.normal(k3, (out_features,), dtype=jnp.float32)  # unused in forward

    out = jax.block_until_ready(linear1d_forward(x, weight, bias))
    ref = x @ weight.T
    assert out.shape == (batch, out_features)
    assert jnp.allclose(out, ref, atol=1e-2, rtol=1e-2), "mismatch vs reference (pallas f32 path)"

    # --- Ragged shapes: M/N edge blocks + K-only zero padding. ---
    xr = jax.random.normal(k4, (200, 384), dtype=jnp.float32)
    wr = jax.random.normal(k5, (320, 384), dtype=jnp.float32)
    outr = jax.block_until_ready(linear1d_forward(xr, wr))
    assert outr.shape == (200, 320)
    assert jnp.allclose(outr, xr @ wr.T, atol=1e-2, rtol=1e-2), "mismatch vs reference (ragged path)"

    # --- bf16 inputs: exercises the f32-scratch accumulator path. ---
    xb = jax.random.normal(k6, (256, 512), dtype=jnp.float32).astype(jnp.bfloat16)
    wb = jax.random.normal(k7, (256, 512), dtype=jnp.float32).astype(jnp.bfloat16)
    outb = jax.block_until_ready(linear1d_forward(xb, wb))
    refb = xb.astype(jnp.float32) @ wb.astype(jnp.float32).T
    assert outb.shape == (256, 256)
    assert jnp.allclose(outb.astype(jnp.float32), refb, atol=0.5, rtol=3e-2), \
        "mismatch vs reference (bf16 path)"

    # --- Tiny shapes: size gate dispatches to plain XLA matmul. ---
    xs = x[:8, :32]
    ws = weight[:64, :32]
    outs = jax.block_until_ready(linear1d_forward(xs, ws))
    assert outs.shape == (8, 64)
    assert jnp.allclose(outs, xs @ ws.T, atol=1e-4, rtol=1e-4), "mismatch vs reference (small path)"

    print("KERNEL_OK")
</pallas_src>

<mosaic_0001>
module attributes {stable_mosaic.version = 11 : i64} {
  func.func @_matmul_kernel_inplace(%arg0: i32, %arg1: i32, %arg2: i32, %arg3: memref<512x512xf32, #tpu.memory_space<vmem>>, %arg4: memref<512x512xf32, #tpu.memory_space<vmem>>, %arg5: memref<512x512xf32, #tpu.memory_space<vmem>>) attributes {dimension_semantics = [#tpu.dimension_semantics<parallel>, #tpu.dimension_semantics<parallel>, #tpu.dimension_semantics<arbitrary>], iteration_bounds = array<i64: 1, 1, 2>, scalar_prefetch = 0 : i64, scratch_operands = 0 : i64, tpu.core_type = #tpu.core_type<tc>, window_params = [{transform_indices = @transform_0, window_bounds = array<i64: 512, 512>}, {transform_indices = @transform_1, window_bounds = array<i64: 512, 512>}, {transform_indices = @transform_2, window_bounds = array<i64: 512, 512>}]} {
    %c0_i32 = arith.constant 0 : i32
    %0 = arith.cmpi eq, %arg2, %c0_i32 : i32
    %1 = arith.extui %0 : i1 to i32
    %c0_i32_0 = arith.constant 0 : i32
    %2 = arith.cmpi ne, %1, %c0_i32_0 : i32
    scf.if %2 {
      %cst_8 = arith.constant 0.000000e+00 : f32
      %9 = vector.broadcast %cst_8 : f32 to vector<512x512xf32>
      %c0_9 = arith.constant 0 : index
      %c0_10 = arith.constant 0 : index
      %10 = vector.load %arg5[%c0_9, %c0_10] : memref<512x512xf32, #tpu.memory_space<vmem>>, vector<512x512xf32>
      tpu.vector_store %arg5[%c0_9, %c0_10], %9 {strides = array<i32>} : memref<512x512xf32, #tpu.memory_space<vmem>>, vector<512x512xf32>,
    } else {
    }
    %c0 = arith.constant 0 : index
    %c0_1 = arith.constant 0 : index
    %3 = vector.load %arg5[%c0, %c0_1] : memref<512x512xf32, #tpu.memory_space<vmem>>, vector<512x512xf32>
    %c0_2 = arith.constant 0 : index
    %c0_3 = arith.constant 0 : index
    %4 = vector.load %arg3[%c0_2, %c0_3] : memref<512x512xf32, #tpu.memory_space<vmem>>, vector<512x512xf32>
    %c0_4 = arith.constant 0 : index
    %c0_5 = arith.constant 0 : index
    %5 = vector.load %arg4[%c0_4, %c0_5] : memref<512x512xf32, #tpu.memory_space<vmem>>, vector<512x512xf32>
    %cst = arith.constant dense<0.000000e+00> : vector<512x512xf32>
    %6 = tpu.matmul %4, %5, %cst {dimension_numbers = #tpu.dot_dimension_numbers<[1], [1], [0], [0], [0, 0, 1, 0], [], []>} : vector<512x512xf32>, vector<512x512xf32>, vector<512x512xf32> -> vector<512x512xf32>
    %7 = arith.addf %3, %6 : vector<512x512xf32>
    %c0_6 = arith.constant 0 : index
    %c0_7 = arith.constant 0 : index
    %8 = vector.load %arg5[%c0_6, %c0_7] : memref<512x512xf32, #tpu.memory_space<vmem>>, vector<512x512xf32>
    tpu.vector_store %arg5[%c0_6, %c0_7], %7 {strides = array<i32>} : memref<512x512xf32, #tpu.memory_space<vmem>>, vector<512x512xf32>,
    return
  }
  func.func @transform_0(%arg0: i32, %arg1: i32, %arg2: i32) -> (i32, i32) {
    %c0_i32 = arith.constant 0 : i32
    return %arg0, %arg2 : i32, i32
  }
  func.func @transform_1(%arg0: i32, %arg1: i32, %arg2: i32) -> (i32, i32) {
    %c0_i32 = arith.constant 0 : i32
    return %arg1, %arg2 : i32, i32
  }
  func.func @transform_2(%arg0: i32, %arg1: i32, %arg2: i32) -> (i32, i32) {
    %c0_i32 = arith.constant 0 : i32
    return %arg0, %arg1 : i32, i32
  }
}

</mosaic_0001>

<bundles_post_ra>
// kernel: tpu_custom_call.1
= control target key start
LH: loop header
LB: loop body
LE: loop exit
PB: predicated region body
PF: predicated region fallthrough
CT: control target
= control target key end

     0   :  { %7 = vsyncpa [#allocation3], 0  ;;  %s5437_s0 = inlined_call_operand.hbm [shape: f32[512,1024], index: 0, kind: input, shape index: {}]   ;;  %s5438_s1 = inlined_call_operand.hbm [shape: f32[512,1024], index: 1, kind: input, shape index: {}]   ;;  %s5439_s2 = inlined_call_operand.hbm [shape: f32[512,512], index: 2, kind: output, shape index: {}]  }
   0x1   :  { %9 = vsyncpa [#allocation3 + $0x1], 0 }
   0x2   :  { %10 = vsyncpa [#allocation6], 0 }
   0x3   :  { %12 = vsyncpa [#allocation6 + $0x1], 0 }
   0x4   :  { %13 = vsyncpa [#allocation4], 0  ;;  %s4453_s9 = smov 0   ;;  %s4455_s10 = smov 0  }
   0x5   :  { %s4457_s11 = smov 0   ;;  %s4459_s12 = smov 0  }
   0x6   :  { %s4461_s13 = smov 0   ;;  %s4463_s14 = smov 0  }
   0x7 LB: > { %s3679_s15 = sadd.s32 4294967295, %s4427_s14   ;;  %s31_s16 = sadd.s32 1, %s4423_s13  ;;  %s4427_s14 = sphi %s4463_s14, %s19_s14   ;;  %s4423_s13 = sphi %s4461_s13, %s5452_s13   ;;  %s4419_s12 = sphi %s4459_s12, %s5451_s12   ;;  %s4415_s11 = sphi %s4457_s11, %s5450_s11   ;;  %s4411_s10 = sphi %s4455_s10, %s5449_s10   ;;  %s4407_s9 = sphi %s4453_s9, %s5448_s9  }
   0x8   : > { %p32_p0 = scmp.ge.s32.totalorder %s31_s16, 2  ;;  %s47_s17 = sadd.s32 1, %s4415_s11 }
   0x9   : > { %p54_p1 = scmp.ne.s32.totalorder %s4415_s11, %s4411_s10  ;;  %p55_p2 = scmp.eq.s32.totalorder %s4427_s14, 0 }
   0xa   : > { %s5454_s16 = smov (%p32_p0, %s31_s16), 0  ;;  %p60_p4 = scmp.ne.s32.totalorder %s4411_s10, %s4407_s9 }
   0xb   : > { %p4489_p3 = por %p55_p2, %p54_p1  ;;  %s43_s19 = ssub.s32 %s4423_s13, %s5454_s16 }
   0xc   : > { %p61_p5 = scmp.eq.s32.totalorder %s3679_s15, 0  ;;  %p45_p6 = scmp.eq.s32.totalorder %s43_s19, 0 }
   0xd   : > { %p4225_p8 = scmp.lt.s32.totalorder %s4427_s14, 2  ;;  %s4507_s22 = sand.u32 1, %s4415_s11  }
   0xe   : > { %p4498_p7 = por %p61_p5, %p60_p4  ;;  %s3696_s23 = sshll.u32 %s4423_s13, 9 }
   0xf   : > { %s4504_s21 = scalar_select %p45_p6, %s4415_s11, %s47_s17  }
  0x10   : > { %s5442_s20 = scalar_select %p4498_p7, 1, 0 }
  0x11   : > { %s3682_s24 = sshll.u32 %s4507_s22, 11  ;;  %s4516_s27 = scalar_lea.hbm %s5437_s0, %s3696_s23 }
  0x12   : > { %s144_s28 = scalar_lea.vmem [#allocation2], %s3682_s24  ;;  %p4522_p9 = pnand %p4225_p8, %p4489_p3 }
  0x13   : > { %s154_s29 = sshll.u32 %s144_s28, 4  ;;  %s141_s3 = scalar_lea.sflag [#allocation3], %s4507_s22  ;;  %s4526_s29 = int_to_ptr.vmem [resolvable:$true] %s154_s29 }
  0x14   : > { %s4283_s4 = scalar_lea.hbm %s4516_s27, 32768  ;;  %p4285_p12 = pneg %p4522_p9 }
  0x15   : > { %p4284_p11 = scmp.ne.s32.totalorder %s4516_s27, %s4283_s4  ;;  %s4288_s7 = scalar_lea.hbm %s5437_s0, 65536 }
  0x16   : > { %p4289_p1 = scmp.lt.u32.totalorder %s4516_s27, %s5437_s0  ;;  %p4290_p2 = scmp.lt.u32.totalorder %s4288_s7, %s4283_s4 }
  0x17   : > { %p4286_p13 = pnand %p4285_p12, %p4284_p11  ;;  %p4292_p4 = scmp.lt.u32.totalorder %s4283_s4, %s4516_s27 }
  0x18   : > { %p4291_p3 = por %p4290_p2, %p4289_p1 }
  0x19   : > { %p4287_p0 = pneg %p4286_p13 }
  0x1a   : > { %p4293_p5 = por %p4292_p4, %p4291_p3 }
  0x1c   : > { %p4294_p6 = pnand %p4293_p5, %p4287_p0 }
  0x1e   : > { %4297 = shalt.err (!%p4294_p6)
}
  0x1f   : > { %s4298_s17 = scalar_lea.vmem %s4526_s29, 32768  ;;  %s4429_s18 = smov [#allocation2]  }
  0x20   : > { %p4299_p8 = scmp.ne.s32.totalorder %s4526_s29, %s4298_s17  ;;  %s4303_s19 = sshll.u32 %s4429_s18, 4  ;;  %s4304_s19 = int_to_ptr.vmem [resolvable:$false] %s4303_s19 }
  0x21   : > { %s4305_s25 = scalar_lea.vmem %s4304_s19, 65536  ;;  %p4306_p10 = scmp.lt.s32.totalorder %s4526_s29, %s4304_s19 }
  0x22   : > { %p4301_p11 = pnand %p4299_p8, %p4285_p12  ;;  %p4307_p1 = scmp.lt.s32.totalorder %s4305_s25, %s4298_s17 }
  0x24   : > { %p4302_p13 = pneg %p4301_p11  ;;  %p4308_p2 = por %p4307_p1, %p4306_p10 }
  0x26   : > { %p4309_p3 = pnand %p4308_p2, %p4302_p13 }
  0x28   : > { %4312 = shalt.err (!%p4309_p3)
}
  0x29   : > { %s4430_s26 = smov 1024   ;;  %s4431_s28 = smov 512  }
  0x2a   : > { %s4432_s4 = smov 32   ;;  %p186_p10 = scmp.lt.s32.totalorder %s4427_s14, 3 }
  0x2b   : > { %4221 = dma.hbm_to_vmem [thread:$0]  (!%p4522_p9), %s4516_s27, 32768, %s4526_s29, %s141_s3, %s4430_s26, %s4431_s28, %s4432_s4  }
  0x2c   : > { %s4566_s7 = scalar_lea.hbm %s5438_s1, %s3696_s23  ;;  %p5444_p0 = scmp.ge.s32.totalorder %s4427_s14, 1 }
  0x2d   : > { %s168_s9 = scalar_lea.vmem [#allocation5], %s3682_s24  ;;  %s165_s27 = scalar_lea.sflag [#allocation6], %s4507_s22 }
  0x2e   : > { %p4570_p4 = pnand %p5444_p0, %p186_p10  ;;  %s178_s17 = sshll.u32 %s168_s9, 4  ;;  %s4576_s17 = int_to_ptr.vmem [resolvable:$true] %s178_s17 }
  0x2f   : > { %s4313_s29 = scalar_lea.hbm %s4566_s7, 32768  ;;  %s4318_s18 = scalar_lea.hbm %s5438_s1, 65536 }
  0x30   : > { %p4314_p5 = scmp.ne.s32.totalorder %s4566_s7, %s4313_s29  ;;  %p4319_p11 = scmp.lt.u32.totalorder %s4566_s7, %s5438_s1 }
  0x31   : > { %p4320_p13 = scmp.lt.u32.totalorder %s4318_s18, %s4313_s29  ;;  %p4322_p2 = scmp.lt.u32.totalorder %s4313_s29, %s4566_s7 }
  0x32   : > { %p4316_p6 = pnand %p4314_p5, %p4285_p12 }
  0x33   : > { %p4321_p1 = por %p4320_p13, %p4319_p11 }
  0x34   : > { %p4317_p8 = pneg %p4316_p6 }
  0x35   : > { %p4323_p3 = por %p4322_p2, %p4321_p1 }
  0x37   : > { %p4324_p10 = pnand %p4323_p3, %p4317_p8 }
  0x39   : > { %4327 = shalt.err (!%p4324_p10)
}
  0x3a   : > { %s4328_s24 = scalar_lea.vmem %s4576_s17, 32768  ;;  %s4433_s5 = smov [#allocation5]  }
  0x3b   : > { %p4329_p0 = scmp.ne.s32.totalorder %s4576_s17, %s4328_s24  ;;  %s4333_s6 = sshll.u32 %s4433_s5, 4  ;;  %s4334_s6 = int_to_ptr.vmem [resolvable:$false] %s4333_s6 }
  0x3c   : > { %s4335_s9 = scalar_lea.vmem %s4334_s6, 65536  ;;  %p4336_p7 = scmp.lt.s32.totalorder %s4576_s17, %s4334_s6 }
  0x3d   : > { %p4331_p5 = pnand %p4329_p0, %p4285_p12  ;;  %p4337_p11 = scmp.lt.s32.totalorder %s4335_s9, %s4328_s24 }
  0x3f   : > { %p4332_p6 = pneg %p4331_p5  ;;  %p4338_p13 = por %p4337_p11, %p4336_p7 }
  0x41   : > { %p4339_p1 = pnand %p4338_p13, %p4332_p6 }
  0x43   : > { %4342 = shalt.err (!%p4339_p1)
}
  0x44   : > { %4224 = dma.hbm_to_vmem [thread:$0]  (!%p4522_p9), %s4566_s7, 32768, %s4576_s17, %s165_s27, %s4430_s26, %s4431_s28, %s4432_s4  }
  0x45   : > { %190 = sbr.rel (%p4570_p4) target bundleno = 1082 (0x43a), region = 28  ;;  %s192_s29 = sand.u32 (!%p4570_p4), 1, %s4411_s10  }
  0x46   : > { %s3689_s23 = sshll.u32 (!%p4570_p4), %s192_s29, 11  ;;  %s193_s3 = scalar_lea.sflag (!%p4570_p4), [#allocation3], %s192_s29 }
  0x47   : > { %s4610_s18 = scalar_lea.vmem (!%p4570_p4), [#allocation2], %s3689_s23  ;;  %p5446_p7 = scmp.ne.s32.totalorder (!%p4570_p4), %s5442_s20, 0 }
  0x4c   : > { %4394 = dma.done.wait (%p5446_p7), %s193_s3, 32768  }
  0x4d   : > { %4396 = vsyncadd (%p5446_p7), %s193_s3, 4294934528  ;;  %s202_s22 = scalar_lea.sflag [#allocation6], %s192_s29  ;;  %s4616_s30 = scalar_lea.vmem [#allocation5], %s3689_s23 }
  0x4e   : > { %4398 = dma.done.wait (%p5446_p7), %s202_s22, 32768  }
  0x4f   : > { %4400 = vsyncadd (%p5446_p7), %s202_s22, 4294934528  ;;  %p3691_p9 = scmp.ne.s32.totalorder %s4419_s12, 0 }
  0x50   : > { %v4434_v0 = vmov (!%p3691_p9), 0.0  }
  0x51   : > { %235 = sbr.rel (%p3691_p9) target bundleno = 209 (0xd1), region = 40  ;;  %236 = vst [vmem:[#allocation7] sm:$0xff] (!%p3691_p9), %v4434_v0  ;;  %237 = vst [vmem:[#allocation7 + $0x8] sm:$0xff] (!%p3691_p9), %v4434_v0 }
  0x52   : > { %238 = vst [vmem:[#allocation7 + $0x10] sm:$0xff] (!%p3691_p9), %v4434_v0  ;;  %239 = vst [vmem:[#allocation7 + $0x18] sm:$0xff] (!%p3691_p9), %v4434_v0 }
  0x53   : > { %240 = vst [vmem:[#allocation7 + $0x20] sm:$0xff] (!%p3691_p9), %v4434_v0  ;;  %241 = vst [vmem:[#allocation7 + $0x28] sm:$0xff] (!%p3691_p9), %v4434_v0 }
  0x54   : > { %242 = vst [vmem:[#allocation7 + $0x30] sm:$0xff] (!%p3691_p9), %v4434_v0  ;;  %243 = vst [vmem:[#allocation7 + $0x38] sm:$0xff] (!%p3691_p9), %v4434_v0 }
  0x55   : > { %244 = vst [vmem:[#allocation7 + $0x40] sm:$0xff] (!%p3691_p9), %v4434_v0  ;;  %245 = vst [vmem:[#allocation7 + $0x48] sm:$0xff] (!%p3691_p9), %v4434_v0 }
  0x56   : > { %246 = vst [vmem:[#allocation7 + $0x50] sm:$0xff] (!%p3691_p9), %v4434_v0  ;;  %247 = vst [vmem:[#allocation7 + $0x58] sm:$0xff] (!%p3691_p9), %v4434_v0 }
  0x57   : > { %248 = vst [vmem:[#allocation7 + $0x60] sm:$0xff] (!%p3691_p9), %v4434_v0  ;;  %249 = vst [vmem:[#allocation7 + $0x68] sm:$0xff] (!%p3691_p9), %v4434_v0 }
  0x58   : > { %250 = vst [vmem:[#allocation7 + $0x70] sm:$0xff] %v4434_v0  ;;  %251 = vst [vmem:[#allocation7 + $0x78] sm:$0xff] %v4434_v0 }
  0x59   : > { %252 = vst [vmem:[#allocation7 + $0x80] sm:$0xff] %v4434_v0  ;;  %253 = vst [vmem:[#allocation7 + $0x88] sm:$0xff] %v4434_v0 }
  0x5a   : > { %254 = vst [vmem:[#allocation7 + $0x90] sm:$0xff] %v4434_v0  ;;  %255 = vst [vmem:[#allocation7 + $0x98] sm:$0xff] %v4434_v0 }
  0x5b   : > { %256 = vst [vmem:[#allocation7 + $0xa0] sm:$0xff] %v4434_v0  ;;  %257 = vst [vmem:[#allocation7 + $0xa8] sm:$0xff] %v4434_v0 }
  0x5c   : > { %258 = vst [vmem:[#allocation7 + $0xb0] sm:$0xff] %v4434_v0  ;;  %259 = vst [vmem:[#allocation7 + $0xb8] sm:$0xff] %v4434_v0 }
  0x5d   : > { %260 = vst [vmem:[#allocation7 + $0xc0] sm:$0xff] %v4434_v0  ;;  %261 = vst [vmem:[#allocation7 + $0xc8] sm:$0xff] %v4434_v0 }
  0x5e   : > { %262 = vst [vmem:[#allocation7 + $0xd0] sm:$0xff] %v4434_v0  ;;  %263 = vst [vmem:[#allocation7 + $0xd8] sm:$0xff] %v4434_v0 }
  0x5f   : > { %264 = vst [vmem:[#allocation7 + $0xe0] sm:$0xff] %v4434_v0  ;;  %265 = vst [vmem:[#allocation7 + $0xe8] sm:$0xff] %v4434_v0 }
  0x60   : > { %266 = vst [vmem:[#allocation7 + $0xf0] sm:$0xff] %v4434_v0  ;;  %267 = vst [vmem:[#allocation7 + $0xf8] sm:$0xff] %v4434_v0 }
  0x61   : > { %268 = vst [vmem:[#allocation7 + $0x100] sm:$0xff] %v4434_v0  ;;  %269 = vst [vmem:[#allocation7 + $0x108] sm:$0xff] %v4434_v0 }
  0x62   : > { %270 = vst [vmem:[#allocation7 + $0x110] sm:$0xff] %v4434_v0  ;;  %271 = vst [vmem:[#allocation7 + $0x118] sm:$0xff] %v4434_v0 }
  0x63   : > { %272 = vst [vmem:[#allocation7 + $0x120] sm:$0xff] %v4434_v0  ;;  %273 = vst [vmem:[#allocation7 + $0x128] sm:$0xff] %v4434_v0 }
  0x64   : > { %274 = vst [vmem:[#allocation7 + $0x130] sm:$0xff] %v4434_v0  ;;  %275 = vst [vmem:[#allocation7 + $0x138] sm:$0xff] %v4434_v0 }
  0x65   : > { %276 = vst [vmem:[#allocation7 + $0x140] sm:$0xff] %v4434_v0  ;;  %277 = vst [vmem:[#allocation7 + $0x148] sm:$0xff] %v4434_v0 }
  0x66   : > { %278 = vst [vmem:[#allocation7 + $0x150] sm:$0xff] %v4434_v0  ;;  %279 = vst [vmem:[#allocation7 + $0x158] sm:$0xff] %v4434_v0 }
  0x67   : > { %280 = vst [vmem:[#allocation7 + $0x160] sm:$0xff] %v4434_v0  ;;  %281 = vst [vmem:[#allocation7 + $0x168] sm:$0xff] %v4434_v0 }
  0x68   : > { %282 = vst [vmem:[#allocation7 + $0x170] sm:$0xff] %v4434_v0  ;;  %283 = vst [vmem:[#allocation7 + $0x178] sm:$0xff] %v4434_v0 }
  0x69   : > { %284 = vst [vmem:[#allocation7 + $0x180] sm:$0xff] %v4434_v0  ;;  %285 = vst [vmem:[#allocation7 + $0x188] sm:$0xff] %v4434_v0 }
  0x6a   : > { %286 = vst [vmem:[#allocation7 + $0x190] sm:$0xff] %v4434_v0  ;;  %287 = vst [vmem:[#allocation7 + $0x198] sm:$0xff] %v4434_v0 }
  0x6b   : > { %288 = vst [vmem:[#allocation7 + $0x1a0] sm:$0xff] %v4434_v0  ;;  %289 = vst [vmem:[#allocation7 + $0x1a8] sm:$0xff] %v4434_v0 }
  0x6c   : > { %290 = vst [vmem:[#allocation7 + $0x1b0] sm:$0xff] %v4434_v0  ;;  %291 = vst [vmem:[#allocation7 + $0x1b8] sm:$0xff] %v4434_v0 }
  0x6d   : > { %292 = vst [vmem:[#allocation7 + $0x1c0] sm:$0xff] %v4434_v0  ;;  %293 = vst [vmem:[#allocation7 + $0x1c8] sm:$0xff] %v4434_v0 }
  0x6e   : > { %294 = vst [vmem:[#allocation7 + $0x1d0] sm:$0xff] %v4434_v0  ;;  %295 = vst [vmem:[#allocation7 + $0x1d8] sm:$0xff] %v4434_v0 }
  0x6f   : > { %296 = vst [vmem:[#allocation7 + $0x1e0] sm:$0xff] %v4434_v0  ;;  %297 = vst [vmem:[#allocation7 + $0x1e8] sm:$0xff] %v4434_v0 }
  0x70   : > { %298 = vst [vmem:[#allocation7 + $0x1f0] sm:$0xff] %v4434_v0  ;;  %299 = vst [vmem:[#allocation7 + $0x1f8] sm:$0xff] %v4434_v0 }
  0x71   : > { %300 = vst [vmem:[#allocation7 + $0x200] sm:$0xff] %v4434_v0  ;;  %301 = vst [vmem:[#allocation7 + $0x208] sm:$0xff] %v4434_v0 }
  0x72   : > { %302 = vst [vmem:[#allocation7 + $0x210] sm:$0xff] %v4434_v0  ;;  %303 = vst [vmem:[#allocation7 + $0x218] sm:$0xff] %v4434_v0 }
  0x73   : > { %304 = vst [vmem:[#allocation7 + $0x220] sm:$0xff] %v4434_v0  ;;  %305 = vst [vmem:[#allocation7 + $0x228] sm:$0xff] %v4434_v0 }
  0x74   : > { %306 = vst [vmem:[#allocation7 + $0x230] sm:$0xff] %v4434_v0  ;;  %307 = vst [vmem:[#allocation7 + $0x238] sm:$0xff] %v4434_v0 }
  0x75   : > { %308 = vst [vmem:[#allocation7 + $0x240] sm:$0xff] %v4434_v0  ;;  %309 = vst [vmem:[#allocation7 + $0x248] sm:$0xff] %v4434_v0 }
  0x76   : > { %310 = vst [vmem:[#allocation7 + $0x250] sm:$0xff] %v4434_v0  ;;  %311 = vst [vmem:[#allocation7 + $0x258] sm:$0xff] %v4434_v0 }
  0x77   : > { %312 = vst [vmem:[#allocation7 + $0x260] sm:$0xff] %v4434_v0  ;;  %313 = vst [vmem:[#allocation7 + $0x268] sm:$0xff] %v4434_v0 }
  0x78   : > { %314 = vst [vmem:[#allocation7 + $0x270] sm:$0xff] %v4434_v0  ;;  %315 = vst [vmem:[#allocation7 + $0x278] sm:$0xff] %v4434_v0 }
  0x79   : > { %316 = vst [vmem:[#allocation7 + $0x280] sm:$0xff] %v4434_v0  ;;  %317 = vst [vmem:[#allocation7 + $0x288] sm:$0xff] %v4434_v0 }
  0x7a   : > { %318 = vst [vmem:[#allocation7 + $0x290] sm:$0xff] %v4434_v0  ;;  %319 = vst [vmem:[#allocation7 + $0x298] sm:$0xff] %v4434_v0 }
  0x7b   : > { %320 = vst [vmem:[#allocation7 + $0x2a0] sm:$0xff] %v4434_v0  ;;  %321 = vst [vmem:[#allocation7 + $0x2a8] sm:$0xff] %v4434_v0 }
  0x7c   : > { %322 = vst [vmem:[#allocation7 + $0x2b0] sm:$0xff] %v4434_v0  ;;  %323 = vst [vmem:[#allocation7 + $0x2b8] sm:$0xff] %v4434_v0 }
  0x7d   : > { %324 = vst [vmem:[#allocation7 + $0x2c0] sm:$0xff] %v4434_v0  ;;  %325 = vst [vmem:[#allocation7 + $0x2c8] sm:$0xff] %v4434_v0 }
  0x7e   : > { %326 = vst [vmem:[#allocation7 + $0x2d0] sm:$0xff] %v4434_v0  ;;  %327 = vst [vmem:[#allocation7 + $0x2d8] sm:$0xff] %v4434_v0 }
  0x7f   : > { %328 = vst [vmem:[#allocation7 + $0x2e0] sm:$0xff] %v4434_v0  ;;  %329 = vst [vmem:[#allocation7 + $0x2e8] sm:$0xff] %v4434_v0 }
  0x80   : > { %330 = vst [vmem:[#allocation7 + $0x2f0] sm:$0xff] %v4434_v0  ;;  %331 = vst [vmem:[#allocation7 + $0x2f8] sm:$0xff] %v4434_v0 }
  0x81   : > { %332 = vst [vmem:[#allocation7 + $0x300] sm:$0xff] %v4434_v0  ;;  %333 = vst [vmem:[#allocation7 + $0x308] sm:$0xff] %v4434_v0 }
  0x82   : > { %334 = vst [vmem:[#allocation7 + $0x310] sm:$0xff] %v4434_v0  ;;  %335 = vst [vmem:[#allocation7 + $0x318] sm:$0xff] %v4434_v0 }
  0x83   : > { %336 = vst [vmem:[#allocation7 + $0x320] sm:$0xff] %v4434_v0  ;;  %337 = vst [vmem:[#allocation7 + $0x328] sm:$0xff] %v4434_v0 }
  0x84   : > { %338 = vst [vmem:[#allocation7 + $0x330] sm:$0xff] %v4434_v0  ;;  %339 = vst [vmem:[#allocation7 + $0x338] sm:$0xff] %v4434_v0 }
  0x85   : > { %340 = vst [vmem:[#allocation7 + $0x340] sm:$0xff] %v4434_v0  ;;  %341 = vst [vmem:[#allocation7 + $0x348] sm:$0xff] %v4434_v0 }
  0x86   : > { %342 = vst [vmem:[#allocation7 + $0x350] sm:$0xff] %v4434_v0  ;;  %343 = vst [vmem:[#allocation7 + $0x358] sm:$0xff] %v4434_v0 }
  0x87   : > { %344 = vst [vmem:[#allocation7 + $0x360] sm:$0xff] %v4434_v0  ;;  %345 = vst [vmem:[#allocation7 + $0x368] sm:$0xff] %v4434_v0 }
  0x88   : > { %346 = vst [vmem:[#allocation7 + $0x370] sm:$0xff] %v4434_v0  ;;  %347 = vst [vmem:[#allocation7 + $0x378] sm:$0xff] %v4434_v0 }
  0x89   : > { %348 = vst [vmem:[#allocation7 + $0x380] sm:$0xff] %v4434_v0  ;;  %349 = vst [vmem:[#allocation7 + $0x388] sm:$0xff] %v4434_v0 }
  0x8a   : > { %350 = vst [vmem:[#allocation7 + $0x390] sm:$0xff] %v4434_v0  ;;  %351 = vst [vmem:[#allocation7 + $0x398] sm:$0xff] %v4434_v0 }
  0x8b   : > { %352 = vst [vmem:[#allocation7 + $0x3a0] sm:$0xff] %v4434_v0  ;;  %353 = vst [vmem:[#allocation7 + $0x3a8] sm:$0xff] %v4434_v0 }
  0x8c   : > { %354 = vst [vmem:[#allocation7 + $0x3b0] sm:$0xff] %v4434_v0  ;;  %355 = vst [vmem:[#allocation7 + $0x3b8] sm:$0xff] %v4434_v0 }
  0x8d   : > { %356 = vst [vmem:[#allocation7 + $0x3c0] sm:$0xff] %v4434_v0  ;;  %357 = vst [vmem:[#allocation7 + $0x3c8] sm:$0xff] %v4434_v0 }
  0x8e   : > { %358 = vst [vmem:[#allocation7 + $0x3d0] sm:$0xff] %v4434_v0  ;;  %359 = vst [vmem:[#allocation7 + $0x3d8] sm:$0xff] %v4434_v0 }
  0x8f   : > { %360 = vst [vmem:[#allocation7 + $0x3e0] sm:$0xff] %v4434_v0  ;;  %361 = vst [vmem:[#allocation7 + $0x3e8] sm:$0xff] %v4434_v0 }
  0x90   : > { %362 = vst [vmem:[#allocation7 + $0x3f0] sm:$0xff] %v4434_v0  ;;  %363 = vst [vmem:[#allocation7 + $0x3f8] sm:$0xff] %v4434_v0 }
  0x91   : > { %364 = vst [vmem:[#allocation7 + $0x400] sm:$0xff] %v4434_v0  ;;  %365 = vst [vmem:[#allocation7 + $0x408] sm:$0xff] %v4434_v0 }
  0x92   : > { %366 = vst [vmem:[#allocation7 + $0x410] sm:$0xff] %v4434_v0  ;;  %367 = vst [vmem:[#allocation7 + $0x418] sm:$0xff] %v4434_v0 }
  0x93   : > { %368 = vst [vmem:[#allocation7 + $0x420] sm:$0xff] %v4434_v0  ;;  %369 = vst [vmem:[#allocation7 + $0x428] sm:$0xff] %v4434_v0 }
  0x94   : > { %370 = vst [vmem:[#allocation7 + $0x430] sm:$0xff] %v4434_v0  ;;  %371 = vst [vmem:[#allocation7 + $0x438] sm:$0xff] %v4434_v0 }
  0x95   : > { %372 = vst [vmem:[#allocation7 + $0x440] sm:$0xff] %v4434_v0  ;;  %373 = vst [vmem:[#allocation7 + $0x448] sm:$0xff] %v4434_v0 }
  0x96   : > { %374 = vst [vmem:[#allocation7 + $0x450] sm:$0xff] %v4434_v0  ;;  %375 = vst [vmem:[#allocation7 + $0x458] sm:$0xff] %v4434_v0 }
  0x97   : > { %376 = vst [vmem:[#allocation7 + $0x460] sm:$0xff] %v4434_v0  ;;  %377 = vst [vmem:[#allocation7 + $0x468] sm:$0xff] %v4434_v0 }
  0x98   : > { %378 = vst [vmem:[#allocation7 + $0x470] sm:$0xff] %v4434_v0  ;;  %379 = vst [vmem:[#allocation7 + $0x478] sm:$0xff] %v4434_v0 }
  0x99   : > { %380 = vst [vmem:[#allocation7 + $0x480] sm:$0xff] %v4434_v0  ;;  %381 = vst [vmem:[#allocation7 + $0x488] sm:$0xff] %v4434_v0 }
  0x9a   : > { %382 = vst [vmem:[#allocation7 + $0x490] sm:$0xff] %v4434_v0  ;;  %383 = vst [vmem:[#allocation7 + $0x498] sm:$0xff] %v4434_v0 }
  0x9b   : > { %384 = vst [vmem:[#allocation7 + $0x4a0] sm:$0xff] %v4434_v0  ;;  %385 = vst [vmem:[#allocation7 + $0x4a8] sm:$0xff] %v4434_v0 }
  0x9c   : > { %386 = vst [vmem:[#allocation7 + $0x4b0] sm:$0xff] %v4434_v0  ;;  %387 = vst [vmem:[#allocation7 + $0x4b8] sm:$0xff] %v4434_v0 }
  0x9d   : > { %388 = vst [vmem:[#allocation7 + $0x4c0] sm:$0xff] %v4434_v0  ;;  %389 = vst [vmem:[#allocation7 + $0x4c8] sm:$0xff] %v4434_v0 }
  0x9e   : > { %390 = vst [vmem:[#allocation7 + $0x4d0] sm:$0xff] %v4434_v0  ;;  %391 = vst [vmem:[#allocation7 + $0x4d8] sm:$0xff] %v4434_v0 }
  0x9f   : > { %392 = vst [vmem:[#allocation7 + $0x4e0] sm:$0xff] %v4434_v0  ;;  %393 = vst [vmem:[#allocation7 + $0x4e8] sm:$0xff] %v4434_v0 }
  0xa0   : > { %394 = vst [vmem:[#allocation7 + $0x4f0] sm:$0xff] %v4434_v0  ;;  %395 = vst [vmem:[#allocation7 + $0x4f8] sm:$0xff] %v4434_v0 }
  0xa1   : > { %396 = vst [vmem:[#allocation7 + $0x500] sm:$0xff] %v4434_v0  ;;  %397 = vst [vmem:[#allocation7 + $0x508] sm:$0xff] %v4434_v0 }
  0xa2   : > { %398 = vst [vmem:[#allocation7 + $0x510] sm:$0xff] %v4434_v0  ;;  %399 = vst [vmem:[#allocation7 + $0x518] sm:$0xff] %v4434_v0 }
  0xa3   : > { %400 = vst [vmem:[#allocation7 + $0x520] sm:$0xff] %v4434_v0  ;;  %401 = vst [vmem:[#allocation7 + $0x528] sm:$0xff] %v4434_v0 }
  0xa4   : > { %402 = vst [vmem:[#allocation7 + $0x530] sm:$0xff] %v4434_v0  ;;  %403 = vst [vmem:[#allocation7 + $0x538] sm:$0xff] %v4434_v0 }
  0xa5   : > { %404 = vst [vmem:[#allocation7 + $0x540] sm:$0xff] %v4434_v0  ;;  %405 = vst [vmem:[#allocation7 + $0x548] sm:$0xff] %v4434_v0 }
  0xa6   : > { %406 = vst [vmem:[#allocation7 + $0x550] sm:$0xff] %v4434_v0  ;;  %407 = vst [vmem:[#allocation7 + $0x558] sm:$0xff] %v4434_v0 }
  0xa7   : > { %408 = vst [vmem:[#allocation7 + $0x560] sm:$0xff] %v4434_v0  ;;  %409 = vst [vmem:[#allocation7 + $0x568] sm:$0xff] %v4434_v0 }
  0xa8   : > { %410 = vst [vmem:[#allocation7 + $0x570] sm:$0xff] %v4434_v0  ;;  %411 = vst [vmem:[#allocation7 + $0x578] sm:$0xff] %v4434_v0 }
  0xa9   : > { %412 = vst [vmem:[#allocation7 + $0x580] sm:$0xff] %v4434_v0  ;;  %413 = vst [vmem:[#allocation7 + $0x588] sm:$0xff] %v4434_v0 }
  0xaa   : > { %414 = vst [vmem:[#allocation7 + $0x590] sm:$0xff] %v4434_v0  ;;  %415 = vst [vmem:[#allocation7 + $0x598] sm:$0xff] %v4434_v0 }
  0xab   : > { %416 = vst [vmem:[#allocation7 + $0x5a0] sm:$0xff] %v4434_v0  ;;  %417 = vst [vmem:[#allocation7 + $0x5a8] sm:$0xff] %v4434_v0 }
  0xac   : > { %418 = vst [vmem:[#allocation7 + $0x5b0] sm:$0xff] %v4434_v0  ;;  %419 = vst [vmem:[#allocation7 + $0x5b8] sm:$0xff] %v4434_v0 }
  0xad   : > { %420 = vst [vmem:[#allocation7 + $0x5c0] sm:$0xff] %v4434_v0  ;;  %421 = vst [vmem:[#allocation7 + $0x5c8] sm:$0xff] %v4434_v0 }
  0xae   : > { %422 = vst [vmem:[#allocation7 + $0x5d0] sm:$0xff] %v4434_v0  ;;  %423 = vst [vmem:[#allocation7 + $0x5d8] sm:$0xff] %v4434_v0 }
  0xaf   : > { %424 = vst [vmem:[#allocation7 + $0x5e0] sm:$0xff] %v4434_v0  ;;  %425 = vst [vmem:[#allocation7 + $0x5e8] sm:$0xff] %v4434_v0 }
  0xb0   : > { %426 = vst [vmem:[#allocation7 + $0x5f0] sm:$0xff] %v4434_v0  ;;  %427 = vst [vmem:[#allocation7 + $0x5f8] sm:$0xff] %v4434_v0 }
  0xb1   : > { %428 = vst [vmem:[#allocation7 + $0x600] sm:$0xff] %v4434_v0  ;;  %429 = vst [vmem:[#allocation7 + $0x608] sm:$0xff] %v4434_v0 }
  0xb2   : > { %430 = vst [vmem:[#allocation7 + $0x610] sm:$0xff] %v4434_v0  ;;  %431 = vst [vmem:[#allocation7 + $0x618] sm:$0xff] %v4434_v0 }
  0xb3   : > { %432 = vst [vmem:[#allocation7 + $0x620] sm:$0xff] %v4434_v0  ;;  %433 = vst [vmem:[#allocation7 + $0x628] sm:$0xff] %v4434_v0 }
  0xb4   : > { %434 = vst [vmem:[#allocation7 + $0x630] sm:$0xff] %v4434_v0  ;;  %435 = vst [vmem:[#allocation7 + $0x638] sm:$0xff] %v4434_v0 }
  0xb5   : > { %436 = vst [vmem:[#allocation7 + $0x640] sm:$0xff] %v4434_v0  ;;  %437 = vst [vmem:[#allocation7 + $0x648] sm:$0xff] %v4434_v0 }
  0xb6   : > { %438 = vst [vmem:[#allocation7 + $0x650] sm:$0xff] %v4434_v0  ;;  %439 = vst [vmem:[#allocation7 + $0x658] sm:$0xff] %v4434_v0 }
  0xb7   : > { %440 = vst [vmem:[#allocation7 + $0x660] sm:$0xff] %v4434_v0  ;;  %441 = vst [vmem:[#allocation7 + $0x668] sm:$0xff] %v4434_v0 }
  0xb8   : > { %442 = vst [vmem:[#allocation7 + $0x670] sm:$0xff] %v4434_v0  ;;  %443 = vst [vmem:[#allocation7 + $0x678] sm:$0xff] %v4434_v0 }
  0xb9   : > { %444 = vst [vmem:[#allocation7 + $0x680] sm:$0xff] %v4434_v0  ;;  %445 = vst [vmem:[#allocation7 + $0x688] sm:$0xff] %v4434_v0 }
  0xba   : > { %446 = vst [vmem:[#allocation7 + $0x690] sm:$0xff] %v4434_v0  ;;  %447 = vst [vmem:[#allocation7 + $0x698] sm:$0xff] %v4434_v0 }
  0xbb   : > { %448 = vst [vmem:[#allocation7 + $0x6a0] sm:$0xff] %v4434_v0  ;;  %449 = vst [vmem:[#allocation7 + $0x6a8] sm:$0xff] %v4434_v0 }
  0xbc   : > { %450 = vst [vmem:[#allocation7 + $0x6b0] sm:$0xff] %v4434_v0  ;;  %451 = vst [vmem:[#allocation7 + $0x6b8] sm:$0xff] %v4434_v0 }
  0xbd   : > { %452 = vst [vmem:[#allocation7 + $0x6c0] sm:$0xff] %v4434_v0  ;;  %453 = vst [vmem:[#allocation7 + $0x6c8] sm:$0xff] %v4434_v0 }
  0xbe   : > { %454 = vst [vmem:[#allocation7 + $0x6d0] sm:$0xff] %v4434_v0  ;;  %455 = vst [vmem:[#allocation7 + $0x6d8] sm:$0xff] %v4434_v0 }
  0xbf   : > { %456 = vst [vmem:[#allocation7 + $0x6e0] sm:$0xff] %v4434_v0  ;;  %457 = vst [vmem:[#allocation7 + $0x6e8] sm:$0xff] %v4434_v0 }
  0xc0   : > { %458 = vst [vmem:[#allocation7 + $0x6f0] sm:$0xff] %v4434_v0  ;;  %459 = vst [vmem:[#allocation7 + $0x6f8] sm:$0xff] %v4434_v0 }
  0xc1   : > { %460 = vst [vmem:[#allocation7 + $0x700] sm:$0xff] %v4434_v0  ;;  %461 = vst [vmem:[#allocation7 + $0x708] sm:$0xff] %v4434_v0 }
  0xc2   : > { %462 = vst [vmem:[#allocation7 + $0x710] sm:$0xff] %v4434_v0  ;;  %463 = vst [vmem:[#allocation7 + $0x718] sm:$0xff] %v4434_v0 }
  0xc3   : > { %464 = vst [vmem:[#allocation7 + $0x720] sm:$0xff] %v4434_v0  ;;  %465 = vst [vmem:[#allocation7 + $0x728] sm:$0xff] %v4434_v0 }
  0xc4   : > { %466 = vst [vmem:[#allocation7 + $0x730] sm:$0xff] %v4434_v0  ;;  %467 = vst [vmem:[#allocation7 + $0x738] sm:$0xff] %v4434_v0 }
  0xc5   : > { %468 = vst [vmem:[#allocation7 + $0x740] sm:$0xff] %v4434_v0  ;;  %469 = vst [vmem:[#allocation7 + $0x748] sm:$0xff] %v4434_v0 }
  0xc6   : > { %470 = vst [vmem:[#allocation7 + $0x750] sm:$0xff] %v4434_v0  ;;  %471 = vst [vmem:[#allocation7 + $0x758] sm:$0xff] %v4434_v0 }
  0xc7   : > { %472 = vst [vmem:[#allocation7 + $0x760] sm:$0xff] %v4434_v0  ;;  %473 = vst [vmem:[#allocation7 + $0x768] sm:$0xff] %v4434_v0 }
  0xc8   : > { %474 = vst [vmem:[#allocation7 + $0x770] sm:$0xff] %v4434_v0  ;;  %475 = vst [vmem:[#allocation7 + $0x778] sm:$0xff] %v4434_v0 }
  0xc9   : > { %476 = vst [vmem:[#allocation7 + $0x780] sm:$0xff] %v4434_v0  ;;  %477 = vst [vmem:[#allocation7 + $0x788] sm:$0xff] %v4434_v0 }
  0xca   : > { %478 = vst [vmem:[#allocation7 + $0x790] sm:$0xff] %v4434_v0  ;;  %479 = vst [vmem:[#allocation7 + $0x798] sm:$0xff] %v4434_v0 }
  0xcb   : > { %480 = vst [vmem:[#allocation7 + $0x7a0] sm:$0xff] %v4434_v0  ;;  %481 = vst [vmem:[#allocation7 + $0x7a8] sm:$0xff] %v4434_v0 }
  0xcc   : > { %482 = vst [vmem:[#allocation7 + $0x7b0] sm:$0xff] %v4434_v0  ;;  %483 = vst [vmem:[#allocation7 + $0x7b8] sm:$0xff] %v4434_v0 }
  0xcd   : > { %484 = vst [vmem:[#allocation7 + $0x7c0] sm:$0xff] %v4434_v0  ;;  %485 = vst [vmem:[#allocation7 + $0x7c8] sm:$0xff] %v4434_v0 }
  0xce   : > { %486 = vst [vmem:[#allocation7 + $0x7d0] sm:$0xff] %v4434_v0  ;;  %487 = vst [vmem:[#allocation7 + $0x7d8] sm:$0xff] %v4434_v0 }
  0xcf   : > { %488 = vst [vmem:[#allocation7 + $0x7e0] sm:$0xff] %v4434_v0  ;;  %489 = vst [vmem:[#allocation7 + $0x7e8] sm:$0xff] %v4434_v0 }
  0xd0   : > { %490 = vst [vmem:[#allocation7 + $0x7f0] sm:$0xff] %v4434_v0  ;;  %491 = vst [vmem:[#allocation7 + $0x7f8] sm:$0xff] %v4434_v0 }
  0xd1 PF: > { %v1005_v1 = vld [vmem:[%s4616_s30 + $0x8] sm:$0xff]  ;;  %v1004_v6 = vld [vmem:[%s4616_s30] sm:$0xff]  ;;  %s4435_s12 = smov [#allocation7]   ;;  %p5393_p12 = scmp.eq.s32.totalorder %s3679_s15, 1 }
  0xd2   : > { %v1009_v2 = vld [vmem:[%s4616_s30 + $0x28] sm:$0xff]  ;;  %v1008_v7 = vld [vmem:[%s4616_s30 + $0x20] sm:$0xff]  ;;  %s3580_s20 = sshll.u32 %s4435_s12, 4  ;;  %s3581_s20 = int_to_ptr.vmem [resolvable:$true] %s3580_s20 }
  0xd3   : > { %v1133_v3 = vld [vmem:[%s4616_s30 + $0x408] sm:$0xff]  ;;  %v3698_v4 = vpack.c.bf16 %v1009_v2, %v1005_v1  ;;  %v3700_v9 = vpack.c.bf16 %v1008_v7, %v1004_v6  ;;  %v1132_v10 = vld [vmem:[%s4616_s30 + $0x400] sm:$0xff]  ;;  %s4343_s28 = scalar_lea.vmem %s3581_s20, 32768  ;;  %p4350_p3 = scmp.lt.s32.totalorder %s3581_s20, %s3581_s20 }
  0xd4   : > { %v1137_v5 = vld [vmem:[%s4616_s30 + $0x428] sm:$0xff]  ;;  %v1136_v11 = vld [vmem:[%s4616_s30 + $0x420] sm:$0xff]  ;;  %p4344_p4 = scmp.ne.s32.totalorder %s3581_s20, %s4343_s28  ;;  %p4351_p10 = scmp.lt.s32.totalorder %s4343_s28, %s4343_s28 }
  0xd5   : > { %v3826_v8 = vpack.c.bf16 %v1137_v5, %v1133_v3  ;;  %v1013_v12 = vld [vmem:[%s4616_s30 + $0x48] sm:$0xff]  ;;  %3699 = vmatprep.subr.bf16.mxu0 %v3698_v4  ;;  %v3828_v13 = vpack.c.bf16 %v1136_v11, %v1132_v10  ;;  %v1012_v19 = vld [vmem:[%s4616_s30 + $0x40] sm:$0xff] }
  0xd6   : > { %v1017_v14 = vld [vmem:[%s4616_s30 + $0x68] sm:$0xff]  ;;  %3701 = vmatpush1.bf16.xpose.msra.mxu0 %v3700_v9  ;;  %v1016_v20 = vld [vmem:[%s4616_s30 + $0x60] sm:$0xff]  ;;  %p4345_p8 = pnand %p4344_p4, %p5393_p12  ;;  %p4352_p0 = por %p4351_p10, %p4350_p3 }
  0xd7   : > { %v1141_v15 = vld [vmem:[%s4616_s30 + $0x448] sm:$0xff]  ;;  %3827 = vmatprep.subr.bf16.mxu1 %v3826_v8  ;;  %v3702_v17 = vpack.c.bf16 %v1017_v14, %v1013_v12  ;;  %v1140_v21 = vld [vmem:[%s4616_s30 + $0x440] sm:$0xff]  ;;  %v3704_v27 = vpack.c.bf16 %v1016_v20, %v1012_v19 }
  0xd8   : > { %v1145_v16 = vld [vmem:[%s4616_s30 + $0x468] sm:$0xff]  ;;  %3829 = vmatpush1.bf16.xpose.msra.mxu1 %v3828_v13  ;;  %v1144_v22 = vld [vmem:[%s4616_s30 + $0x460] sm:$0xff]  ;;  %p4346_p2 = pneg %p4345_p8 }
  0xd9   : > { %v3830_v18 = vpack.c.bf16 %v1145_v16, %v1141_v15  ;;  %3703 = vmatprep.subr.bf16.mxu0 %v3702_v17  ;;  %v1021_v23 = vld [vmem:[%s4616_s30 + $0x88] sm:$0xff]  ;;  %v3832_v28 = vpack.c.bf16 %v1144_v22, %v1140_v21  ;;  %v1020_v31 = vld [vmem:[%s4616_s30 + $0x80] sm:$0xff] }
  0xda   : > { %v1025_v24 = vld [vmem:[%s4616_s30 + $0xa8] sm:$0xff]  ;;  %v1024_v32 = vld [vmem:[%s4616_s30 + $0xa0] sm:$0xff]  ;;  %p4353_p5 = pnand %p4352_p0, %p4346_p2 }
  0xdb   : > { %3831 = vmatprep.subr.bf16.mxu1 %v3830_v18  ;;  %v1149_v25 = vld [vmem:[%s4616_s30 + $0x488] sm:$0xff]  ;;  %v3706_v29 = vpack.c.bf16 %v1025_v24, %v1021_v23  ;;  %v1148_v33 = vld [vmem:[%s4616_s30 + $0x480] sm:$0xff]  ;;  %v3708_v39 = vpack.c.bf16 %v1024_v32, %v1020_v31 }
  0xdc   : > { %v1153_v26 = vld [vmem:[%s4616_s30 + $0x4a8] sm:$0xff]  ;;  %v1152_v34 = vld [vmem:[%s4616_s30 + $0x4a0] sm:$0xff] }
  0xdd   : > { %v3834_v30 = vpack.c.bf16 %v1153_v26, %v1149_v25  ;;  %v1029_v35 = vld [vmem:[%s4616_s30 + $0xc8] sm:$0xff]  ;;  %v3836_v40 = vpack.c.bf16 %v1152_v34, %v1148_v33  ;;  %v1028_v43 = vld [vmem:[%s4616_s30 + $0xc0] sm:$0xff] }
  0xde   : > { %3705 = vmatpush1.bf16.xpose.msra.mxu0 %v3704_v27  ;;  %v1033_v36 = vld [vmem:[%s4616_s30 + $0xe8] sm:$0xff]  ;;  %v1032_v44 = vld [vmem:[%s4616_s30 + $0xe0] sm:$0xff] }
  0xdf   : > { %3707 = vmatprep.subr.bf16.mxu0 %v3706_v29  ;;  %v1157_v37 = vld [vmem:[%s4616_s30 + $0x4c8] sm:$0xff]  ;;  %v3710_v41 = vpack.c.bf16 %v1033_v36, %v1029_v35  ;;  %v1156_v45 = vld [vmem:[%s4616_s30 + $0x4c0] sm:$0xff]  ;;  %v3712_v51 = vpack.c.bf16 %v1032_v44, %v1028_v43 }
  0xe0   : > { %3833 = vmatpush1.bf16.xpose.msra.mxu1 %v3832_v28  ;;  %v1161_v38 = vld [vmem:[%s4616_s30 + $0x4e8] sm:$0xff]  ;;  %v1160_v46 = vld [vmem:[%s4616_s30 + $0x4e0] sm:$0xff] }
  0xe1   : > { %3835 = vmatprep.subr.bf16.mxu1 %v3834_v30  ;;  %v3838_v42 = vpack.c.bf16 %v1161_v38, %v1157_v37  ;;  %v1037_v47 = vld [vmem:[%s4616_s30 + $0x108] sm:$0xff]  ;;  %v3840_v52 = vpack.c.bf16 %v1160_v46, %v1156_v45  ;;  %v1036_v55 = vld [vmem:[%s4616_s30 + $0x100] sm:$0xff] }
  0xe2   : > { %v1041_v48 = vld [vmem:[%s4616_s30 + $0x128] sm:$0xff]  ;;  %v1040_v56 = vld [vmem:[%s4616_s30 + $0x120] sm:$0xff] }
  0xe3   : > { %v1165_v49 = vld [vmem:[%s4616_s30 + $0x508] sm:$0xff]  ;;  %v3714_v53 = vpack.c.bf16 %v1041_v48, %v1037_v47  ;;  %v1164_v57 = vld [vmem:[%s4616_s30 + $0x500] sm:$0xff]  ;;  %v3716_v63 = vpack.c.bf16 %v1040_v56, %v1036_v55 }
  0xe4   : > { %v1169_v50 = vld [vmem:[%s4616_s30 + $0x528] sm:$0xff]  ;;  %v1168_v58 = vld [vmem:[%s4616_s30 + $0x520] sm:$0xff] }
  0xe5   : > { %v3842_v54 = vpack.c.bf16 %v1169_v50, %v1165_v49  ;;  %v1045_v59 = vld [vmem:[%s4616_s30 + $0x148] sm:$0xff]  ;;  %v3844_v0 = vpack.c.bf16 %v1168_v58, %v1164_v57  ;;  %v1044_v3 = vld [vmem:[%s4616_s30 + $0x140] sm:$0xff] }
  0xe6   : > { %3709 = vmatpush1.bf16.xpose.msra.mxu0 %v3708_v39  ;;  %v1049_v60 = vld [vmem:[%s4616_s30 + $0x168] sm:$0xff]  ;;  %v1048_v4 = vld [vmem:[%s4616_s30 + $0x160] sm:$0xff] }
  0xe7   : > { %3711 = vmatprep.subr.bf16.mxu0 %v3710_v41  ;;  %v1173_v61 = vld [vmem:[%s4616_s30 + $0x548] sm:$0xff]  ;;  %v3718_v1 = vpack.c.bf16 %v1049_v60, %v1045_v59  ;;  %v1172_v5 = vld [vmem:[%s4616_s30 + $0x540] sm:$0xff]  ;;  %v3720_v11 = vpack.c.bf16 %v1048_v4, %v1044_v3 }
  0xe8   : > { %3837 = vmatpush1.bf16.xpose.msra.mxu1 %v3836_v40  ;;  %v1177_v62 = vld [vmem:[%s4616_s30 + $0x568] sm:$0xff]  ;;  %v1176_v6 = vld [vmem:[%s4616_s30 + $0x560] sm:$0xff] }
  0xe9   : > { %3839 = vmatprep.subr.bf16.mxu1 %v3838_v42  ;;  %v3846_v2 = vpack.c.bf16 %v1177_v62, %v1173_v61  ;;  %v1053_v7 = vld [vmem:[%s4616_s30 + $0x188] sm:$0xff]  ;;  %v3848_v12 = vpack.c.bf16 %v1176_v6, %v1172_v5  ;;  %v1052_v16 = vld [vmem:[%s4616_s30 + $0x180] sm:$0xff] }
  0xea   : > { %v1057_v8 = vld [vmem:[%s4616_s30 + $0x1a8] sm:$0xff]  ;;  %v1056_v17 = vld [vmem:[%s4616_s30 + $0x1a0] sm:$0xff] }
  0xeb   : > { %v1181_v9 = vld [vmem:[%s4616_s30 + $0x588] sm:$0xff]  ;;  %v3722_v13 = vpack.c.bf16 %v1057_v8, %v1053_v7  ;;  %v1180_v18 = vld [vmem:[%s4616_s30 + $0x580] sm:$0xff]  ;;  %v3724_v24 = vpack.c.bf16 %v1056_v17, %v1052_v16 }
  0xec   : > { %v1185_v10 = vld [vmem:[%s4616_s30 + $0x5a8] sm:$0xff]  ;;  %v1184_v19 = vld [vmem:[%s4616_s30 + $0x5a0] sm:$0xff] }
  0xed   : > { %v3850_v14 = vpack.c.bf16 %v1185_v10, %v1181_v9  ;;  %v749_v15 = vld [vmem:[%s4610_s18 + $0x8] sm:$0xff]  ;;  %v3852_v25 = vpack.c.bf16 %v1184_v19, %v1180_v18  ;;  %v1060_v28 = vld [vmem:[%s4616_s30 + $0x1c0] sm:$0xff] }
  0xee   : > { %3713 = vmatpush1.bf16.xpose.msra.mxu0 %v3712_v51  ;;  %1324 = vmatprep.mubr.f32.mxu0 %v749_v15  ;;  %v1061_v20 = vld [vmem:[%s4616_s30 + $0x1c8] sm:$0xff]  ;;  %v1064_v29 = vld [vmem:[%s4616_s30 + $0x1e0] sm:$0xff] }
  0xef   : > { %3715 = vmatprep.subr.bf16.mxu0 %v3714_v53  ;;  %2222 = vmatprep.mubr.f32.mxu1 %v749_v15  ;;  %v1065_v21 = vld [vmem:[%s4616_s30 + $0x1e8] sm:$0xff]  ;;  %v1188_v30 = vld [vmem:[%s4616_s30 + $0x5c0] sm:$0xff]  ;;  %v3728_v36 = vpack.c.bf16 %v1064_v29, %v1060_v28 }
  0xf0   : > { %3841 = vmatpush1.bf16.xpose.msra.mxu1 %v3840_v52  ;;  %v1189_v22 = vld [vmem:[%s4616_s30 + $0x5c8] sm:$0xff]  ;;  %v3726_v26 = vpack.c.bf16 %v1065_v21, %v1061_v20  ;;  %v1192_v31 = vld [vmem:[%s4616_s30 + $0x5e0] sm:$0xff] }
  0xf1   : > { %3843 = vmatprep.subr.bf16.mxu1 %v3842_v54  ;;  %v1193_v23 = vld [vmem:[%s4616_s30 + $0x5e8] sm:$0xff]  ;;  %v3856_v37 = vpack.c.bf16 %v1192_v31, %v1188_v30  ;;  %v1068_v40 = vld [vmem:[%s4616_s30 + $0x200] sm:$0xff] }
  0xf2   : > { %v3854_v27 = vpack.c.bf16 %v1193_v23, %v1189_v22  ;;  %v1069_v32 = vld [vmem:[%s4616_s30 + $0x208] sm:$0xff]  ;;  %v1072_v41 = vld [vmem:[%s4616_s30 + $0x220] sm:$0xff] }
  0xf3   : > { %v1073_v33 = vld [vmem:[%s4616_s30 + $0x228] sm:$0xff]  ;;  %v1196_v42 = vld [vmem:[%s4616_s30 + $0x600] sm:$0xff]  ;;  %v3732_v48 = vpack.c.bf16 %v1072_v41, %v1068_v40 }
  0xf4   : > { %v1197_v34 = vld [vmem:[%s4616_s30 + $0x608] sm:$0xff]  ;;  %v3730_v38 = vpack.c.bf16 %v1073_v33, %v1069_v32  ;;  %v1200_v43 = vld [vmem:[%s4616_s30 + $0x620] sm:$0xff] }
  0xf5   : > { %v1201_v35 = vld [vmem:[%s4616_s30 + $0x628] sm:$0xff]  ;;  %v3860_v49 = vpack.c.bf16 %v1200_v43, %v1196_v42  ;;  %v1076_v52 = vld [vmem:[%s4616_s30 + $0x240] sm:$0xff] }
  0xf6   : > { %3717 = vmatpush1.bf16.xpose.msra.mxu0 %v3716_v63  ;;  %v3858_v39 = vpack.c.bf16 %v1201_v35, %v1197_v34  ;;  %v1077_v44 = vld [vmem:[%s4616_s30 + $0x248] sm:$0xff]  ;;  %v1080_v53 = vld [vmem:[%s4616_s30 + $0x260] sm:$0xff] }
  0xf7   : > { %3719 = vmatprep.subr.bf16.mxu0 %v3718_v1  ;;  %v1081_v45 = vld [vmem:[%s4616_s30 + $0x268] sm:$0xff]  ;;  %v1204_v54 = vld [vmem:[%s4616_s30 + $0x640] sm:$0xff]  ;;  %v3736_v60 = vpack.c.bf16 %v1080_v53, %v1076_v52 }
  0xf8   : > { %3845 = vmatpush1.bf16.xpose.msra.mxu1 %v3844_v0  ;;  %v1205_v46 = vld [vmem:[%s4616_s30 + $0x648] sm:$0xff]  ;;  %v3734_v50 = vpack.c.bf16 %v1081_v45, %v1077_v44  ;;  %v1208_v55 = vld [vmem:[%s4616_s30 + $0x660] sm:$0xff] }
  0xf9   : > { %3847 = vmatprep.subr.bf16.mxu1 %v3846_v2  ;;  %v1209_v47 = vld [vmem:[%s4616_s30 + $0x668] sm:$0xff]  ;;  %v3864_v61 = vpack.c.bf16 %v1208_v55, %v1204_v54  ;;  %v1084_v0 = vld [vmem:[%s4616_s30 + $0x280] sm:$0xff] }
  0xfa   : > { %v3862_v51 = vpack.c.bf16 %v1209_v47, %v1205_v46  ;;  %v1085_v56 = vld [vmem:[%s4616_s30 + $0x288] sm:$0xff]  ;;  %v1088_v1 = vld [vmem:[%s4616_s30 + $0x2a0] sm:$0xff] }
  0xfb   : > { %v1089_v57 = vld [vmem:[%s4616_s30 + $0x2a8] sm:$0xff]  ;;  %v1212_v2 = vld [vmem:[%s4616_s30 + $0x680] sm:$0xff]  ;;  %v3740_v8 = vpack.c.bf16 %v1088_v1, %v1084_v0  ;;  %v1007_v0 = vld [vmem:[%s4616_s30 + $0x18] sm:$0xff] }
  0xfc   : > { %v1213_v58 = vld [vmem:[%s4616_s30 + $0x688] sm:$0xff]  ;;  %v3738_v62 = vpack.c.bf16 %v1089_v57, %v1085_v56  ;;  %v1216_v3 = vld [vmem:[%s4616_s30 + $0x6a0] sm:$0xff]  ;;  %v1011_v1 = vld [vmem:[%s4616_s30 + $0x38] sm:$0xff] }
  0xfd   : > { %v1217_v59 = vld [vmem:[%s4616_s30 + $0x6a8] sm:$0xff]  ;;  %v3868_v9 = vpack.c.bf16 %v1216_v3, %v1212_v2  ;;  %v1224_v15 = vld [vmem:[%s4616_s30 + $0x6e0] sm:$0xff]  ;;  %v1135_v2 = vld [vmem:[%s4616_s30 + $0x418] sm:$0xff] }
  0xfe   : > { %3721 = vmatpush1.bf16.xpose.msra.mxu0 %v3720_v11  ;;  %v3866_v63 = vpack.c.bf16 %v1217_v59, %v1213_v58  ;;  %v1093_v4 = vld [vmem:[%s4616_s30 + $0x2c8] sm:$0xff]  ;;  %v1139_v3 = vld [vmem:[%s4616_s30 + $0x438] sm:$0xff] }
  0xff   : > { %3723 = vmatprep.subr.bf16.mxu0 %v3722_v13  ;;  %v1097_v5 = vld [vmem:[%s4616_s30 + $0x2e8] sm:$0xff]  ;;  %v1096_v13 = vld [vmem:[%s4616_s30 + $0x2e0] sm:$0xff] }
 0x100   : > { %3849 = vmatpush1.bf16.xpose.msra.mxu1 %v3848_v12  ;;  %v1221_v6 = vld [vmem:[%s4616_s30 + $0x6c8] sm:$0xff]  ;;  %v3742_v10 = vpack.c.bf16 %v1097_v5, %v1093_v4  ;;  %v1092_v12 = vld [vmem:[%s4616_s30 + $0x2c0] sm:$0xff] }
 0x101   : > { %3851 = vmatprep.subr.bf16.mxu1 %v3850_v14  ;;  %v1225_v7 = vld [vmem:[%s4616_s30 + $0x6e8] sm:$0xff]  ;;  %v1220_v14 = vld [vmem:[%s4616_s30 + $0x6c0] sm:$0xff]  ;;  %v3744_v20 = vpack.c.bf16 %v1096_v13, %v1092_v12  ;;  %v1015_v12 = vld [vmem:[%s4616_s30 + $0x58] sm:$0xff] }
 0x102   : > { %v3870_v11 = vpack.c.bf16 %v1225_v7, %v1221_v6  ;;  %v1101_v16 = vld [vmem:[%s4616_s30 + $0x308] sm:$0xff]  ;;  %v3872_v21 = vpack.c.bf16 %v1224_v15, %v1220_v14  ;;  %v3762_v6 = vpack.c.bf16 %v1011_v1, %v1007_v0  ;;  %v3890_v7 = vpack.c.bf16 %v1139_v3, %v1135_v2  ;;  %v1019_v13 = vld [vmem:[%s4616_s30 + $0x78] sm:$0xff]  ;;  %v748_v14 = vld [vmem:[%s4610_s18] sm:$0xff] }
 0x103   : > { %v1105_v17 = vld [vmem:[%s4616_s30 + $0x328] sm:$0xff]  ;;  %v1171_v0 = vld [vmem:[%s4616_s30 + $0x538] sm:$0xff] }
 0x104   : > { %v1229_v18 = vld [vmem:[%s4616_s30 + $0x708] sm:$0xff]  ;;  %v3746_v22 = vpack.c.bf16 %v1105_v17, %v1101_v16  ;;  %v1143_v16 = vld [vmem:[%s4616_s30 + $0x458] sm:$0xff] }
 0x105   : > { %v1233_v19 = vld [vmem:[%s4616_s30 + $0x728] sm:$0xff]  ;;  %v1147_v17 = vld [vmem:[%s4616_s30 + $0x478] sm:$0xff] }
 0x106   : > { %3725 = vmatpush1.bf16.xpose.msra.mxu0 %v3724_v24  ;;  %v3874_v23 = vpack.c.bf16 %v1233_v19, %v1229_v18  ;;  %v1100_v24 = vld [vmem:[%s4616_s30 + $0x300] sm:$0xff]  ;;  %v1109_v28 = vld [vmem:[%s4616_s30 + $0x348] sm:$0xff] }
 0x107   : > { %3727 = vmatprep.subr.bf16.mxu0 %v3726_v26  ;;  %v1228_v26 = vld [vmem:[%s4616_s30 + $0x700] sm:$0xff]  ;;  %v1113_v29 = vld [vmem:[%s4616_s30 + $0x368] sm:$0xff] }
 0x108   : > { %3853 = vmatpush1.bf16.xpose.msra.mxu1 %v3852_v25  ;;  %v1104_v25 = vld [vmem:[%s4616_s30 + $0x320] sm:$0xff]  ;;  %v1237_v30 = vld [vmem:[%s4616_s30 + $0x748] sm:$0xff]  ;;  %v3750_v34 = vpack.c.bf16 %v1113_v29, %v1109_v28  ;;  %v1023_v28 = vld [vmem:[%s4616_s30 + $0x98] sm:$0xff] }
 0x109   : > { %3855 = vmatprep.subr.bf16.mxu1 %v3854_v27  ;;  %v1232_v27 = vld [vmem:[%s4616_s30 + $0x720] sm:$0xff]  ;;  %v1241_v31 = vld [vmem:[%s4616_s30 + $0x768] sm:$0xff]  ;;  %v3748_v32 = vpack.c.bf16 %v1104_v25, %v1100_v24  ;;  %v1014_v24 = vld [vmem:[%s4616_s30 + $0x50] sm:$0xff] }
 0x10a   : > { %v3876_v33 = vpack.c.bf16 %v1232_v27, %v1228_v26  ;;  %v3878_v35 = vpack.c.bf16 %v1241_v31, %v1237_v30  ;;  %v1117_v40 = vld [vmem:[%s4616_s30 + $0x388] sm:$0xff]  ;;  %v1018_v25 = vld [vmem:[%s4616_s30 + $0x70] sm:$0xff]  ;;  %v1027_v29 = vld [vmem:[%s4616_s30 + $0xb8] sm:$0xff] }
 0x10b   : > { %v1121_v41 = vld [vmem:[%s4616_s30 + $0x3a8] sm:$0xff]  ;;  %v1142_v26 = vld [vmem:[%s4616_s30 + $0x450] sm:$0xff]  ;;  %v756_v30 = vld [vmem:[%s4610_s18 + $0x40] sm:$0xff] }
 0x10c   : > { %v1245_v42 = vld [vmem:[%s4616_s30 + $0x788] sm:$0xff]  ;;  %v3754_v46 = vpack.c.bf16 %v1121_v41, %v1117_v40  ;;  %v1146_v27 = vld [vmem:[%s4616_s30 + $0x470] sm:$0xff]  ;;  %v1151_v31 = vld [vmem:[%s4616_s30 + $0x498] sm:$0xff] }
 0x10d   : > { %v1249_v43 = vld [vmem:[%s4616_s30 + $0x7a8] sm:$0xff]  ;;  %v1022_v40 = vld [vmem:[%s4616_s30 + $0x90] sm:$0xff] }
 0x10e   : > { %3729 = vmatpush1.bf16.xpose.msra.mxu0 %v3728_v36  ;;  %v1108_v36 = vld [vmem:[%s4616_s30 + $0x340] sm:$0xff]  ;;  %v3882_v47 = vpack.c.bf16 %v1249_v43, %v1245_v42  ;;  %v1125_v52 = vld [vmem:[%s4616_s30 + $0x3c8] sm:$0xff]  ;;  %v1026_v41 = vld [vmem:[%s4616_s30 + $0xb0] sm:$0xff] }
 0x10f   : > { %3731 = vmatprep.subr.bf16.mxu0 %v3730_v38  ;;  %v1236_v38 = vld [vmem:[%s4616_s30 + $0x740] sm:$0xff]  ;;  %v1129_v53 = vld [vmem:[%s4616_s30 + $0x3e8] sm:$0xff]  ;;  %v1150_v42 = vld [vmem:[%s4616_s30 + $0x490] sm:$0xff] }
 0x110   : > { %3857 = vmatpush1.bf16.xpose.msra.mxu1 %v3856_v37  ;;  %v1112_v37 = vld [vmem:[%s4616_s30 + $0x360] sm:$0xff]  ;;  %v1253_v54 = vld [vmem:[%s4616_s30 + $0x7c8] sm:$0xff]  ;;  %v3758_v58 = vpack.c.bf16 %v1129_v53, %v1125_v52  ;;  %v1154_v43 = vld [vmem:[%s4616_s30 + $0x4b0] sm:$0xff] }
 0x111   : > { %3859 = vmatprep.subr.bf16.mxu1 %v3858_v39  ;;  %v1240_v39 = vld [vmem:[%s4616_s30 + $0x760] sm:$0xff]  ;;  %v3752_v44 = vpack.c.bf16 %v1112_v37, %v1108_v36  ;;  %v1257_v55 = vld [vmem:[%s4616_s30 + $0x7e8] sm:$0xff]  ;;  %v3770_v36 = vpack.c.bf16 %v1027_v29, %v1023_v28  ;;  %v1055_v28 = vld [vmem:[%s4616_s30 + $0x198] sm:$0xff] }
 0x112   : > { %v3880_v45 = vpack.c.bf16 %v1240_v39, %v1236_v38  ;;  %v3886_v59 = vpack.c.bf16 %v1257_v55, %v1253_v54  ;;  %v753_v19 = vld [vmem:[%s4610_s18 + $0x28] sm:$0xff]  ;;  %v760_v38 = vld [vmem:[%s4610_s18 + $0x60] sm:$0xff]  ;;  %v1059_v29 = vld [vmem:[%s4616_s30 + $0x1b8] sm:$0xff] }
 0x113   : > { %v765_v39 = vld [vmem:[%s4610_s18 + $0x88] sm:$0xff]  ;;  %v768_v54 = vld [vmem:[%s4610_s18 + $0xa0] sm:$0xff] }
 0x114   : > { %v773_v55 = vld [vmem:[%s4610_s18 + $0xc8] sm:$0xff] }
 0x115   : > { %v777_v1 = vld [vmem:[%s4610_s18 + $0xe8] sm:$0xff] }
 0x116   : > { %3733 = vmatpush1.bf16.xpose.msra.mxu0 %v3732_v48  ;;  %v1116_v48 = vld [vmem:[%s4616_s30 + $0x380] sm:$0xff] }
 0x117   : > { %3735 = vmatprep.subr.bf16.mxu0 %v3734_v50  ;;  %v1244_v50 = vld [vmem:[%s4616_s30 + $0x780] sm:$0xff] }
 0x118   : > { %3861 = vmatpush1.bf16.xpose.msra.mxu1 %v3860_v49  ;;  %v1120_v49 = vld [vmem:[%s4616_s30 + $0x3a0] sm:$0xff] }
 0x119   : > { %3863 = vmatprep.subr.bf16.mxu1 %v3862_v51  ;;  %v1248_v51 = vld [vmem:[%s4616_s30 + $0x7a0] sm:$0xff]  ;;  %v3756_v56 = vpack.c.bf16 %v1120_v49, %v1116_v48  ;;  %v1163_v48 = vld [vmem:[%s4616_s30 + $0x4f8] sm:$0xff]  ;;  %v769_v49 = vld [vmem:[%s4610_s18 + $0xa8] sm:$0xff] }
 0x11a   : > { %v3884_v57 = vpack.c.bf16 %v1248_v51, %v1244_v50  ;;  %v3772_v50 = vpack.c.bf16 %v1026_v41, %v1022_v40  ;;  %v3900_v51 = vpack.c.bf16 %v1154_v43, %v1150_v42  ;;  %v1054_v40 = vld [vmem:[%s4616_s30 + $0x190] sm:$0xff] }
 0x11b   : > { %v1058_v41 = vld [vmem:[%s4616_s30 + $0x1b0] sm:$0xff] }
 0x11c   : > { %v1182_v42 = vld [vmem:[%s4616_s30 + $0x590] sm:$0xff] }
 0x11d   : > { %v1186_v43 = vld [vmem:[%s4616_s30 + $0x5b0] sm:$0xff] }
 0x11e   : > { %3737 = vmatpush1.bf16.xpose.msra.mxu0 %v3736_v60  ;;  %v1124_v60 = vld [vmem:[%s4616_s30 + $0x3c0] sm:$0xff] }
 0x11f   : > { %3739 = vmatprep.subr.bf16.mxu0 %v3738_v62  ;;  %v1252_v62 = vld [vmem:[%s4616_s30 + $0x7c0] sm:$0xff] }
 0x120   : > { %3865 = vmatpush1.bf16.xpose.msra.mxu1 %v3864_v61  ;;  %v1128_v61 = vld [vmem:[%s4616_s30 + $0x3e0] sm:$0xff] }
 0x121   : > { %3867 = vmatprep.subr.bf16.mxu1 %v3866_v63  ;;  %v1256_v63 = vld [vmem:[%s4616_s30 + $0x7e0] sm:$0xff]  ;;  %v3760_v4 = vpack.c.bf16 %v1128_v61, %v1124_v60  ;;  %v1039_v60 = vld [vmem:[%s4616_s30 + $0x118] sm:$0xff] }
 0x122   : > { %v3888_v5 = vpack.c.bf16 %v1256_v63, %v1252_v62  ;;  %v1043_v61 = vld [vmem:[%s4616_s30 + $0x138] sm:$0xff]  ;;  %v772_v62 = vld [vmem:[%s4610_s18 + $0xc0] sm:$0xff] }
 0x123   : > { %v1167_v63 = vld [vmem:[%s4616_s30 + $0x518] sm:$0xff] }
 0x126   : > { %3741 = vmatpush1.bf16.xpose.msra.mxu0 %v3740_v8  ;;  %v1006_v8 = vld [vmem:[%s4616_s30 + $0x10] sm:$0xff] }
 0x127   : > { %3743 = vmatprep.subr.bf16.mxu0 %v3742_v10  ;;  %v1134_v10 = vld [vmem:[%s4616_s30 + $0x410] sm:$0xff] }
 0x128   : > { %3869 = vmatpush1.bf16.xpose.msra.mxu1 %v3868_v9  ;;  %v1010_v9 = vld [vmem:[%s4616_s30 + $0x30] sm:$0xff] }
 0x129   : > { %3871 = vmatprep.subr.bf16.mxu1 %v3870_v11  ;;  %v1138_v11 = vld [vmem:[%s4616_s30 + $0x430] sm:$0xff]  ;;  %v3764_v15 = vpack.c.bf16 %v1010_v9, %v1006_v8 }
 0x12a   : > { %v3892_v18 = vpack.c.bf16 %v1138_v11, %v1134_v10  ;;  %v1038_v8 = vld [vmem:[%s4616_s30 + $0x110] sm:$0xff] }
 0x12b   : > { %v1042_v9 = vld [vmem:[%s4616_s30 + $0x130] sm:$0xff] }
 0x12c   : > { %v1166_v10 = vld [vmem:[%s4616_s30 + $0x510] sm:$0xff] }
 0x12d   : > { %v1170_v11 = vld [vmem:[%s4616_s30 + $0x530] sm:$0xff] }
 0x12e   : > { %3745 = vmatpush1.bf16.xpose.msra.mxu0 %v3744_v20  ;;  %v3766_v20 = vpack.c.bf16 %v1019_v13, %v1015_v12  ;;  %v1047_v12 = vld [vmem:[%s4616_s30 + $0x158] sm:$0xff] }
 0x12f   : > { %3747 = vmatprep.subr.bf16.mxu0 %v3746_v22  ;;  %v752_v22 = vld [vmem:[%s4610_s18 + $0x20] sm:$0xff]  ;;  %v1051_v13 = vld [vmem:[%s4616_s30 + $0x178] sm:$0xff] }
 0x130   : > { %3873 = vmatpush1.bf16.xpose.msra.mxu1 %v3872_v21  ;;  %v3894_v21 = vpack.c.bf16 %v1147_v17, %v1143_v16  ;;  %v1179_v16 = vld [vmem:[%s4616_s30 + $0x578] sm:$0xff]  ;;  %v785_v17 = vld [vmem:[%s4610_s18 + $0x128] sm:$0xff] }
 0x131   : > { %3875 = vmatprep.subr.bf16.mxu1 %v3874_v23  ;;  %v757_v23 = vld [vmem:[%s4610_s18 + $0x48] sm:$0xff] }
 0x136   : > { %3749 = vmatpush1.bf16.xpose.msra.mxu0 %v3748_v32  ;;  %v1155_v32 = vld [vmem:[%s4616_s30 + $0x4b8] sm:$0xff] }
 0x137   : > { %3751 = vmatprep.subr.bf16.mxu0 %v3750_v34  ;;  %v3768_v34 = vpack.c.bf16 %v1018_v25, %v1014_v24  ;;  %v3898_v37 = vpack.c.bf16 %v1155_v32, %v1151_v31  ;;  %v1046_v24 = vld [vmem:[%s4616_s30 + $0x150] sm:$0xff]  ;;  %v1183_v31 = vld [vmem:[%s4616_s30 + $0x598] sm:$0xff] }
 0x138   : > { %3877 = vmatpush1.bf16.xpose.msra.mxu1 %v3876_v33  ;;  %v761_v33 = vld [vmem:[%s4610_s18 + $0x68] sm:$0xff]  ;;  %v1050_v25 = vld [vmem:[%s4616_s30 + $0x170] sm:$0xff]  ;;  %v1187_v32 = vld [vmem:[%s4616_s30 + $0x5b8] sm:$0xff] }
 0x139   : > { %3879 = vmatprep.subr.bf16.mxu1 %v3878_v35  ;;  %v3896_v35 = vpack.c.bf16 %v1146_v27, %v1142_v26  ;;  %v1174_v26 = vld [vmem:[%s4616_s30 + $0x550] sm:$0xff] }
 0x13a   : > { %v1178_v27 = vld [vmem:[%s4616_s30 + $0x570] sm:$0xff] }
 0x13e   : > { %3753 = vmatpush1.bf16.xpose.msra.mxu0 %v3752_v44  ;;  %v1031_v44 = vld [vmem:[%s4616_s30 + $0xd8] sm:$0xff] }
 0x13f   : > { %3755 = vmatprep.subr.bf16.mxu0 %v3754_v46  ;;  %v764_v46 = vld [vmem:[%s4610_s18 + $0x80] sm:$0xff] }
 0x140   : > { %3881 = vmatpush1.bf16.xpose.msra.mxu1 %v3880_v45  ;;  %v1035_v45 = vld [vmem:[%s4616_s30 + $0xf8] sm:$0xff] }
 0x141   : > { %3883 = vmatprep.subr.bf16.mxu1 %v3882_v47  ;;  %v1159_v47 = vld [vmem:[%s4616_s30 + $0x4d8] sm:$0xff]  ;;  %v3774_v52 = vpack.c.bf16 %v1035_v45, %v1031_v44 }
 0x142   : > { %v3902_v53 = vpack.c.bf16 %v1163_v48, %v1159_v47  ;;  %v1063_v44 = vld [vmem:[%s4616_s30 + $0x1d8] sm:$0xff] }
 0x143   : > { %v1067_v45 = vld [vmem:[%s4616_s30 + $0x1f8] sm:$0xff] }
 0x144   : > { %v1191_v47 = vld [vmem:[%s4616_s30 + $0x5d8] sm:$0xff] }
 0x145   : > { %v1195_v48 = vld [vmem:[%s4616_s30 + $0x5f8] sm:$0xff] }
 0x146   : > { %3757 = vmatpush1.bf16.xpose.msra.mxu0 %v3756_v56  ;;  %v1030_v56 = vld [vmem:[%s4616_s30 + $0xd0] sm:$0xff] }
 0x147   : > { %3759 = vmatprep.subr.bf16.mxu0 %v3758_v58  ;;  %v1158_v58 = vld [vmem:[%s4616_s30 + $0x4d0] sm:$0xff] }
 0x148   : > { %3885 = vmatpush1.bf16.xpose.msra.mxu1 %v3884_v57  ;;  %v1034_v57 = vld [vmem:[%s4616_s30 + $0xf0] sm:$0xff] }
 0x149   : > { %3887 = vmatprep.subr.bf16.mxu1 %v3886_v59  ;;  %v1162_v59 = vld [vmem:[%s4616_s30 + $0x4f0] sm:$0xff]  ;;  %v3776_v2 = vpack.c.bf16 %v1034_v57, %v1030_v56 }
 0x14a   : > { %v3904_v3 = vpack.c.bf16 %v1162_v59, %v1158_v58  ;;  %v1062_v56 = vld [vmem:[%s4616_s30 + $0x1d0] sm:$0xff] }
 0x14b   : > { %v1066_v57 = vld [vmem:[%s4616_s30 + $0x1f0] sm:$0xff] }
 0x14c   : > { %v1190_v58 = vld [vmem:[%s4616_s30 + $0x5d0] sm:$0xff] }
 0x14d   : > { %v1194_v59 = vld [vmem:[%s4616_s30 + $0x5f0] sm:$0xff] }
 0x14e   : > { %3761 = vmatpush1.bf16.xpose.msra.mxu0 %v3760_v4  ;;  %v3778_v4 = vpack.c.bf16 %v1043_v61, %v1039_v60  ;;  %v1071_v60 = vld [vmem:[%s4616_s30 + $0x218] sm:$0xff] }
 0x14f   : > { %3763 = vmatprep.subr.bf16.mxu0 %v3762_v6  ;;  %v776_v6 = vld [vmem:[%s4610_s18 + $0xe0] sm:$0xff]  ;;  %v1075_v61 = vld [vmem:[%s4616_s30 + $0x238] sm:$0xff] }
 0x150   : > { %3889 = vmatpush1.bf16.xpose.msra.mxu1 %v3888_v5  ;;  %v3906_v5 = vpack.c.bf16 %v1171_v0, %v1167_v63  ;;  %v1199_v63 = vld [vmem:[%s4616_s30 + $0x618] sm:$0xff] }
 0x151   : > { %3891 = vmatprep.subr.bf16.mxu1 %v3890_v7  ;;  %v781_v7 = vld [vmem:[%s4610_s18 + $0x108] sm:$0xff]  ;;  %v1203_v0 = vld [vmem:[%s4616_s30 + $0x638] sm:$0xff] }
 0x155   : > { %1325 = vmatmul.mubr.f32.vlgmr.msra.gmra.mrb[0].mxu0 %v748_v14 }
 0x156   : > { %3765 = vmatpush1.bf16.xpose.msra.mxu0 %v3764_v15  ;;  %1330 = vmatprep.mubr.f32.mxu0 %v753_v19  ;;  %v1175_v15 = vld [vmem:[%s4616_s30 + $0x558] sm:$0xff] }
 0x157   : > { %2223 = vmatmul.mubr.f32.vlgmr.msra.gmra.mrb[0].mxu1 %v748_v14  ;;  %3767 = vmatprep.subr.bf16.mxu0 %v3766_v20  ;;  %v780_v14 = vld [vmem:[%s4610_s18 + $0x100] sm:$0xff]  ;;  %v3782_v20 = vpack.c.bf16 %v1051_v13, %v1047_v12  ;;  %v1079_v12 = vld [vmem:[%s4616_s30 + $0x258] sm:$0xff] }
 0x158   : > { %3893 = vmatpush1.bf16.xpose.msra.mxu1 %v3892_v18  ;;  %2228 = vmatprep.mubr.f32.mxu1 %v753_v19  ;;  %v3780_v18 = vpack.c.bf16 %v1042_v9, %v1038_v8  ;;  %v3908_v19 = vpack.c.bf16 %v1170_v11, %v1166_v10  ;;  %v1070_v8 = vld [vmem:[%s4616_s30 + $0x210] sm:$0xff]  ;;  %v1083_v13 = vld [vmem:[%s4616_s30 + $0x278] sm:$0xff] }
 0x159   : > { %1331 = vmatmul.mubr.f32.gmra.mrb[2].mxu0 %v752_v22  ;;  %3895 = vmatprep.subr.bf16.mxu1 %v3894_v21  ;;  %v3910_v21 = vpack.c.bf16 %v1179_v16, %v1175_v15  ;;  %v1074_v9 = vld [vmem:[%s4616_s30 + $0x230] sm:$0xff]  ;;  %v1207_v15 = vld [vmem:[%s4616_s30 + $0x658] sm:$0xff] }
 0x15a   : > { %1336 = vmatprep.mubr.f32.mxu0 %v757_v23  ;;  %v1198_v10 = vld [vmem:[%s4616_s30 + $0x610] sm:$0xff]  ;;  %v1211_v16 = vld [vmem:[%s4616_s30 + $0x678] sm:$0xff] }
 0x15b   : > { %2229 = vmatmul.mubr.f32.gmra.mrb[2].mxu1 %v752_v22  ;;  %v784_v22 = vld [vmem:[%s4610_s18 + $0x120] sm:$0xff]  ;;  %v1202_v11 = vld [vmem:[%s4616_s30 + $0x630] sm:$0xff] }
 0x15c   : > { %2234 = vmatprep.mubr.f32.mxu1 %v757_v23  ;;  %v789_v23 = vld [vmem:[%s4610_s18 + $0x148] sm:$0xff] }
 0x15d   : > { %1337 = vmatmul.mubr.f32.gmra.mrb[4].mxu0 %v756_v30 }
 0x15e   : > { %1342 = vmatprep.mubr.f32.mxu0 %v761_v33  ;;  %3769 = vmatpush1.bf16.xpose.msra.mxu0 %v3768_v34  ;;  %v3784_v34 = vpack.c.bf16 %v1050_v25, %v1046_v24  ;;  %v1078_v24 = vld [vmem:[%s4616_s30 + $0x250] sm:$0xff] }
 0x15f   : > { %2235 = vmatmul.mubr.f32.gmra.mrb[4].mxu1 %v756_v30  ;;  %3771 = vmatprep.subr.bf16.mxu0 %v3770_v36  ;;  %v788_v30 = vld [vmem:[%s4610_s18 + $0x140] sm:$0xff]  ;;  %v3786_v36 = vpack.c.bf16 %v1059_v29, %v1055_v28  ;;  %v1082_v25 = vld [vmem:[%s4616_s30 + $0x270] sm:$0xff]  ;;  %v1087_v28 = vld [vmem:[%s4616_s30 + $0x298] sm:$0xff] }
 0x160   : > { %2240 = vmatprep.mubr.f32.mxu1 %v761_v33  ;;  %3897 = vmatpush1.bf16.xpose.msra.mxu1 %v3896_v35  ;;  %v793_v33 = vld [vmem:[%s4610_s18 + $0x168] sm:$0xff]  ;;  %v3912_v35 = vpack.c.bf16 %v1178_v27, %v1174_v26  ;;  %v1206_v26 = vld [vmem:[%s4616_s30 + $0x650] sm:$0xff]  ;;  %v1091_v29 = vld [vmem:[%s4616_s30 + $0x2b8] sm:$0xff] }
 0x161   : > { %1343 = vmatmul.mubr.f32.gmra.mrb[6].mxu0 %v760_v38  ;;  %3899 = vmatprep.subr.bf16.mxu1 %v3898_v37  ;;  %v3914_v37 = vpack.c.bf16 %v1187_v32, %v1183_v31  ;;  %v1210_v27 = vld [vmem:[%s4616_s30 + $0x670] sm:$0xff]  ;;  %v1215_v31 = vld [vmem:[%s4616_s30 + $0x698] sm:$0xff] }
 0x162   : > { %1348 = vmatprep.mubr.f32.mxu0 %v765_v39  ;;  %v1219_v32 = vld [vmem:[%s4616_s30 + $0x6b8] sm:$0xff] }
 0x163   : > { %2241 = vmatmul.mubr.f32.gmra.mrb[6].mxu1 %v760_v38  ;;  %v792_v38 = vld [vmem:[%s4610_s18 + $0x160] sm:$0xff] }
 0x164   : > { %2246 = vmatprep.mubr.f32.mxu1 %v765_v39  ;;  %v797_v39 = vld [vmem:[%s4610_s18 + $0x188] sm:$0xff] }
 0x165   : > { %1349 = vmatmul.mubr.f32.gmra.mrb[8].mxu0 %v764_v46 }
 0x166   : > { %1354 = vmatprep.mubr.f32.mxu0 %v769_v49  ;;  %3773 = vmatpush1.bf16.xpose.msra.mxu0 %v3772_v50  ;;  %v3788_v50 = vpack.c.bf16 %v1058_v41, %v1054_v40  ;;  %v1086_v40 = vld [vmem:[%s4616_s30 + $0x290] sm:$0xff] }
 0x167   : > { %2247 = vmatmul.mubr.f32.gmra.mrb[8].mxu1 %v764_v46  ;;  %3775 = vmatprep.subr.bf16.mxu0 %v3774_v52  ;;  %v796_v46 = vld [vmem:[%s4610_s18 + $0x180] sm:$0xff]  ;;  %v3790_v52 = vpack.c.bf16 %v1067_v45, %v1063_v44  ;;  %v1090_v41 = vld [vmem:[%s4616_s30 + $0x2b0] sm:$0xff]  ;;  %v1095_v44 = vld [vmem:[%s4616_s30 + $0x2d8] sm:$0xff] }
 0x168   : > { %2252 = vmatprep.mubr.f32.mxu1 %v769_v49  ;;  %3901 = vmatpush1.bf16.xpose.msra.mxu1 %v3900_v51  ;;  %v801_v49 = vld [vmem:[%s4610_s18 + $0x1a8] sm:$0xff]  ;;  %v3916_v51 = vpack.c.bf16 %v1186_v43, %v1182_v42  ;;  %v1214_v42 = vld [vmem:[%s4616_s30 + $0x690] sm:$0xff]  ;;  %v1099_v45 = vld [vmem:[%s4616_s30 + $0x2f8] sm:$0xff] }
 0x169   : > { %1355 = vmatmul.mubr.f32.gmra.mrb[10].mxu0 %v768_v54  ;;  %3903 = vmatprep.subr.bf16.mxu1 %v3902_v53  ;;  %v3918_v53 = vpack.c.bf16 %v1195_v48, %v1191_v47  ;;  %v1218_v43 = vld [vmem:[%s4616_s30 + $0x6b0] sm:$0xff]  ;;  %v1223_v47 = vld [vmem:[%s4616_s30 + $0x6d8] sm:$0xff] }
 0x16a   : > { %1360 = vmatprep.mubr.f32.mxu0 %v773_v55  ;;  %v1227_v48 = vld [vmem:[%s4616_s30 + $0x6f8] sm:$0xff] }
 0x16b   : > { %2253 = vmatmul.mubr.f32.gmra.mrb[10].mxu1 %v768_v54  ;;  %v800_v54 = vld [vmem:[%s4610_s18 + $0x1a0] sm:$0xff] }
 0x16c   : > { %2258 = vmatprep.mubr.f32.mxu1 %v773_v55  ;;  %v805_v55 = vld [vmem:[%s4610_s18 + $0x1c8] sm:$0xff] }
 0x16d   : > { %1361 = vmatmul.mubr.f32.gmra.mrb[12].mxu0 %v772_v62 }
 0x16e   : > { %1366 = vmatprep.mubr.f32.mxu0 %v777_v1  ;;  %3777 = vmatpush1.bf16.xpose.msra.mxu0 %v3776_v2  ;;  %v3792_v2 = vpack.c.bf16 %v1066_v57, %v1062_v56  ;;  %v1094_v56 = vld [vmem:[%s4616_s30 + $0x2d0] sm:$0xff] }
 0x16f   : > { %2259 = vmatmul.mubr.f32.gmra.mrb[12].mxu1 %v772_v62  ;;  %3779 = vmatprep.subr.bf16.mxu0 %v3778_v4  ;;  %v804_v62 = vld [vmem:[%s4610_s18 + $0x1c0] sm:$0xff]  ;;  %v3794_v4 = vpack.c.bf16 %v1075_v61, %v1071_v60  ;;  %v1098_v57 = vld [vmem:[%s4616_s30 + $0x2f0] sm:$0xff]  ;;  %v1103_v60 = vld [vmem:[%s4616_s30 + $0x318] sm:$0xff] }
 0x170   : > { %2264 = vmatprep.mubr.f32.mxu1 %v777_v1  ;;  %3905 = vmatpush1.bf16.xpose.msra.mxu1 %v3904_v3  ;;  %v809_v1 = vld [vmem:[%s4610_s18 + $0x1e8] sm:$0xff]  ;;  %v3920_v3 = vpack.c.bf16 %v1194_v59, %v1190_v58  ;;  %v1222_v58 = vld [vmem:[%s4616_s30 + $0x6d0] sm:$0xff]  ;;  %v1107_v61 = vld [vmem:[%s4616_s30 + $0x338] sm:$0xff] }
 0x171   : > { %1367 = vmatmul.mubr.f32.gmra.mrb[14].mxu0 %v776_v6  ;;  %3907 = vmatprep.subr.bf16.mxu1 %v3906_v5  ;;  %v3922_v5 = vpack.c.bf16 %v1203_v0, %v1199_v63  ;;  %v1226_v59 = vld [vmem:[%s4616_s30 + $0x6f0] sm:$0xff]  ;;  %v1231_v63 = vld [vmem:[%s4616_s30 + $0x718] sm:$0xff] }
 0x172   : > { %1372 = vmatprep.mubr.f32.mxu0 %v781_v7  ;;  %v1235_v0 = vld [vmem:[%s4616_s30 + $0x738] sm:$0xff] }
 0x173   : > { %2265 = vmatmul.mubr.f32.gmra.mrb[14].mxu1 %v776_v6  ;;  %v808_v6 = vld [vmem:[%s4610_s18 + $0x1e0] sm:$0xff] }
 0x174   : > { %2270 = vmatprep.mubr.f32.mxu1 %v781_v7  ;;  %v813_v7 = vld [vmem:[%s4610_s18 + $0x208] sm:$0xff] }
 0x175   : > { %1373 = vmatmul.mubr.f32.gmra.mrb[16].mxu0 %v780_v14 }
 0x176   : > { %1378 = vmatprep.mubr.f32.mxu0 %v785_v17  ;;  %3781 = vmatpush1.bf16.xpose.msra.mxu0 %v3780_v18  ;;  %v3796_v18 = vpack.c.bf16 %v1074_v9, %v1070_v8  ;;  %v1102_v8 = vld [vmem:[%s4616_s30 + $0x310] sm:$0xff] }
 0x177   : > { %2271 = vmatmul.mubr.f32.gmra.mrb[16].mxu1 %v780_v14  ;;  %3783 = vmatprep.subr.bf16.mxu0 %v3782_v20  ;;  %v812_v14 = vld [vmem:[%s4610_s18 + $0x200] sm:$0xff]  ;;  %v3798_v20 = vpack.c.bf16 %v1083_v13, %v1079_v12  ;;  %v1106_v9 = vld [vmem:[%s4616_s30 + $0x330] sm:$0xff]  ;;  %v1111_v12 = vld [vmem:[%s4616_s30 + $0x358] sm:$0xff] }
 0x178   : > { %2276 = vmatprep.mubr.f32.mxu1 %v785_v17  ;;  %3909 = vmatpush1.bf16.xpose.msra.mxu1 %v3908_v19  ;;  %v817_v17 = vld [vmem:[%s4610_s18 + $0x228] sm:$0xff]  ;;  %v3924_v19 = vpack.c.bf16 %v1202_v11, %v1198_v10  ;;  %v1230_v10 = vld [vmem:[%s4616_s30 + $0x710] sm:$0xff]  ;;  %v1115_v13 = vld [vmem:[%s4616_s30 + $0x378] sm:$0xff] }
 0x179   : > { %1379 = vmatmul.mubr.f32.gmra.mrb[18].mxu0 %v784_v22  ;;  %3911 = vmatprep.subr.bf16.mxu1 %v3910_v21  ;;  %v3926_v21 = vpack.c.bf16 %v1211_v16, %v1207_v15  ;;  %v1234_v11 = vld [vmem:[%s4616_s30 + $0x730] sm:$0xff]  ;;  %v1239_v15 = vld [vmem:[%s4616_s30 + $0x758] sm:$0xff] }
 0x17a   : > { %1384 = vmatprep.mubr.f32.mxu0 %v789_v23  ;;  %v1243_v16 = vld [vmem:[%s4616_s30 + $0x778] sm:$0xff] }
 0x17b   : > { %2277 = vmatmul.mubr.f32.gmra.mrb[18].mxu1 %v784_v22  ;;  %v816_v22 = vld [vmem:[%s4610_s18 + $0x220] sm:$0xff] }
 0x17c   : > { %2282 = vmatprep.mubr.f32.mxu1 %v789_v23  ;;  %v821_v23 = vld [vmem:[%s4610_s18 + $0x248] sm:$0xff] }
 0x17d   : > { %1385 = vmatmul.mubr.f32.gmra.mrb[20].mxu0 %v788_v30 }
 0x17e   : > { %1390 = vmatprep.mubr.f32.mxu0 %v793_v33  ;;  %3785 = vmatpush1.bf16.xpose.msra.mxu0 %v3784_v34  ;;  %v3800_v34 = vpack.c.bf16 %v1082_v25, %v1078_v24  ;;  %v1110_v24 = vld [vmem:[%s4616_s30 + $0x350] sm:$0xff] }
 0x17f   : > { %2283 = vmatmul.mubr.f32.gmra.mrb[20].mxu1 %v788_v30  ;;  %3787 = vmatprep.subr.bf16.mxu0 %v3786_v36  ;;  %v820_v30 = vld [vmem:[%s4610_s18 + $0x240] sm:$0xff]  ;;  %v3802_v36 = vpack.c.bf16 %v1091_v29, %v1087_v28  ;;  %v1114_v25 = vld [vmem:[%s4616_s30 + $0x370] sm:$0xff]  ;;  %v1119_v28 = vld [vmem:[%s4616_s30 + $0x398] sm:$0xff] }
 0x180   : > { %2288 = vmatprep.mubr.f32.mxu1 %v793_v33  ;;  %3913 = vmatpush1.bf16.xpose.msra.mxu1 %v3912_v35  ;;  %v825_v33 = vld [vmem:[%s4610_s18 + $0x268] sm:$0xff]  ;;  %v3928_v35 = vpack.c.bf16 %v1210_v27, %v1206_v26  ;;  %v1238_v26 = vld [vmem:[%s4616_s30 + $0x750] sm:$0xff]  ;;  %v1123_v29 = vld [vmem:[%s4616_s30 + $0x3b8] sm:$0xff] }
 0x181   : > { %1391 = vmatmul.mubr.f32.gmra.mrb[22].mxu0 %v792_v38  ;;  %3915 = vmatprep.subr.bf16.mxu1 %v3914_v37  ;;  %v3930_v37 = vpack.c.bf16 %v1219_v32, %v1215_v31  ;;  %v1242_v27 = vld [vmem:[%s4616_s30 + $0x770] sm:$0xff]  ;;  %v1247_v31 = vld [vmem:[%s4616_s30 + $0x798] sm:$0xff] }
 0x182   : > { %1396 = vmatprep.mubr.f32.mxu0 %v797_v39  ;;  %v1251_v32 = vld [vmem:[%s4616_s30 + $0x7b8] sm:$0xff] }
 0x183   : > { %2289 = vmatmul.mubr.f32.gmra.mrb[22].mxu1 %v792_v38  ;;  %v824_v38 = vld [vmem:[%s4610_s18 + $0x260] sm:$0xff] }
 0x184   : > { %2294 = vmatprep.mubr.f32.mxu1 %v797_v39  ;;  %v829_v39 = vld [vmem:[%s4610_s18 + $0x288] sm:$0xff] }
 0x185   : > { %1397 = vmatmul.mubr.f32.gmra.mrb[24].mxu0 %v796_v46 }
 0x186   : > { %1402 = vmatprep.mubr.f32.mxu0 %v801_v49  ;;  %3789 = vmatpush1.bf16.xpose.msra.mxu0 %v3788_v50  ;;  %v3804_v50 = vpack.c.bf16 %v1090_v41, %v1086_v40  ;;  %v1118_v40 = vld [vmem:[%s4616_s30 + $0x390] sm:$0xff] }
 0x187   : > { %2295 = vmatmul.mubr.f32.gmra.mrb[24].mxu1 %v796_v46  ;;  %3791 = vmatprep.subr.bf16.mxu0 %v3790_v52  ;;  %v828_v46 = vld [vmem:[%s4610_s18 + $0x280] sm:$0xff]  ;;  %v3806_v52 = vpack.c.bf16 %v1099_v45, %v1095_v44  ;;  %v1122_v41 = vld [vmem:[%s4616_s30 + $0x3b0] sm:$0xff]  ;;  %v865_v45 = vld [vmem:[%s4610_s18 + $0x3a8] sm:$0xff] }
 0x188   : > { %2300 = vmatprep.mubr.f32.mxu1 %v801_v49  ;;  %3917 = vmatpush1.bf16.xpose.msra.mxu1 %v3916_v51  ;;  %v833_v49 = vld [vmem:[%s4610_s18 + $0x2a8] sm:$0xff]  ;;  %v3932_v51 = vpack.c.bf16 %v1218_v43, %v1214_v42  ;;  %v1246_v42 = vld [vmem:[%s4616_s30 + $0x790] sm:$0xff]  ;;  %v860_v44 = vld [vmem:[%s4610_s18 + $0x380] sm:$0xff] }
 0x189   : > { %1403 = vmatmul.mubr.f32.gmra.mrb[26].mxu0 %v800_v54  ;;  %3919 = vmatprep.subr.bf16.mxu1 %v3918_v53  ;;  %v3934_v53 = vpack.c.bf16 %v1227_v48, %v1223_v47  ;;  %v1250_v43 = vld [vmem:[%s4616_s30 + $0x7b0] sm:$0xff]  ;;  %v1127_v48 = vld [vmem:[%s4616_s30 + $0x3d8] sm:$0xff] }
 0x18a   : > { %1408 = vmatprep.mubr.f32.mxu0 %v805_v55  ;;  %v3948_v47 = vpack.c.bf16 %v1250_v43, %v1246_v42  ;;  %v956_v42 = vld [vmem:[%s4610_s18 + $0x680] sm:$0xff]  ;;  %v961_v43 = vld [vmem:[%s4610_s18 + $0x6a8] sm:$0xff] }
 0x18b   : > { %2301 = vmatmul.mubr.f32.gmra.mrb[26].mxu1 %v800_v54  ;;  %v832_v54 = vld [vmem:[%s4610_s18 + $0x2a0] sm:$0xff] }
 0x18c   : > { %2306 = vmatprep.mubr.f32.mxu1 %v805_v55  ;;  %v837_v55 = vld [vmem:[%s4610_s18 + $0x2c8] sm:$0xff] }
 0x18d   : > { %1409 = vmatmul.mubr.f32.gmra.mrb[28].mxu0 %v804_v62 }
 0x18e   : > { %1414 = vmatprep.mubr.f32.mxu0 %v809_v1  ;;  %3793 = vmatpush1.bf16.xpose.msra.mxu0 %v3792_v2  ;;  %v3808_v2 = vpack.c.bf16 %v1098_v57, %v1094_v56  ;;  %v1126_v56 = vld [vmem:[%s4616_s30 + $0x3d0] sm:$0xff] }
 0x18f   : > { %2307 = vmatmul.mubr.f32.gmra.mrb[28].mxu1 %v804_v62  ;;  %3795 = vmatprep.subr.bf16.mxu0 %v3794_v4  ;;  %v836_v62 = vld [vmem:[%s4610_s18 + $0x2c0] sm:$0xff]  ;;  %v3810_v4 = vpack.c.bf16 %v1107_v61, %v1103_v60  ;;  %v1130_v57 = vld [vmem:[%s4616_s30 + $0x3f0] sm:$0xff]  ;;  %v873_v61 = vld [vmem:[%s4610_s18 + $0x3e8] sm:$0xff] }
 0x190   : > { %2312 = vmatprep.mubr.f32.mxu1 %v809_v1  ;;  %3921 = vmatpush1.bf16.xpose.msra.mxu1 %v3920_v3  ;;  %v841_v1 = vld [vmem:[%s4610_s18 + $0x2e8] sm:$0xff]  ;;  %v3936_v3 = vpack.c.bf16 %v1226_v59, %v1222_v58  ;;  %v1254_v58 = vld [vmem:[%s4616_s30 + $0x7d0] sm:$0xff]  ;;  %v868_v60 = vld [vmem:[%s4610_s18 + $0x3c0] sm:$0xff] }
 0x191   : > { %1415 = vmatmul.mubr.f32.gmra.mrb[30].mxu0 %v808_v6  ;;  %3923 = vmatprep.subr.bf16.mxu1 %v3922_v5  ;;  %v3938_v5 = vpack.c.bf16 %v1235_v0, %v1231_v63  ;;  %v1258_v59 = vld [vmem:[%s4616_s30 + $0x7f0] sm:$0xff]  ;;  %v872_v0 = vld [vmem:[%s4610_s18 + $0x3e0] sm:$0xff] }
 0x192   : > { %1420 = vmatprep.mubr.f32.mxu0 %v813_v7  ;;  %v3952_v63 = vpack.c.bf16 %v1258_v59, %v1254_v58  ;;  %v988_v58 = vld [vmem:[%s4610_s18 + $0x780] sm:$0xff]  ;;  %v993_v59 = vld [vmem:[%s4610_s18 + $0x7a8] sm:$0xff] }
 0x193   : > { %2313 = vmatmul.mubr.f32.gmra.mrb[30].mxu1 %v808_v6  ;;  %v840_v6 = vld [vmem:[%s4610_s18 + $0x2e0] sm:$0xff] }
 0x194   : > { %2318 = vmatprep.mubr.f32.mxu1 %v813_v7  ;;  %v845_v7 = vld [vmem:[%s4610_s18 + $0x308] sm:$0xff] }
 0x195   : > { %1421 = vmatmul.mubr.f32.gmra.mrb[32].mxu0 %v812_v14 }
 0x196   : > { %1426 = vmatprep.mubr.f32.mxu0 %v817_v17  ;;  %3797 = vmatpush1.bf16.xpose.msra.mxu0 %v3796_v18  ;;  %v3812_v18 = vpack.c.bf16 %v1106_v9, %v1102_v8  ;;  %v888_v8 = vld [vmem:[%s4610_s18 + $0x460] sm:$0xff]  ;;  %v893_v9 = vld [vmem:[%s4610_s18 + $0x488] sm:$0xff] }
 0x197   : > { %2319 = vmatmul.mubr.f32.gmra.mrb[32].mxu1 %v812_v14  ;;  %3799 = vmatprep.subr.bf16.mxu0 %v3798_v20  ;;  %v844_v14 = vld [vmem:[%s4610_s18 + $0x300] sm:$0xff]  ;;  %v3814_v20 = vpack.c.bf16 %v1115_v13, %v1111_v12  ;;  %v901_v13 = vld [vmem:[%s4610_s18 + $0x4c8] sm:$0xff] }
 0x198   : > { %2324 = vmatprep.mubr.f32.mxu1 %v817_v17  ;;  %3925 = vmatpush1.bf16.xpose.msra.mxu1 %v3924_v19  ;;  %v849_v17 = vld [vmem:[%s4610_s18 + $0x328] sm:$0xff]  ;;  %v3940_v19 = vpack.c.bf16 %v1234_v11, %v1230_v10  ;;  %v892_v10 = vld [vmem:[%s4610_s18 + $0x480] sm:$0xff] }
 0x199   : > { %1427 = vmatmul.mubr.f32.gmra.mrb[34].mxu0 %v816_v22  ;;  %3927 = vmatprep.subr.bf16.mxu1 %v3926_v21  ;;  %v3942_v21 = vpack.c.bf16 %v1243_v16, %v1239_v15  ;;  %v897_v11 = vld [vmem:[%s4610_s18 + $0x4a8] sm:$0xff]  ;;  %v896_v12 = vld [vmem:[%s4610_s18 + $0x4a0] sm:$0xff] }
 0x19a   : > { %1432 = vmatprep.mubr.f32.mxu0 %v821_v23  ;;  %v905_v15 = vld [vmem:[%s4610_s18 + $0x4e8] sm:$0xff]  ;;  %v904_v16 = vld [vmem:[%s4610_s18 + $0x4e0] sm:$0xff] }
 0x19b   : > { %2325 = vmatmul.mubr.f32.gmra.mrb[34].mxu1 %v816_v22  ;;  %v848_v22 = vld [vmem:[%s4610_s18 + $0x320] sm:$0xff] }
 0x19c   : > { %2330 = vmatprep.mubr.f32.mxu1 %v821_v23  ;;  %v853_v23 = vld [vmem:[%s4610_s18 + $0x348] sm:$0xff] }
 0x19d   : > { %1433 = vmatmul.mubr.f32.gmra.mrb[36].mxu0 %v820_v30 }
 0x19e   : > { %1438 = vmatprep.mubr.f32.mxu0 %v825_v33  ;;  %3801 = vmatpush1.bf16.xpose.msra.mxu0 %v3800_v34  ;;  %v3816_v34 = vpack.c.bf16 %v1114_v25, %v1110_v24  ;;  %v920_v24 = vld [vmem:[%s4610_s18 + $0x560] sm:$0xff]  ;;  %v925_v25 = vld [vmem:[%s4610_s18 + $0x588] sm:$0xff] }
 0x19f   : > { %2331 = vmatmul.mubr.f32.gmra.mrb[36].mxu1 %v820_v30  ;;  %3803 = vmatprep.subr.bf16.mxu0 %v3802_v36  ;;  %v852_v30 = vld [vmem:[%s4610_s18 + $0x340] sm:$0xff]  ;;  %v3818_v36 = vpack.c.bf16 %v1123_v29, %v1119_v28  ;;  %v933_v29 = vld [vmem:[%s4610_s18 + $0x5c8] sm:$0xff] }
 0x1a0   : > { %2336 = vmatprep.mubr.f32.mxu1 %v825_v33  ;;  %3929 = vmatpush1.bf16.xpose.msra.mxu1 %v3928_v35  ;;  %v857_v33 = vld [vmem:[%s4610_s18 + $0x368] sm:$0xff]  ;;  %v3944_v35 = vpack.c.bf16 %v1242_v27, %v1238_v26  ;;  %v924_v26 = vld [vmem:[%s4610_s18 + $0x580] sm:$0xff] }
 0x1a1   : > { %1439 = vmatmul.mubr.f32.gmra.mrb[38].mxu0 %v824_v38  ;;  %3931 = vmatprep.subr.bf16.mxu1 %v3930_v37  ;;  %v3946_v37 = vpack.c.bf16 %v1251_v32, %v1247_v31  ;;  %v929_v27 = vld [vmem:[%s4610_s18 + $0x5a8] sm:$0xff]  ;;  %v928_v28 = vld [vmem:[%s4610_s18 + $0x5a0] sm:$0xff] }
 0x1a2   : > { %1444 = vmatprep.mubr.f32.mxu0 %v829_v39  ;;  %v937_v31 = vld [vmem:[%s4610_s18 + $0x5e8] sm:$0xff]  ;;  %v936_v32 = vld [vmem:[%s4610_s18 + $0x5e0] sm:$0xff] }
 0x1a3   : > { %2337 = vmatmul.mubr.f32.gmra.mrb[38].mxu1 %v824_v38  ;;  %v856_v38 = vld [vmem:[%s4610_s18 + $0x360] sm:$0xff] }
 0x1a4   : > { %2342 = vmatprep.mubr.f32.mxu1 %v829_v39  ;;  %v861_v39 = vld [vmem:[%s4610_s18 + $0x388] sm:$0xff] }
 0x1a5   : > { %1445 = vmatmul.mubr.f32.gmra.mrb[40].mxu0 %v828_v46 }
 0x1a6   : > { %1450 = vmatprep.mubr.f32.mxu0 %v833_v49  ;;  %3805 = vmatpush1.bf16.xpose.msra.mxu0 %v3804_v50  ;;  %v864_v50 = vld [vmem:[%s4610_s18 + $0x3a0] sm:$0xff] }
 0x1a7   : > { %2343 = vmatmul.mubr.f32.gmra.mrb[40].mxu1 %v828_v46  ;;  %3807 = vmatprep.subr.bf16.mxu0 %v3806_v52  ;;  %v3820_v46 = vpack.c.bf16 %v1122_v41, %v1118_v40  ;;  %v1255_v52 = vld [vmem:[%s4616_s30 + $0x7d8] sm:$0xff]  ;;  %v952_v40 = vld [vmem:[%s4610_s18 + $0x660] sm:$0xff]  ;;  %v957_v41 = vld [vmem:[%s4610_s18 + $0x688] sm:$0xff] }
 0x1a8   : > { %2348 = vmatprep.mubr.f32.mxu1 %v833_v49  ;;  %3933 = vmatpush1.bf16.xpose.msra.mxu1 %v3932_v51  ;;  %v1131_v49 = vld [vmem:[%s4616_s30 + $0x3f8] sm:$0xff] }
 0x1a9   : > { %1451 = vmatmul.mubr.f32.gmra.mrb[42].mxu0 %v832_v54  ;;  %3935 = vmatprep.subr.bf16.mxu1 %v3934_v53  ;;  %v3822_v51 = vpack.c.bf16 %v1131_v49, %v1127_v48  ;;  %v1259_v53 = vld [vmem:[%s4616_s30 + $0x7f8] sm:$0xff]  ;;  %v968_v48 = vld [vmem:[%s4610_s18 + $0x6e0] sm:$0xff]  ;;  %v973_v49 = vld [vmem:[%s4610_s18 + $0x708] sm:$0xff] }
 0x1aa   : > { %1456 = vmatprep.mubr.f32.mxu0 %v837_v55 }
 0x1ab   : > { %2349 = vmatmul.mubr.f32.gmra.mrb[42].mxu1 %v832_v54  ;;  %v869_v54 = vld [vmem:[%s4610_s18 + $0x3c8] sm:$0xff] }
 0x1ac   : > { %2354 = vmatprep.mubr.f32.mxu1 %v837_v55  ;;  %v3950_v55 = vpack.c.bf16 %v1259_v53, %v1255_v52  ;;  %v976_v52 = vld [vmem:[%s4610_s18 + $0x720] sm:$0xff]  ;;  %v981_v53 = vld [vmem:[%s4610_s18 + $0x748] sm:$0xff] }
 0x1ad   : > { %1457 = vmatmul.mubr.f32.gmra.mrb[44].mxu0 %v836_v62 }
 0x1ae   : > { %1462 = vmatprep.mubr.f32.mxu0 %v841_v1  ;;  %3809 = vmatpush1.bf16.xpose.msra.mxu0 %v3808_v2  ;;  %v876_v2 = vld [vmem:[%s4610_s18 + $0x400] sm:$0xff] }
 0x1af   : > { %2355 = vmatmul.mubr.f32.gmra.mrb[44].mxu1 %v836_v62  ;;  %3811 = vmatprep.subr.bf16.mxu0 %v3810_v4  ;;  %v3824_v62 = vpack.c.bf16 %v1130_v57, %v1126_v56  ;;  %v880_v4 = vld [vmem:[%s4610_s18 + $0x420] sm:$0xff]  ;;  %v989_v57 = vld [vmem:[%s4610_s18 + $0x788] sm:$0xff] }
 0x1b0   : > { %2360 = vmatprep.mubr.f32.mxu1 %v841_v1  ;;  %3937 = vmatpush1.bf16.xpose.msra.mxu1 %v3936_v3  ;;  %v877_v1 = vld [vmem:[%s4610_s18 + $0x408] sm:$0xff]  ;;  %v984_v56 = vld [vmem:[%s4610_s18 + $0x760] sm:$0xff] }
 0x1b1   : > { %1463 = vmatmul.mubr.f32.gmra.mrb[46].mxu0 %v840_v6  ;;  %3939 = vmatprep.subr.bf16.mxu1 %v3938_v5  ;;  %v881_v3 = vld [vmem:[%s4610_s18 + $0x428] sm:$0xff] }
 0x1b2   : > { %1468 = vmatprep.mubr.f32.mxu0 %v845_v7  ;;  %v885_v5 = vld [vmem:[%s4610_s18 + $0x448] sm:$0xff] }
 0x1b3   : > { %2361 = vmatmul.mubr.f32.gmra.mrb[46].mxu1 %v840_v6  ;;  %v884_v6 = vld [vmem:[%s4610_s18 + $0x440] sm:$0xff] }
 0x1b4   : > { %2366 = vmatprep.mubr.f32.mxu1 %v845_v7  ;;  %v889_v7 = vld [vmem:[%s4610_s18 + $0x468] sm:$0xff] }
 0x1b5   : > { %1469 = vmatmul.mubr.f32.gmra.mrb[48].mxu0 %v844_v14 }
 0x1b6   : > { %1474 = vmatprep.mubr.f32.mxu0 %v849_v17  ;;  %3813 = vmatpush1.bf16.xpose.msra.mxu0 %v3812_v18  ;;  %v908_v18 = vld [vmem:[%s4610_s18 + $0x500] sm:$0xff] }
 0x1b7   : > { %2367 = vmatmul.mubr.f32.gmra.mrb[48].mxu1 %v844_v14  ;;  %3815 = vmatprep.subr.bf16.mxu0 %v3814_v20  ;;  %v900_v14 = vld [vmem:[%s4610_s18 + $0x4c0] sm:$0xff] }
 0x1b8   : > { %2372 = vmatprep.mubr.f32.mxu1 %v849_v17  ;;  %3941 = vmatpush1.bf16.xpose.msra.mxu1 %v3940_v19  ;;  %v909_v17 = vld [vmem:[%s4610_s18 + $0x508] sm:$0xff]  ;;  %v912_v20 = vld [vmem:[%s4610_s18 + $0x520] sm:$0xff] }
 0x1b9   : > { %1475 = vmatmul.mubr.f32.gmra.mrb[50].mxu0 %v848_v22  ;;  %3943 = vmatprep.subr.bf16.mxu1 %v3942_v21  ;;  %v913_v19 = vld [vmem:[%s4610_s18 + $0x528] sm:$0xff] }
 0x1ba   : > { %1480 = vmatprep.mubr.f32.mxu0 %v853_v23  ;;  %v917_v21 = vld [vmem:[%s4610_s18 + $0x548] sm:$0xff] }
 0x1bb   : > { %2373 = vmatmul.mubr.f32.gmra.mrb[50].mxu1 %v848_v22  ;;  %v916_v22 = vld [vmem:[%s4610_s18 + $0x540] sm:$0xff] }
 0x1bc   : > { %2378 = vmatprep.mubr.f32.mxu1 %v853_v23  ;;  %v921_v23 = vld [vmem:[%s4610_s18 + $0x568] sm:$0xff] }
 0x1bd   : > { %1481 = vmatmul.mubr.f32.gmra.mrb[52].mxu0 %v852_v30 }
 0x1be   : > { %1486 = vmatprep.mubr.f32.mxu0 %v857_v33  ;;  %3817 = vmatpush1.bf16.xpose.msra.mxu0 %v3816_v34  ;;  %v940_v34 = vld [vmem:[%s4610_s18 + $0x600] sm:$0xff] }
 0x1bf   : > { %2379 = vmatmul.mubr.f32.gmra.mrb[52].mxu1 %v852_v30  ;;  %3819 = vmatprep.subr.bf16.mxu0 %v3818_v36  ;;  %v932_v30 = vld [vmem:[%s4610_s18 + $0x5c0] sm:$0xff] }
 0x1c0   : > { %2384 = vmatprep.mubr.f32.mxu1 %v857_v33  ;;  %3945 = vmatpush1.bf16.xpose.msra.mxu1 %v3944_v35  ;;  %v941_v33 = vld [vmem:[%s4610_s18 + $0x608] sm:$0xff]  ;;  %v944_v36 = vld [vmem:[%s4610_s18 + $0x620] sm:$0xff] }
 0x1c1   : > { %1487 = vmatmul.mubr.f32.gmra.mrb[54].mxu0 %v856_v38  ;;  %3947 = vmatprep.subr.bf16.mxu1 %v3946_v37  ;;  %v945_v35 = vld [vmem:[%s4610_s18 + $0x628] sm:$0xff] }
 0x1c2   : > { %1492 = vmatprep.mubr.f32.mxu0 %v861_v39  ;;  %v949_v37 = vld [vmem:[%s4610_s18 + $0x648] sm:$0xff] }
 0x1c3   : > { %2385 = vmatmul.mubr.f32.gmra.mrb[54].mxu1 %v856_v38  ;;  %v948_v38 = vld [vmem:[%s4610_s18 + $0x640] sm:$0xff] }
 0x1c4   : > { %2390 = vmatprep.mubr.f32.mxu1 %v861_v39  ;;  %v953_v39 = vld [vmem:[%s4610_s18 + $0x668] sm:$0xff] }
 0x1c5   : > { %1493 = vmatmul.mubr.f32.gmra.mrb[56].mxu0 %v860_v44 }
 0x1c6   : > { %1498 = vmatprep.mubr.f32.mxu0 %v865_v45  ;;  %3821 = vmatpush1.bf16.xpose.msra.mxu0 %v3820_v46  ;;  %v964_v46 = vld [vmem:[%s4610_s18 + $0x6c0] sm:$0xff] }
 0x1c7   : > { %2391 = vmatmul.mubr.f32.gmra.mrb[56].mxu1 %v860_v44  ;;  %3823 = vmatprep.subr.bf16.mxu0 %v3822_v51  ;;  %v960_v44 = vld [vmem:[%s4610_s18 + $0x6a0] sm:$0xff]  ;;  %v977_v51 = vld [vmem:[%s4610_s18 + $0x728] sm:$0xff] }
 0x1c8   : > { %2396 = vmatprep.mubr.f32.mxu1 %v865_v45  ;;  %3949 = vmatpush1.bf16.xpose.msra.mxu1 %v3948_v47  ;;  %v965_v45 = vld [vmem:[%s4610_s18 + $0x6c8] sm:$0xff] }
 0x1c9   : > { %1499 = vmatmul.mubr.f32.gmra.mrb[58].mxu0 %v864_v50  ;;  %3951 = vmatprep.subr.bf16.mxu1 %v3950_v55  ;;  %v969_v47 = vld [vmem:[%s4610_s18 + $0x6e8] sm:$0xff] }
 0x1ca   : > { %1504 = vmatprep.mubr.f32.mxu0 %v869_v54  ;;  %v985_v55 = vld [vmem:[%s4610_s18 + $0x768] sm:$0xff] }
 0x1cb   : > { %2397 = vmatmul.mubr.f32.gmra.mrb[58].mxu1 %v864_v50  ;;  %v972_v50 = vld [vmem:[%s4610_s18 + $0x700] sm:$0xff] }
 0x1cc   : > { %2402 = vmatprep.mubr.f32.mxu1 %v869_v54  ;;  %v980_v54 = vld [vmem:[%s4610_s18 + $0x740] sm:$0xff] }
 0x1cd   : > { %1505 = vmatmul.mubr.f32.gmra.mrb[60].mxu0 %v868_v60 }
 0x1ce   : > { %1510 = vmatprep.mubr.f32.mxu0 %v873_v61  ;;  %3825 = vmatpush1.bf16.xpose.msra.mxu0 %v3824_v62  ;;  %v996_v62 = vld [vmem:[%s4610_s18 + $0x7c0] sm:$0xff] }
 0x1cf   : > { %2403 = vmatmul.mubr.f32.gmra.mrb[60].mxu1 %v868_v60  ;;  %v992_v60 = vld [vmem:[%s4610_s18 + $0x7a0] sm:$0xff] }
 0x1d0   : > { %2408 = vmatprep.mubr.f32.mxu1 %v873_v61  ;;  %3953 = vmatpush1.bf16.xpose.msra.mxu1 %v3952_v63  ;;  %v997_v61 = vld [vmem:[%s4610_s18 + $0x7c8] sm:$0xff] }
 0x1d1   : > { %1511 = vmatmul.mubr.f32.gmra.mrb[62].mxu0 %v872_v0  ;;  %v1001_v63 = vld [vmem:[%s4610_s18 + $0x7e8] sm:$0xff] }
 0x1d2   : > { %1516 = vmatprep.mubr.f32.mxu0 %v877_v1 }
 0x1d3   : > { %2409 = vmatmul.mubr.f32.gmra.mrb[62].mxu1 %v872_v0  ;;  %v1000_v0 = vld [vmem:[%s4610_s18 + $0x7e0] sm:$0xff] }
 0x1d4   : > { %2414 = vmatprep.mubr.f32.mxu1 %v877_v1  ;;  %v751_v1 = vld [vmem:[%s4610_s18 + $0x18] sm:$0xff] }
 0x1d5   : > { %1517 = vmatmul.mubr.f32.gmra.mrb[64].mxu0 %v876_v2 }
 0x1d6   : > { %1522 = vmatprep.mubr.f32.mxu0 %v881_v3 }
 0x1d7   : > { %2415 = vmatmul.mubr.f32.gmra.mrb[64].mxu1 %v876_v2  ;;  %v750_v2 = vld [vmem:[%s4610_s18 + $0x10] sm:$0xff] }
 0x1d8   : > { %2420 = vmatprep.mubr.f32.mxu1 %v881_v3  ;;  %v755_v3 = vld [vmem:[%s4610_s18 + $0x38] sm:$0xff] }
 0x1d9   : > { %1523 = vmatmul.mubr.f32.gmra.mrb[66].mxu0 %v880_v4 }
 0x1da   : > { %1528 = vmatprep.mubr.f32.mxu0 %v885_v5 }
 0x1db   : > { %2421 = vmatmul.mubr.f32.gmra.mrb[66].mxu1 %v880_v4  ;;  %v754_v4 = vld [vmem:[%s4610_s18 + $0x30] sm:$0xff] }
 0x1dc   : > { %2426 = vmatprep.mubr.f32.mxu1 %v885_v5  ;;  %v759_v5 = vld [vmem:[%s4610_s18 + $0x58] sm:$0xff] }
 0x1dd   : > { %1529 = vmatmul.mubr.f32.gmra.mrb[68].mxu0 %v884_v6 }
 0x1de   : > { %1534 = vmatprep.mubr.f32.mxu0 %v889_v7 }
 0x1df   : > { %2427 = vmatmul.mubr.f32.gmra.mrb[68].mxu1 %v884_v6  ;;  %v758_v6 = vld [vmem:[%s4610_s18 + $0x50] sm:$0xff] }
 0x1e0   : > { %2432 = vmatprep.mubr.f32.mxu1 %v889_v7  ;;  %v763_v7 = vld [vmem:[%s4610_s18 + $0x78] sm:$0xff] }
 0x1e1   : > { %1535 = vmatmul.mubr.f32.gmra.mrb[70].mxu0 %v888_v8 }
 0x1e2   : > { %1540 = vmatprep.mubr.f32.mxu0 %v893_v9 }
 0x1e3   : > { %2433 = vmatmul.mubr.f32.gmra.mrb[70].mxu1 %v888_v8  ;;  %v762_v8 = vld [vmem:[%s4610_s18 + $0x70] sm:$0xff] }
 0x1e4   : > { %2438 = vmatprep.mubr.f32.mxu1 %v893_v9  ;;  %v767_v9 = vld [vmem:[%s4610_s18 + $0x98] sm:$0xff] }
 0x1e5   : > { %1541 = vmatmul.mubr.f32.gmra.mrb[72].mxu0 %v892_v10 }
 0x1e6   : > { %1546 = vmatprep.mubr.f32.mxu0 %v897_v11 }
 0x1e7   : > { %2439 = vmatmul.mubr.f32.gmra.mrb[72].mxu1 %v892_v10  ;;  %v766_v10 = vld [vmem:[%s4610_s18 + $0x90] sm:$0xff] }
 0x1e8   : > { %2444 = vmatprep.mubr.f32.mxu1 %v897_v11  ;;  %v771_v11 = vld [vmem:[%s4610_s18 + $0xb8] sm:$0xff] }
 0x1e9   : > { %1547 = vmatmul.mubr.f32.gmra.mrb[74].mxu0 %v896_v12 }
 0x1ea   : > { %1552 = vmatprep.mubr.f32.mxu0 %v901_v13 }
 0x1eb   : > { %2445 = vmatmul.mubr.f32.gmra.mrb[74].mxu1 %v896_v12  ;;  %v770_v12 = vld [vmem:[%s4610_s18 + $0xb0] sm:$0xff] }
 0x1ec   : > { %2450 = vmatprep.mubr.f32.mxu1 %v901_v13  ;;  %v775_v13 = vld [vmem:[%s4610_s18 + $0xd8] sm:$0xff] }
 0x1ed   : > { %1553 = vmatmul.mubr.f32.gmra.mrb[76].mxu0 %v900_v14 }
 0x1ee   : > { %1558 = vmatprep.mubr.f32.mxu0 %v905_v15 }
 0x1ef   : > { %2451 = vmatmul.mubr.f32.gmra.mrb[76].mxu1 %v900_v14  ;;  %v774_v14 = vld [vmem:[%s4610_s18 + $0xd0] sm:$0xff] }
 0x1f0   : > { %2456 = vmatprep.mubr.f32.mxu1 %v905_v15  ;;  %v779_v15 = vld [vmem:[%s4610_s18 + $0xf8] sm:$0xff] }
 0x1f1   : > { %1559 = vmatmul.mubr.f32.gmra.mrb[78].mxu0 %v904_v16 }
 0x1f2   : > { %1564 = vmatprep.mubr.f32.mxu0 %v909_v17 }
 0x1f3   : > { %2457 = vmatmul.mubr.f32.gmra.mrb[78].mxu1 %v904_v16  ;;  %v778_v16 = vld [vmem:[%s4610_s18 + $0xf0] sm:$0xff] }
 0x1f4   : > { %2462 = vmatprep.mubr.f32.mxu1 %v909_v17  ;;  %v783_v17 = vld [vmem:[%s4610_s18 + $0x118] sm:$0xff] }
 0x1f5   : > { %1565 = vmatmul.mubr.f32.gmra.mrb[80].mxu0 %v908_v18 }
 0x1f6   : > { %1570 = vmatprep.mubr.f32.mxu0 %v913_v19 }
 0x1f7   : > { %2463 = vmatmul.mubr.f32.gmra.mrb[80].mxu1 %v908_v18  ;;  %v782_v18 = vld [vmem:[%s4610_s18 + $0x110] sm:$0xff] }
 0x1f8   : > { %2468 = vmatprep.mubr.f32.mxu1 %v913_v19  ;;  %v787_v19 = vld [vmem:[%s4610_s18 + $0x138] sm:$0xff] }
 0x1f9   : > { %1571 = vmatmul.mubr.f32.gmra.mrb[82].mxu0 %v912_v20 }
 0x1fa   : > { %1576 = vmatprep.mubr.f32.mxu0 %v917_v21 }
 0x1fb   : > { %2469 = vmatmul.mubr.f32.gmra.mrb[82].mxu1 %v912_v20  ;;  %v786_v20 = vld [vmem:[%s4610_s18 + $0x130] sm:$0xff] }
 0x1fc   : > { %2474 = vmatprep.mubr.f32.mxu1 %v917_v21  ;;  %v791_v21 = vld [vmem:[%s4610_s18 + $0x158] sm:$0xff] }
 0x1fd   : > { %1577 = vmatmul.mubr.f32.gmra.mrb[84].mxu0 %v916_v22 }
 0x1fe   : > { %1582 = vmatprep.mubr.f32.mxu0 %v921_v23 }
 0x1ff   : > { %2475 = vmatmul.mubr.f32.gmra.mrb[84].mxu1 %v916_v22  ;;  %v790_v22 = vld [vmem:[%s4610_s18 + $0x150] sm:$0xff] }
 0x200   : > { %2480 = vmatprep.mubr.f32.mxu1 %v921_v23  ;;  %v795_v23 = vld [vmem:[%s4610_s18 + $0x178] sm:$0xff] }
 0x201   : > { %1583 = vmatmul.mubr.f32.gmra.mrb[86].mxu0 %v920_v24 }
 0x202   : > { %1588 = vmatprep.mubr.f32.mxu0 %v925_v25 }
 0x203   : > { %2481 = vmatmul.mubr.f32.gmra.mrb[86].mxu1 %v920_v24  ;;  %v794_v24 = vld [vmem:[%s4610_s18 + $0x170] sm:$0xff] }
 0x204   : > { %2486 = vmatprep.mubr.f32.mxu1 %v925_v25  ;;  %v799_v25 = vld [vmem:[%s4610_s18 + $0x198] sm:$0xff] }
 0x205   : > { %1589 = vmatmul.mubr.f32.gmra.mrb[88].mxu0 %v924_v26 }
 0x206   : > { %1594 = vmatprep.mubr.f32.mxu0 %v929_v27 }
 0x207   : > { %2487 = vmatmul.mubr.f32.gmra.mrb[88].mxu1 %v924_v26  ;;  %v798_v26 = vld [vmem:[%s4610_s18 + $0x190] sm:$0xff] }
 0x208   : > { %2492 = vmatprep.mubr.f32.mxu1 %v929_v27  ;;  %v803_v27 = vld [vmem:[%s4610_s18 + $0x1b8] sm:$0xff] }
 0x209   : > { %1595 = vmatmul.mubr.f32.gmra.mrb[90].mxu0 %v928_v28 }
 0x20a   : > { %1600 = vmatprep.mubr.f32.mxu0 %v933_v29 }
 0x20b   : > { %2493 = vmatmul.mubr.f32.gmra.mrb[90].mxu1 %v928_v28  ;;  %v802_v28 = vld [vmem:[%s4610_s18 + $0x1b0] sm:$0xff] }
 0x20c   : > { %2498 = vmatprep.mubr.f32.mxu1 %v933_v29  ;;  %v807_v29 = vld [vmem:[%s4610_s18 + $0x1d8] sm:$0xff] }
 0x20d   : > { %1601 = vmatmul.mubr.f32.gmra.mrb[92].mxu0 %v932_v30 }
 0x20e   : > { %1606 = vmatprep.mubr.f32.mxu0 %v937_v31 }
 0x20f   : > { %2499 = vmatmul.mubr.f32.gmra.mrb[92].mxu1 %v932_v30  ;;  %v806_v30 = vld [vmem:[%s4610_s18 + $0x1d0] sm:$0xff] }
 0x210   : > { %2504 = vmatprep.mubr.f32.mxu1 %v937_v31  ;;  %v811_v31 = vld [vmem:[%s4610_s18 + $0x1f8] sm:$0xff] }
 0x211   : > { %1607 = vmatmul.mubr.f32.gmra.mrb[94].mxu0 %v936_v32 }
 0x212   : > { %1612 = vmatprep.mubr.f32.mxu0 %v941_v33 }
 0x213   : > { %2505 = vmatmul.mubr.f32.gmra.mrb[94].mxu1 %v936_v32  ;;  %v810_v32 = vld [vmem:[%s4610_s18 + $0x1f0] sm:$0xff] }
 0x214   : > { %2510 = vmatprep.mubr.f32.mxu1 %v941_v33  ;;  %v815_v33 = vld [vmem:[%s4610_s18 + $0x218] sm:$0xff] }
 0x215   : > { %1613 = vmatmul.mubr.f32.gmra.mrb[96].mxu0 %v940_v34 }
 0x216   : > { %1618 = vmatprep.mubr.f32.mxu0 %v945_v35 }
 0x217   : > { %2511 = vmatmul.mubr.f32.gmra.mrb[96].mxu1 %v940_v34  ;;  %v814_v34 = vld [vmem:[%s4610_s18 + $0x210] sm:$0xff] }
 0x218   : > { %2516 = vmatprep.mubr.f32.mxu1 %v945_v35  ;;  %v819_v35 = vld [vmem:[%s4610_s18 + $0x238] sm:$0xff] }
 0x219   : > { %1619 = vmatmul.mubr.f32.gmra.mrb[98].mxu0 %v944_v36 }
 0x21a   : > { %1624 = vmatprep.mubr.f32.mxu0 %v949_v37 }
 0x21b   : > { %2517 = vmatmul.mubr.f32.gmra.mrb[98].mxu1 %v944_v36  ;;  %v818_v36 = vld [vmem:[%s4610_s18 + $0x230] sm:$0xff] }
 0x21c   : > { %2522 = vmatprep.mubr.f32.mxu1 %v949_v37  ;;  %v823_v37 = vld [vmem:[%s4610_s18 + $0x258] sm:$0xff] }
 0x21d   : > { %1625 = vmatmul.mubr.f32.gmra.mrb[100].mxu0 %v948_v38 }
 0x21e   : > { %1630 = vmatprep.mubr.f32.mxu0 %v953_v39 }
 0x21f   : > { %2523 = vmatmul.mubr.f32.gmra.mrb[100].mxu1 %v948_v38  ;;  %v822_v38 = vld [vmem:[%s4610_s18 + $0x250] sm:$0xff] }
 0x220   : > { %2528 = vmatprep.mubr.f32.mxu1 %v953_v39  ;;  %v827_v39 = vld [vmem:[%s4610_s18 + $0x278] sm:$0xff] }
 0x221   : > { %1631 = vmatmul.mubr.f32.gmra.mrb[102].mxu0 %v952_v40 }
 0x222   : > { %1636 = vmatprep.mubr.f32.mxu0 %v957_v41 }
 0x223   : > { %2529 = vmatmul.mubr.f32.gmra.mrb[102].mxu1 %v952_v40  ;;  %v826_v40 = vld [vmem:[%s4610_s18 + $0x270] sm:$0xff] }
 0x224   : > { %2534 = vmatprep.mubr.f32.mxu1 %v957_v41  ;;  %v831_v41 = vld [vmem:[%s4610_s18 + $0x298] sm:$0xff] }
 0x225   : > { %1637 = vmatmul.mubr.f32.gmra.mrb[104].mxu0 %v956_v42 }
 0x226   : > { %1642 = vmatprep.mubr.f32.mxu0 %v961_v43 }
 0x227   : > { %2535 = vmatmul.mubr.f32.gmra.mrb[104].mxu1 %v956_v42  ;;  %v830_v42 = vld [vmem:[%s4610_s18 + $0x290] sm:$0xff] }
 0x228   : > { %2540 = vmatprep.mubr.f32.mxu1 %v961_v43  ;;  %v835_v43 = vld [vmem:[%s4610_s18 + $0x2b8] sm:$0xff] }
 0x229   : > { %1643 = vmatmul.mubr.f32.gmra.mrb[106].mxu0 %v960_v44 }
 0x22a   : > { %1648 = vmatprep.mubr.f32.mxu0 %v965_v45 }
 0x22b   : > { %2541 = vmatmul.mubr.f32.gmra.mrb[106].mxu1 %v960_v44  ;;  %v834_v44 = vld [vmem:[%s4610_s18 + $0x2b0] sm:$0xff] }
 0x22c   : > { %2546 = vmatprep.mubr.f32.mxu1 %v965_v45  ;;  %v839_v45 = vld [vmem:[%s4610_s18 + $0x2d8] sm:$0xff] }
 0x22d   : > { %1649 = vmatmul.mubr.f32.gmra.mrb[108].mxu0 %v964_v46 }
 0x22e   : > { %1654 = vmatprep.mubr.f32.mxu0 %v969_v47 }
 0x22f   : > { %2547 = vmatmul.mubr.f32.gmra.mrb[108].mxu1 %v964_v46  ;;  %v838_v46 = vld [vmem:[%s4610_s18 + $0x2d0] sm:$0xff] }
 0x230   : > { %2552 = vmatprep.mubr.f32.mxu1 %v969_v47  ;;  %v843_v47 = vld [vmem:[%s4610_s18 + $0x2f8] sm:$0xff] }
 0x231   : > { %1655 = vmatmul.mubr.f32.gmra.mrb[110].mxu0 %v968_v48 }
 0x232   : > { %1660 = vmatprep.mubr.f32.mxu0 %v973_v49 }
 0x233   : > { %2553 = vmatmul.mubr.f32.gmra.mrb[110].mxu1 %v968_v48  ;;  %v842_v48 = vld [vmem:[%s4610_s18 + $0x2f0] sm:$0xff] }
 0x234   : > { %2558 = vmatprep.mubr.f32.mxu1 %v973_v49  ;;  %v847_v49 = vld [vmem:[%s4610_s18 + $0x318] sm:$0xff] }
 0x235   : > { %1661 = vmatmul.mubr.f32.gmra.mrb[112].mxu0 %v972_v50 }
 0x236   : > { %1666 = vmatprep.mubr.f32.mxu0 %v977_v51 }
 0x237   : > { %2559 = vmatmul.mubr.f32.gmra.mrb[112].mxu1 %v972_v50  ;;  %v846_v50 = vld [vmem:[%s4610_s18 + $0x310] sm:$0xff] }
 0x238   : > { %2564 = vmatprep.mubr.f32.mxu1 %v977_v51  ;;  %v851_v51 = vld [vmem:[%s4610_s18 + $0x338] sm:$0xff] }
 0x239   : > { %1667 = vmatmul.mubr.f32.gmra.mrb[114].mxu0 %v976_v52 }
 0x23a   : > { %1672 = vmatprep.mubr.f32.mxu0 %v981_v53 }
 0x23b   : > { %2565 = vmatmul.mubr.f32.gmra.mrb[114].mxu1 %v976_v52  ;;  %v850_v52 = vld [vmem:[%s4610_s18 + $0x330] sm:$0xff] }
 0x23c   : > { %2570 = vmatprep.mubr.f32.mxu1 %v981_v53  ;;  %v855_v53 = vld [vmem:[%s4610_s18 + $0x358] sm:$0xff] }
 0x23d   : > { %1673 = vmatmul.mubr.f32.gmra.mrb[116].mxu0 %v980_v54 }
 0x23e   : > { %1678 = vmatprep.mubr.f32.mxu0 %v985_v55 }
 0x23f   : > { %2571 = vmatmul.mubr.f32.gmra.mrb[116].mxu1 %v980_v54  ;;  %v854_v54 = vld [vmem:[%s4610_s18 + $0x350] sm:$0xff] }
 0x240   : > { %2576 = vmatprep.mubr.f32.mxu1 %v985_v55  ;;  %v859_v55 = vld [vmem:[%s4610_s18 + $0x378] sm:$0xff] }
 0x241   : > { %1679 = vmatmul.mubr.f32.gmra.mrb[118].mxu0 %v984_v56 }
 0x242   : > { %1684 = vmatprep.mubr.f32.mxu0 %v989_v57 }
 0x243   : > { %2577 = vmatmul.mubr.f32.gmra.mrb[118].mxu1 %v984_v56  ;;  %v858_v56 = vld [vmem:[%s4610_s18 + $0x370] sm:$0xff] }
 0x244   : > { %2582 = vmatprep.mubr.f32.mxu1 %v989_v57  ;;  %v863_v57 = vld [vmem:[%s4610_s18 + $0x398] sm:$0xff] }
 0x245   : > { %1685 = vmatmul.mubr.f32.gmra.mrb[120].mxu0 %v988_v58 }
 0x246   : > { %1690 = vmatprep.mubr.f32.mxu0 %v993_v59 }
 0x247   : > { %2583 = vmatmul.mubr.f32.gmra.mrb[120].mxu1 %v988_v58  ;;  %v862_v58 = vld [vmem:[%s4610_s18 + $0x390] sm:$0xff] }
 0x248   : > { %2588 = vmatprep.mubr.f32.mxu1 %v993_v59  ;;  %v867_v59 = vld [vmem:[%s4610_s18 + $0x3b8] sm:$0xff] }
 0x249   : > { %1691 = vmatmul.mubr.f32.gmra.mrb[122].mxu0 %v992_v60 }
 0x24a   : > { %1696 = vmatprep.mubr.f32.mxu0 %v997_v61 }
 0x24b   : > { %2589 = vmatmul.mubr.f32.gmra.mrb[122].mxu1 %v992_v60  ;;  %v866_v60 = vld [vmem:[%s4610_s18 + $0x3b0] sm:$0xff] }
 0x24c   : > { %2594 = vmatprep.mubr.f32.mxu1 %v997_v61  ;;  %v871_v61 = vld [vmem:[%s4610_s18 + $0x3d8] sm:$0xff] }
 0x24d   : > { %1697 = vmatmul.mubr.f32.gmra.mrb[124].mxu0 %v996_v62 }
 0x24e   : > { %1702 = vmatprep.mubr.f32.mxu0 %v1001_v63 }
 0x24f   : > { %2595 = vmatmul.mubr.f32.gmra.mrb[124].mxu1 %v996_v62  ;;  %v870_v62 = vld [vmem:[%s4610_s18 + $0x3d0] sm:$0xff] }
 0x250   : > { %2600 = vmatprep.mubr.f32.mxu1 %v1001_v63  ;;  %v875_v63 = vld [vmem:[%s4610_s18 + $0x3f8] sm:$0xff] }
 0x251   : > { %1703 = vmatmul.mubr.f32.gmra.mrb[126].mxu0 %v1000_v0 }
 0x252   : > { %1773 = vmatprep.mubr.f32.mxu0 %v751_v1 }
 0x253   : > { %2601 = vmatmul.mubr.f32.gmra.mrb[126].mxu1 %v1000_v0  ;;  %v874_v0 = vld [vmem:[%s4610_s18 + $0x3f0] sm:$0xff] }
 0x254   : > { %2671 = vmatprep.mubr.f32.mxu1 %v751_v1  ;;  %v879_v1 = vld [vmem:[%s4610_s18 + $0x418] sm:$0xff] }
 0x255   : > { %1774 = vmatmul.mubr.f32.vlgmr.msra.gmra.mrb[0].mxu0 %v750_v2 }
 0x256   : > { %1779 = vmatprep.mubr.f32.mxu0 %v755_v3 }
 0x257   : > { %2672 = vmatmul.mubr.f32.vlgmr.msra.gmra.mrb[0].mxu1 %v750_v2  ;;  %v878_v2 = vld [vmem:[%s4610_s18 + $0x410] sm:$0xff] }
 0x258   : > { %2677 = vmatprep.mubr.f32.mxu1 %v755_v3  ;;  %v883_v3 = vld [vmem:[%s4610_s18 + $0x438] sm:$0xff] }
 0x259   : > { %1780 = vmatmul.mubr.f32.gmra.mrb[2].mxu0 %v754_v4 }
 0x25a   : > { %1785 = vmatprep.mubr.f32.mxu0 %v759_v5 }
 0x25b   : > { %2678 = vmatmul.mubr.f32.gmra.mrb[2].mxu1 %v754_v4  ;;  %v882_v4 = vld [vmem:[%s4610_s18 + $0x430] sm:$0xff] }
 0x25c   : > { %2683 = vmatprep.mubr.f32.mxu1 %v759_v5  ;;  %v887_v5 = vld [vmem:[%s4610_s18 + $0x458] sm:$0xff] }
 0x25d   : > { %1786 = vmatmul.mubr.f32.gmra.mrb[4].mxu0 %v758_v6 }
 0x25e   : > { %1791 = vmatprep.mubr.f32.mxu0 %v763_v7 }
 0x25f   : > { %2684 = vmatmul.mubr.f32.gmra.mrb[4].mxu1 %v758_v6  ;;  %v886_v6 = vld [vmem:[%s4610_s18 + $0x450] sm:$0xff] }
 0x260   : > { %2689 = vmatprep.mubr.f32.mxu1 %v763_v7  ;;  %v891_v7 = vld [vmem:[%s4610_s18 + $0x478] sm:$0xff] }
 0x261   : > { %1792 = vmatmul.mubr.f32.gmra.mrb[6].mxu0 %v762_v8 }
 0x262   : > { %1797 = vmatprep.mubr.f32.mxu0 %v767_v9 }
 0x263   : > { %2690 = vmatmul.mubr.f32.gmra.mrb[6].mxu1 %v762_v8  ;;  %v890_v8 = vld [vmem:[%s4610_s18 + $0x470] sm:$0xff] }
 0x264   : > { %2695 = vmatprep.mubr.f32.mxu1 %v767_v9  ;;  %v895_v9 = vld [vmem:[%s4610_s18 + $0x498] sm:$0xff] }
 0x265   : > { %1798 = vmatmul.mubr.f32.gmra.mrb[8].mxu0 %v766_v10 }
 0x266   : > { %1803 = vmatprep.mubr.f32.mxu0 %v771_v11 }
 0x267   : > { %2696 = vmatmul.mubr.f32.gmra.mrb[8].mxu1 %v766_v10  ;;  %v894_v10 = vld [vmem:[%s4610_s18 + $0x490] sm:$0xff] }
 0x268   : > { %2701 = vmatprep.mubr.f32.mxu1 %v771_v11  ;;  %v899_v11 = vld [vmem:[%s4610_s18 + $0x4b8] sm:$0xff] }
 0x269   : > { %1804 = vmatmul.mubr.f32.gmra.mrb[10].mxu0 %v770_v12 }
 0x26a   : > { %1809 = vmatprep.mubr.f32.mxu0 %v775_v13 }
 0x26b   : > { %2702 = vmatmul.mubr.f32.gmra.mrb[10].mxu1 %v770_v12  ;;  %v898_v12 = vld [vmem:[%s4610_s18 + $0x4b0] sm:$0xff] }
 0x26c   : > { %2707 = vmatprep.mubr.f32.mxu1 %v775_v13  ;;  %v903_v13 = vld [vmem:[%s4610_s18 + $0x4d8] sm:$0xff] }
 0x26d   : > { %1810 = vmatmul.mubr.f32.gmra.mrb[12].mxu0 %v774_v14 }
 0x26e   : > { %1815 = vmatprep.mubr.f32.mxu0 %v779_v15 }
 0x26f   : > { %2708 = vmatmul.mubr.f32.gmra.mrb[12].mxu1 %v774_v14  ;;  %v902_v14 = vld [vmem:[%s4610_s18 + $0x4d0] sm:$0xff] }
 0x270   : > { %2713 = vmatprep.mubr.f32.mxu1 %v779_v15  ;;  %v907_v15 = vld [vmem:[%s4610_s18 + $0x4f8] sm:$0xff] }
 0x271   : > { %1816 = vmatmul.mubr.f32.gmra.mrb[14].mxu0 %v778_v16 }
 0x272   : > { %1821 = vmatprep.mubr.f32.mxu0 %v783_v17 }
 0x273   : > { %2714 = vmatmul.mubr.f32.gmra.mrb[14].mxu1 %v778_v16  ;;  %v906_v16 = vld [vmem:[%s4610_s18 + $0x4f0] sm:$0xff] }
 0x274   : > { %2719 = vmatprep.mubr.f32.mxu1 %v783_v17  ;;  %v911_v17 = vld [vmem:[%s4610_s18 + $0x518] sm:$0xff] }
 0x275   : > { %1822 = vmatmul.mubr.f32.gmra.mrb[16].mxu0 %v782_v18 }
 0x276   : > { %1827 = vmatprep.mubr.f32.mxu0 %v787_v19 }
 0x277   : > { %2720 = vmatmul.mubr.f32.gmra.mrb[16].mxu1 %v782_v18  ;;  %v910_v18 = vld [vmem:[%s4610_s18 + $0x510] sm:$0xff] }
 0x278   : > { %2725 = vmatprep.mubr.f32.mxu1 %v787_v19  ;;  %v915_v19 = vld [vmem:[%s4610_s18 + $0x538] sm:$0xff] }
 0x279   : > { %1828 = vmatmul.mubr.f32.gmra.mrb[18].mxu0 %v786_v20 }
 0x27a   : > { %1833 = vmatprep.mubr.f32.mxu0 %v791_v21 }
 0x27b   : > { %2726 = vmatmul.mubr.f32.gmra.mrb[18].mxu1 %v786_v20  ;;  %v914_v20 = vld [vmem:[%s4610_s18 + $0x530] sm:$0xff] }
 0x27c   : > { %2731 = vmatprep.mubr.f32.mxu1 %v791_v21  ;;  %v919_v21 = vld [vmem:[%s4610_s18 + $0x558] sm:$0xff] }
 0x27d   : > { %1834 = vmatmul.mubr.f32.gmra.mrb[20].mxu0 %v790_v22 }
 0x27e   : > { %1839 = vmatprep.mubr.f32.mxu0 %v795_v23 }
 0x27f   : > { %2732 = vmatmul.mubr.f32.gmra.mrb[20].mxu1 %v790_v22  ;;  %v918_v22 = vld [vmem:[%s4610_s18 + $0x550] sm:$0xff] }
 0x280   : > { %2737 = vmatprep.mubr.f32.mxu1 %v795_v23  ;;  %v923_v23 = vld [vmem:[%s4610_s18 + $0x578] sm:$0xff] }
 0x281   : > { %1840 = vmatmul.mubr.f32.gmra.mrb[22].mxu0 %v794_v24 }
 0x282   : > { %1845 = vmatprep.mubr.f32.mxu0 %v799_v25 }
 0x283   : > { %2738 = vmatmul.mubr.f32.gmra.mrb[22].mxu1 %v794_v24  ;;  %v922_v24 = vld [vmem:[%s4610_s18 + $0x570] sm:$0xff] }
 0x284   : > { %2743 = vmatprep.mubr.f32.mxu1 %v799_v25  ;;  %v927_v25 = vld [vmem:[%s4610_s18 + $0x598] sm:$0xff] }
 0x285   : > { %1846 = vmatmul.mubr.f32.gmra.mrb[24].mxu0 %v798_v26 }
 0x286   : > { %1851 = vmatprep.mubr.f32.mxu0 %v803_v27 }
 0x287   : > { %2744 = vmatmul.mubr.f32.gmra.mrb[24].mxu1 %v798_v26  ;;  %v926_v26 = vld [vmem:[%s4610_s18 + $0x590] sm:$0xff] }
 0x288   : > { %2749 = vmatprep.mubr.f32.mxu1 %v803_v27  ;;  %v931_v27 = vld [vmem:[%s4610_s18 + $0x5b8] sm:$0xff] }
 0x289   : > { %1852 = vmatmul.mubr.f32.gmra.mrb[26].mxu0 %v802_v28 }
 0x28a   : > { %1857 = vmatprep.mubr.f32.mxu0 %v807_v29 }
 0x28b   : > { %2750 = vmatmul.mubr.f32.gmra.mrb[26].mxu1 %v802_v28  ;;  %v930_v28 = vld [vmem:[%s4610_s18 + $0x5b0] sm:$0xff] }
 0x28c   : > { %2755 = vmatprep.mubr.f32.mxu1 %v807_v29  ;;  %v935_v29 = vld [vmem:[%s4610_s18 + $0x5d8] sm:$0xff] }
 0x28d   : > { %1858 = vmatmul.mubr.f32.gmra.mrb[28].mxu0 %v806_v30 }
 0x28e   : > { %1863 = vmatprep.mubr.f32.mxu0 %v811_v31 }
 0x28f   : > { %2756 = vmatmul.mubr.f32.gmra.mrb[28].mxu1 %v806_v30  ;;  %v934_v30 = vld [vmem:[%s4610_s18 + $0x5d0] sm:$0xff] }
 0x290   : > { %2761 = vmatprep.mubr.f32.mxu1 %v811_v31  ;;  %v939_v31 = vld [vmem:[%s4610_s18 + $0x5f8] sm:$0xff] }
 0x291   : > { %1864 = vmatmul.mubr.f32.gmra.mrb[30].mxu0 %v810_v32 }
 0x292   : > { %1869 = vmatprep.mubr.f32.mxu0 %v815_v33 }
 0x293   : > { %2762 = vmatmul.mubr.f32.gmra.mrb[30].mxu1 %v810_v32  ;;  %v938_v32 = vld [vmem:[%s4610_s18 + $0x5f0] sm:$0xff] }
 0x294   : > { %2767 = vmatprep.mubr.f32.mxu1 %v815_v33  ;;  %v943_v33 = vld [vmem:[%s4610_s18 + $0x618] sm:$0xff] }
 0x295   : > { %1870 = vmatmul.mubr.f32.gmra.mrb[32].mxu0 %v814_v34 }
 0x296   : > { %1875 = vmatprep.mubr.f32.mxu0 %v819_v35 }
 0x297   : > { %2768 = vmatmul.mubr.f32.gmra.mrb[32].mxu1 %v814_v34  ;;  %v942_v34 = vld [vmem:[%s4610_s18 + $0x610] sm:$0xff] }
 0x298   : > { %2773 = vmatprep.mubr.f32.mxu1 %v819_v35  ;;  %v947_v35 = vld [vmem:[%s4610_s18 + $0x638] sm:$0xff] }
 0x299   : > { %1876 = vmatmul.mubr.f32.gmra.mrb[34].mxu0 %v818_v36 }
 0x29a   : > { %1881 = vmatprep.mubr.f32.mxu0 %v823_v37 }
 0x29b   : > { %2774 = vmatmul.mubr.f32.gmra.mrb[34].mxu1 %v818_v36  ;;  %v946_v36 = vld [vmem:[%s4610_s18 + $0x630] sm:$0xff] }
 0x29c   : > { %2779 = vmatprep.mubr.f32.mxu1 %v823_v37  ;;  %v951_v37 = vld [vmem:[%s4610_s18 + $0x658] sm:$0xff] }
 0x29d   : > { %1882 = vmatmul.mubr.f32.gmra.mrb[36].mxu0 %v822_v38 }
 0x29e   : > { %1887 = vmatprep.mubr.f32.mxu0 %v827_v39 }
 0x29f   : > { %2780 = vmatmul.mubr.f32.gmra.mrb[36].mxu1 %v822_v38  ;;  %v950_v38 = vld [vmem:[%s4610_s18 + $0x650] sm:$0xff] }
 0x2a0   : > { %2785 = vmatprep.mubr.f32.mxu1 %v827_v39  ;;  %v955_v39 = vld [vmem:[%s4610_s18 + $0x678] sm:$0xff] }
 0x2a1   : > { %1888 = vmatmul.mubr.f32.gmra.mrb[38].mxu0 %v826_v40 }
 0x2a2   : > { %1893 = vmatprep.mubr.f32.mxu0 %v831_v41 }
 0x2a3   : > { %2786 = vmatmul.mubr.f32.gmra.mrb[38].mxu1 %v826_v40  ;;  %v954_v40 = vld [vmem:[%s4610_s18 + $0x670] sm:$0xff] }
 0x2a4   : > { %2791 = vmatprep.mubr.f32.mxu1 %v831_v41  ;;  %v959_v41 = vld [vmem:[%s4610_s18 + $0x698] sm:$0xff] }
 0x2a5   : > { %1894 = vmatmul.mubr.f32.gmra.mrb[40].mxu0 %v830_v42 }
 0x2a6   : > { %1899 = vmatprep.mubr.f32.mxu0 %v835_v43 }
 0x2a7   : > { %2792 = vmatmul.mubr.f32.gmra.mrb[40].mxu1 %v830_v42  ;;  %v958_v42 = vld [vmem:[%s4610_s18 + $0x690] sm:$0xff] }
 0x2a8   : > { %2797 = vmatprep.mubr.f32.mxu1 %v835_v43  ;;  %v963_v43 = vld [vmem:[%s4610_s18 + $0x6b8] sm:$0xff] }
 0x2a9   : > { %1900 = vmatmul.mubr.f32.gmra.mrb[42].mxu0 %v834_v44 }
 0x2aa   : > { %1905 = vmatprep.mubr.f32.mxu0 %v839_v45 }
 0x2ab   : > { %2798 = vmatmul.mubr.f32.gmra.mrb[42].mxu1 %v834_v44  ;;  %v492_v44 = vld [vmem:[#allocation7] sm:$0xff] }
 0x2ac   : > { %2803 = vmatprep.mubr.f32.mxu1 %v839_v45  ;;  %v962_v45 = vld [vmem:[%s4610_s18 + $0x6b0] sm:$0xff] }
 0x2ad   : > { %1906 = vmatmul.mubr.f32.gmra.mrb[44].mxu0 %v838_v46 }
 0x2ae   : > { %1911 = vmatprep.mubr.f32.mxu0 %v843_v47 }
 0x2af   : > { %2804 = vmatmul.mubr.f32.gmra.mrb[44].mxu1 %v838_v46  ;;  %v494_v46 = vld [vmem:[#allocation7 + $0x10] sm:$0xff] }
 0x2b0   : > { %2809 = vmatprep.mubr.f32.mxu1 %v843_v47  ;;  %v493_v47 = vld [vmem:[#allocation7 + $0x8] sm:$0xff] }
 0x2b1   : > { %1912 = vmatmul.mubr.f32.gmra.mrb[46].mxu0 %v842_v48 }
 0x2b2   : > { %1917 = vmatprep.mubr.f32.mxu0 %v847_v49 }
 0x2b3   : > { %2810 = vmatmul.mubr.f32.gmra.mrb[46].mxu1 %v842_v48  ;;  %v967_v48 = vld [vmem:[%s4610_s18 + $0x6d8] sm:$0xff] }
 0x2b4   : > { %2815 = vmatprep.mubr.f32.mxu1 %v847_v49 }
 0x2b5   : > { %1918 = vmatmul.mubr.f32.gmra.mrb[48].mxu0 %v846_v50 }
 0x2b6   : > { %1923 = vmatprep.mubr.f32.mxu0 %v851_v51 }
 0x2b7   : > { %2816 = vmatmul.mubr.f32.gmra.mrb[48].mxu1 %v846_v50  ;;  %v495_v50 = vld [vmem:[#allocation7 + $0x18] sm:$0xff] }
 0x2b8   : > { %2821 = vmatprep.mubr.f32.mxu1 %v851_v51 }
 0x2b9   : > { %1924 = vmatmul.mubr.f32.gmra.mrb[50].mxu0 %v850_v52 }
 0x2ba   : > { %1929 = vmatprep.mubr.f32.mxu0 %v855_v53 }
 0x2bb   : > { %2822 = vmatmul.mubr.f32.gmra.mrb[50].mxu1 %v850_v52 }
 0x2bc   : > { %2827 = vmatprep.mubr.f32.mxu1 %v855_v53 }
 0x2bd   : > { %1930 = vmatmul.mubr.f32.gmra.mrb[52].mxu0 %v854_v54 }
 0x2be   : > { %1935 = vmatprep.mubr.f32.mxu0 %v859_v55 }
 0x2bf   : > { %2828 = vmatmul.mubr.f32.gmra.mrb[52].mxu1 %v854_v54 }
 0x2c0   : > { %2833 = vmatprep.mubr.f32.mxu1 %v859_v55 }
 0x2c1   : > { %1936 = vmatmul.mubr.f32.gmra.mrb[54].mxu0 %v858_v56 }
 0x2c2   : > { %1941 = vmatprep.mubr.f32.mxu0 %v863_v57 }
 0x2c3   : > { %2834 = vmatmul.mubr.f32.gmra.mrb[54].mxu1 %v858_v56 }
 0x2c4   : > { %2839 = vmatprep.mubr.f32.mxu1 %v863_v57  ;;  %v496_v57 = vld [vmem:[#allocation7 + $0x20] sm:$0xff] }
 0x2c5   : > { %1942 = vmatmul.mubr.f32.gmra.mrb[56].mxu0 %v862_v58 }
 0x2c6   : > { %1947 = vmatprep.mubr.f32.mxu0 %v867_v59 }
 0x2c7   : > { %2840 = vmatmul.mubr.f32.gmra.mrb[56].mxu1 %v862_v58  ;;  %v966_v58 = vld [vmem:[%s4610_s18 + $0x6d0] sm:$0xff] }
 0x2c8   : > { %2845 = vmatprep.mubr.f32.mxu1 %v867_v59 }
 0x2c9   : > { %1948 = vmatmul.mubr.f32.gmra.mrb[58].mxu0 %v866_v60 }
 0x2ca   : > { %1953 = vmatprep.mubr.f32.mxu0 %v871_v61 }
 0x2cb   : > { %2846 = vmatmul.mubr.f32.gmra.mrb[58].mxu1 %v866_v60  ;;  %v498_v60 = vld [vmem:[#allocation7 + $0x30] sm:$0xff] }
 0x2cc   : > { %2851 = vmatprep.mubr.f32.mxu1 %v871_v61  ;;  %v497_v61 = vld [vmem:[#allocation7 + $0x28] sm:$0xff] }
 0x2cd   : > { %1954 = vmatmul.mubr.f32.gmra.mrb[60].mxu0 %v870_v62 }
 0x2ce   : > { %1959 = vmatprep.mubr.f32.mxu0 %v875_v63 }
 0x2cf   : > { %2852 = vmatmul.mubr.f32.gmra.mrb[60].mxu1 %v870_v62  ;;  %v971_v62 = vld [vmem:[%s4610_s18 + $0x6f8] sm:$0xff] }
 0x2d0   : > { %2857 = vmatprep.mubr.f32.mxu1 %v875_v63 }
 0x2d1   : > { %1960 = vmatmul.mubr.f32.gmra.mrb[62].mxu0 %v874_v0 }
 0x2d2   : > { %1965 = vmatprep.mubr.f32.mxu0 %v879_v1 }
 0x2d3   : > { %2858 = vmatmul.mubr.f32.gmra.mrb[62].mxu1 %v874_v0  ;;  %v499_v0 = vld [vmem:[#allocation7 + $0x38] sm:$0xff] }
 0x2d4   : > { %2863 = vmatprep.mubr.f32.mxu1 %v879_v1 }
 0x2d5   : > { %1966 = vmatmul.mubr.f32.gmra.mrb[64].mxu0 %v878_v2 }
 0x2d6   : > { %1971 = vmatprep.mubr.f32.mxu0 %v883_v3 }
 0x2d7   : > { %2864 = vmatmul.mubr.f32.gmra.mrb[64].mxu1 %v878_v2 }
 0x2d8   : > { %2869 = vmatprep.mubr.f32.mxu1 %v883_v3 }
 0x2d9   : > { %1972 = vmatmul.mubr.f32.gmra.mrb[66].mxu0 %v882_v4 }
 0x2da   : > { %1977 = vmatprep.mubr.f32.mxu0 %v887_v5 }
 0x2db   : > { %2870 = vmatmul.mubr.f32.gmra.mrb[66].mxu1 %v882_v4 }
 0x2dc   : > { %2875 = vmatprep.mubr.f32.mxu1 %v887_v5 }
 0x2dd   : > { %1978 = vmatmul.mubr.f32.gmra.mrb[68].mxu0 %v886_v6 }
 0x2de   : > { %1983 = vmatprep.mubr.f32.mxu0 %v891_v7 }
 0x2df   : > { %2876 = vmatmul.mubr.f32.gmra.mrb[68].mxu1 %v886_v6 }
 0x2e0   : > { %2881 = vmatprep.mubr.f32.mxu1 %v891_v7  ;;  %v500_v7 = vld [vmem:[#allocation7 + $0x40] sm:$0xff] }
 0x2e1   : > { %1984 = vmatmul.mubr.f32.gmra.mrb[70].mxu0 %v890_v8 }
 0x2e2   : > { %1989 = vmatprep.mubr.f32.mxu0 %v895_v9 }
 0x2e3   : > { %2882 = vmatmul.mubr.f32.gmra.mrb[70].mxu1 %v890_v8  ;;  %v970_v8 = vld [vmem:[%s4610_s18 + $0x6f0] sm:$0xff] }
 0x2e4   : > { %2887 = vmatprep.mubr.f32.mxu1 %v895_v9 }
 0x2e5   : > { %1990 = vmatmul.mubr.f32.gmra.mrb[72].mxu0 %v894_v10 }
 0x2e6   : > { %1995 = vmatprep.mubr.f32.mxu0 %v899_v11 }
 0x2e7   : > { %2888 = vmatmul.mubr.f32.gmra.mrb[72].mxu1 %v894_v10  ;;  %v502_v10 = vld [vmem:[#allocation7 + $0x50] sm:$0xff] }
 0x2e8   : > { %2893 = vmatprep.mubr.f32.mxu1 %v899_v11  ;;  %v501_v11 = vld [vmem:[#allocation7 + $0x48] sm:$0xff] }
 0x2e9   : > { %1996 = vmatmul.mubr.f32.gmra.mrb[74].mxu0 %v898_v12 }
 0x2ea   : > { %2001 = vmatprep.mubr.f32.mxu0 %v903_v13 }
 0x2eb   : > { %2894 = vmatmul.mubr.f32.gmra.mrb[74].mxu1 %v898_v12  ;;  %v975_v12 = vld [vmem:[%s4610_s18 + $0x718] sm:$0xff] }
 0x2ec   : > { %2899 = vmatprep.mubr.f32.mxu1 %v903_v13 }
 0x2ed   : > { %2002 = vmatmul.mubr.f32.gmra.mrb[76].mxu0 %v902_v14 }
 0x2ee   : > { %2007 = vmatprep.mubr.f32.mxu0 %v907_v15 }
 0x2ef   : > { %2900 = vmatmul.mubr.f32.gmra.mrb[76].mxu1 %v902_v14  ;;  %v503_v14 = vld [vmem:[#allocation7 + $0x58] sm:$0xff] }
 0x2f0   : > { %2905 = vmatprep.mubr.f32.mxu1 %v907_v15 }
 0x2f1   : > { %2008 = vmatmul.mubr.f32.gmra.mrb[78].mxu0 %v906_v16 }
 0x2f2   : > { %2013 = vmatprep.mubr.f32.mxu0 %v911_v17 }
 0x2f3   : > { %2906 = vmatmul.mubr.f32.gmra.mrb[78].mxu1 %v906_v16 }
 0x2f4   : > { %2911 = vmatprep.mubr.f32.mxu1 %v911_v17 }
 0x2f5   : > { %2014 = vmatmul.mubr.f32.gmra.mrb[80].mxu0 %v910_v18 }
 0x2f6   : > { %2019 = vmatprep.mubr.f32.mxu0 %v915_v19 }
 0x2f7   : > { %2912 = vmatmul.mubr.f32.gmra.mrb[80].mxu1 %v910_v18 }
 0x2f8   : > { %2917 = vmatprep.mubr.f32.mxu1 %v915_v19 }
 0x2f9   : > { %2020 = vmatmul.mubr.f32.gmra.mrb[82].mxu0 %v914_v20 }
 0x2fa   : > { %2025 = vmatprep.mubr.f32.mxu0 %v919_v21 }
 0x2fb   : > { %2918 = vmatmul.mubr.f32.gmra.mrb[82].mxu1 %v914_v20 }
 0x2fc   : > { %2923 = vmatprep.mubr.f32.mxu1 %v919_v21  ;;  %v504_v21 = vld [vmem:[#allocation7 + $0x60] sm:$0xff] }
 0x2fd   : > { %2026 = vmatmul.mubr.f32.gmra.mrb[84].mxu0 %v918_v22 }
 0x2fe   : > { %2031 = vmatprep.mubr.f32.mxu0 %v923_v23 }
 0x2ff   : > { %2924 = vmatmul.mubr.f32.gmra.mrb[84].mxu1 %v918_v22  ;;  %v974_v22 = vld [vmem:[%s4610_s18 + $0x710] sm:$0xff] }
 0x300   : > { %2929 = vmatprep.mubr.f32.mxu1 %v923_v23 }
 0x301   : > { %2032 = vmatmul.mubr.f32.gmra.mrb[86].mxu0 %v922_v24 }
 0x302   : > { %2037 = vmatprep.mubr.f32.mxu0 %v927_v25 }
 0x303   : > { %2930 = vmatmul.mubr.f32.gmra.mrb[86].mxu1 %v922_v24  ;;  %v506_v24 = vld [vmem:[#allocation7 + $0x70] sm:$0xff] }
 0x304   : > { %2935 = vmatprep.mubr.f32.mxu1 %v927_v25  ;;  %v505_v25 = vld [vmem:[#allocation7 + $0x68] sm:$0xff] }
 0x305   : > { %2038 = vmatmul.mubr.f32.gmra.mrb[88].mxu0 %v926_v26 }
 0x306   : > { %2043 = vmatprep.mubr.f32.mxu0 %v931_v27 }
 0x307   : > { %2936 = vmatmul.mubr.f32.gmra.mrb[88].mxu1 %v926_v26  ;;  %v979_v26 = vld [vmem:[%s4610_s18 + $0x738] sm:$0xff] }
 0x308   : > { %2941 = vmatprep.mubr.f32.mxu1 %v931_v27 }
 0x309   : > { %2044 = vmatmul.mubr.f32.gmra.mrb[90].mxu0 %v930_v28 }
 0x30a   : > { %2049 = vmatprep.mubr.f32.mxu0 %v935_v29 }
 0x30b   : > { %2942 = vmatmul.mubr.f32.gmra.mrb[90].mxu1 %v930_v28  ;;  %v507_v28 = vld [vmem:[#allocation7 + $0x78] sm:$0xff] }
 0x30c   : > { %2947 = vmatprep.mubr.f32.mxu1 %v935_v29 }
 0x30d   : > { %2050 = vmatmul.mubr.f32.gmra.mrb[92].mxu0 %v934_v30 }
 0x30e   : > { %2055 = vmatprep.mubr.f32.mxu0 %v939_v31 }
 0x30f   : > { %2948 = vmatmul.mubr.f32.gmra.mrb[92].mxu1 %v934_v30 }
 0x310   : > { %2953 = vmatprep.mubr.f32.mxu1 %v939_v31 }
 0x311   : > { %2056 = vmatmul.mubr.f32.gmra.mrb[94].mxu0 %v938_v32 }
 0x312   : > { %2061 = vmatprep.mubr.f32.mxu0 %v943_v33 }
 0x313   : > { %2954 = vmatmul.mubr.f32.gmra.mrb[94].mxu1 %v938_v32 }
 0x314   : > { %2959 = vmatprep.mubr.f32.mxu1 %v943_v33 }
 0x315   : > { %2062 = vmatmul.mubr.f32.gmra.mrb[96].mxu0 %v942_v34 }
 0x316   : > { %2067 = vmatprep.mubr.f32.mxu0 %v947_v35 }
 0x317   : > { %2960 = vmatmul.mubr.f32.gmra.mrb[96].mxu1 %v942_v34 }
 0x318   : > { %2965 = vmatprep.mubr.f32.mxu1 %v947_v35  ;;  %v508_v35 = vld [vmem:[#allocation7 + $0x80] sm:$0xff] }
 0x319   : > { %2068 = vmatmul.mubr.f32.gmra.mrb[98].mxu0 %v946_v36 }
 0x31a   : > { %2073 = vmatprep.mubr.f32.mxu0 %v951_v37 }
 0x31b   : > { %2966 = vmatmul.mubr.f32.gmra.mrb[98].mxu1 %v946_v36  ;;  %v978_v36 = vld [vmem:[%s4610_s18 + $0x730] sm:$0xff] }
 0x31c   : > { %2971 = vmatprep.mubr.f32.mxu1 %v951_v37 }
 0x31d   : > { %2074 = vmatmul.mubr.f32.gmra.mrb[100].mxu0 %v950_v38 }
 0x31e   : > { %2079 = vmatprep.mubr.f32.mxu0 %v955_v39 }
 0x31f   : > { %2972 = vmatmul.mubr.f32.gmra.mrb[100].mxu1 %v950_v38  ;;  %v510_v38 = vld [vmem:[#allocation7 + $0x90] sm:$0xff] }
 0x320   : > { %2977 = vmatprep.mubr.f32.mxu1 %v955_v39  ;;  %v509_v39 = vld [vmem:[#allocation7 + $0x88] sm:$0xff] }
 0x321   : > { %2080 = vmatmul.mubr.f32.gmra.mrb[102].mxu0 %v954_v40 }
 0x322   : > { %2085 = vmatprep.mubr.f32.mxu0 %v959_v41 }
 0x323   : > { %2978 = vmatmul.mubr.f32.gmra.mrb[102].mxu1 %v954_v40  ;;  %v983_v40 = vld [vmem:[%s4610_s18 + $0x758] sm:$0xff] }
 0x324   : > { %2983 = vmatprep.mubr.f32.mxu1 %v959_v41 }
 0x325   : > { %2086 = vmatmul.mubr.f32.gmra.mrb[104].mxu0 %v958_v42 }
 0x326   : > { %2091 = vmatprep.mubr.f32.mxu0 %v963_v43 }
 0x327   : > { %2984 = vmatmul.mubr.f32.gmra.mrb[104].mxu1 %v958_v42  ;;  %v511_v42 = vld [vmem:[#allocation7 + $0x98] sm:$0xff] }
 0x328   : > { %2989 = vmatprep.mubr.f32.mxu1 %v963_v43  ;;  %v1775_v49 = vpop.f32.mrb[0].mxu0 }
 0x329   : > { %v3056_v51 = vadd.f32 %v1775_v49, %v492_v44  ;;  %v1777_v53 = vpop.f32.mrb[1].mxu0  ;;  %2092 = vmatmul.mubr.f32.gmra.mrb[106].mxu0 %v962_v45  ;;  %v512_v49 = vld [vmem:[#allocation7 + $0xa0] sm:$0xff] }
 0x32a   : > { %v2673_v52 = vpop.f32.mrb[0].mxu1  ;;  %v3057_v55 = vadd.f32 %v1777_v53, %v493_v47  ;;  %2097 = vmatprep.mubr.f32.mxu0 %v967_v48  ;;  %v513_v53 = vld [vmem:[#allocation7 + $0xa8] sm:$0xff] }
 0x32b   : > { %v3058_v54 = vadd.f32 %v2673_v52, %v494_v46  ;;  %v2675_v56 = vpop.f32.mrb[1].mxu1  ;;  %2990 = vmatmul.mubr.f32.gmra.mrb[106].mxu1 %v962_v45  ;;  %3312 = vst [vmem:[#allocation7] sm:$0xff] %v3056_v51  ;;  %v514_v52 = vld [vmem:[#allocation7 + $0xb0] sm:$0xff] }
 0x32c   : > { %v3059_v59 = vadd.f32 %v2675_v56, %v495_v50  ;;  %2995 = vmatprep.mubr.f32.mxu1 %v967_v48  ;;  %3313 = vst [vmem:[#allocation7 + $0x8] sm:$0xff] %v3057_v55  ;;  %v1781_v63 = vpop.f32.mrb[2].mxu0  ;;  %v982_v50 = vld [vmem:[%s4610_s18 + $0x750] sm:$0xff]  ;;  %v515_v56 = vld [vmem:[#allocation7 + $0xb8] sm:$0xff] }
 0x32d   : > { %3314 = vst [vmem:[#allocation7 + $0x10] sm:$0xff] %v3058_v54  ;;  %v3060_v1 = vadd.f32 %v1781_v63, %v496_v57  ;;  %v1783_v3 = vpop.f32.mrb[3].mxu0  ;;  %2098 = vmatmul.mubr.f32.gmra.mrb[108].mxu0 %v966_v58  ;;  %v987_v54 = vld [vmem:[%s4610_s18 + $0x778] sm:$0xff]  ;;  %v516_v63 = vld [vmem:[#allocation7 + $0xc0] sm:$0xff] }
 0x32e   : > { %3315 = vst [vmem:[#allocation7 + $0x18] sm:$0xff] %v3059_v59  ;;  %v2679_v2 = vpop.f32.mrb[2].mxu1  ;;  %v3061_v5 = vadd.f32 %v1783_v3, %v497_v61  ;;  %2103 = vmatprep.mubr.f32.mxu0 %v971_v62  ;;  %v517_v3 = vld [vmem:[#allocation7 + $0xc8] sm:$0xff] }
 0x32f   : > { %v3062_v4 = vadd.f32 %v2679_v2, %v498_v60  ;;  %v2681_v6 = vpop.f32.mrb[3].mxu1  ;;  %2996 = vmatmul.mubr.f32.gmra.mrb[108].mxu1 %v966_v58  ;;  %3316 = vst [vmem:[#allocation7 + $0x20] sm:$0xff] %v3060_v1  ;;  %v518_v2 = vld [vmem:[#allocation7 + $0xd0] sm:$0xff] }
 0x330   : > { %v3063_v9 = vadd.f32 %v2681_v6, %v499_v0  ;;  %3001 = vmatprep.mubr.f32.mxu1 %v971_v62  ;;  %3317 = vst [vmem:[#allocation7 + $0x28] sm:$0xff] %v3061_v5  ;;  %v1787_v13 = vpop.f32.mrb[4].mxu0  ;;  %v986_v0 = vld [vmem:[%s4610_s18 + $0x770] sm:$0xff]  ;;  %v519_v6 = vld [vmem:[#allocation7 + $0xd8] sm:$0xff] }
 0x331   : > { %3318 = vst [vmem:[#allocation7 + $0x30] sm:$0xff] %v3062_v4  ;;  %v3064_v15 = vadd.f32 %v1787_v13, %v500_v7  ;;  %v1789_v17 = vpop.f32.mrb[5].mxu0  ;;  %2104 = vmatmul.mubr.f32.gmra.mrb[110].mxu0 %v970_v8  ;;  %v991_v4 = vld [vmem:[%s4610_s18 + $0x798] sm:$0xff]  ;;  %v520_v13 = vld [vmem:[#allocation7 + $0xe0] sm:$0xff] }
 0x332   : > { %3319 = vst [vmem:[#allocation7 + $0x38] sm:$0xff] %v3063_v9  ;;  %v2685_v16 = vpop.f32.mrb[4].mxu1  ;;  %v3065_v19 = vadd.f32 %v1789_v17, %v501_v11  ;;  %2109 = vmatprep.mubr.f32.mxu0 %v975_v12  ;;  %v521_v17 = vld [vmem:[#allocation7 + $0xe8] sm:$0xff] }
 0x333   : > { %v3066_v18 = vadd.f32 %v2685_v16, %v502_v10  ;;  %v2687_v20 = vpop.f32.mrb[5].mxu1  ;;  %3002 = vmatmul.mubr.f32.gmra.mrb[110].mxu1 %v970_v8  ;;  %3320 = vst [vmem:[#allocation7 + $0x40] sm:$0xff] %v3064_v15  ;;  %v522_v16 = vld [vmem:[#allocation7 + $0xf0] sm:$0xff] }
 0x334   : > { %v3067_v23 = vadd.f32 %v2687_v20, %v503_v14  ;;  %3007 = vmatprep.mubr.f32.mxu1 %v975_v12  ;;  %3321 = vst [vmem:[#allocation7 + $0x48] sm:$0xff] %v3065_v19  ;;  %v1793_v27 = vpop.f32.mrb[6].mxu0  ;;  %v990_v14 = vld [vmem:[%s4610_s18 + $0x790] sm:$0xff]  ;;  %v523_v20 = vld [vmem:[#allocation7 + $0xf8] sm:$0xff] }
 0x335   : > { %3322 = vst [vmem:[#allocation7 + $0x50] sm:$0xff] %v3066_v18  ;;  %v3068_v29 = vadd.f32 %v1793_v27, %v504_v21  ;;  %v1795_v31 = vpop.f32.mrb[7].mxu0  ;;  %2110 = vmatmul.mubr.f32.gmra.mrb[112].mxu0 %v974_v22  ;;  %v995_v18 = vld [vmem:[%s4610_s18 + $0x7b8] sm:$0xff]  ;;  %v524_v27 = vld [vmem:[#allocation7 + $0x100] sm:$0xff] }
 0x336   : > { %3323 = vst [vmem:[#allocation7 + $0x58] sm:$0xff] %v3067_v23  ;;  %v2691_v30 = vpop.f32.mrb[6].mxu1  ;;  %v3069_v33 = vadd.f32 %v1795_v31, %v505_v25  ;;  %2115 = vmatprep.mubr.f32.mxu0 %v979_v26  ;;  %v525_v31 = vld [vmem:[#allocation7 + $0x108] sm:$0xff] }
 0x337   : > { %v3070_v32 = vadd.f32 %v2691_v30, %v506_v24  ;;  %v2693_v34 = vpop.f32.mrb[7].mxu1  ;;  %3008 = vmatmul.mubr.f32.gmra.mrb[112].mxu1 %v974_v22  ;;  %3324 = vst [vmem:[#allocation7 + $0x60] sm:$0xff] %v3068_v29  ;;  %v526_v30 = vld [vmem:[#allocation7 + $0x110] sm:$0xff] }
 0x338   : > { %v3071_v37 = vadd.f32 %v2693_v34, %v507_v28  ;;  %3013 = vmatprep.mubr.f32.mxu1 %v979_v26  ;;  %3325 = vst [vmem:[#allocation7 + $0x68] sm:$0xff] %v3069_v33  ;;  %v1799_v41 = vpop.f32.mrb[8].mxu0  ;;  %v994_v28 = vld [vmem:[%s4610_s18 + $0x7b0] sm:$0xff]  ;;  %v527_v34 = vld [vmem:[#allocation7 + $0x118] sm:$0xff] }
 0x339   : > { %3326 = vst [vmem:[#allocation7 + $0x70] sm:$0xff] %v3070_v32  ;;  %v3072_v43 = vadd.f32 %v1799_v41, %v508_v35  ;;  %v1801_v45 = vpop.f32.mrb[9].mxu0  ;;  %2116 = vmatmul.mubr.f32.gmra.mrb[114].mxu0 %v978_v36  ;;  %v999_v32 = vld [vmem:[%s4610_s18 + $0x7d8] sm:$0xff]  ;;  %v528_v41 = vld [vmem:[#allocation7 + $0x120] sm:$0xff] }
 0x33a   : > { %3327 = vst [vmem:[#allocation7 + $0x78] sm:$0xff] %v3071_v37  ;;  %v2697_v44 = vpop.f32.mrb[8].mxu1  ;;  %v3073_v47 = vadd.f32 %v1801_v45, %v509_v39  ;;  %2121 = vmatprep.mubr.f32.mxu0 %v983_v40  ;;  %v529_v45 = vld [vmem:[#allocation7 + $0x128] sm:$0xff] }
 0x33b   : > { %v3074_v46 = vadd.f32 %v2697_v44, %v510_v38  ;;  %v2699_v48 = vpop.f32.mrb[9].mxu1  ;;  %3014 = vmatmul.mubr.f32.gmra.mrb[114].mxu1 %v978_v36  ;;  %3328 = vst [vmem:[#allocation7 + $0x80] sm:$0xff] %v3072_v43  ;;  %v530_v44 = vld [vmem:[#allocation7 + $0x130] sm:$0xff] }
 0x33c   : > { %v3075_v51 = vadd.f32 %v2699_v48, %v511_v42  ;;  %3019 = vmatprep.mubr.f32.mxu1 %v983_v40  ;;  %3329 = vst [vmem:[#allocation7 + $0x88] sm:$0xff] %v3073_v47  ;;  %v1805_v55 = vpop.f32.mrb[10].mxu0  ;;  %v998_v42 = vld [vmem:[%s4610_s18 + $0x7d0] sm:$0xff]  ;;  %v531_v48 = vld [vmem:[#allocation7 + $0x138] sm:$0xff] }
 0x33d   : > { %3330 = vst [vmem:[#allocation7 + $0x90] sm:$0xff] %v3074_v46  ;;  %v3076_v57 = vadd.f32 %v1805_v55, %v512_v49  ;;  %v1807_v59 = vpop.f32.mrb[11].mxu0  ;;  %2122 = vmatmul.mubr.f32.gmra.mrb[116].mxu0 %v982_v50  ;;  %v1003_v46 = vld [vmem:[%s4610_s18 + $0x7f8] sm:$0xff]  ;;  %v532_v55 = vld [vmem:[#allocation7 + $0x140] sm:$0xff] }
 0x33e   : > { %3331 = vst [vmem:[#allocation7 + $0x98] sm:$0xff] %v3075_v51  ;;  %v2703_v58 = vpop.f32.mrb[10].mxu1  ;;  %v3077_v61 = vadd.f32 %v1807_v59, %v513_v53  ;;  %2127 = vmatprep.mubr.f32.mxu0 %v987_v54  ;;  %v533_v59 = vld [vmem:[#allocation7 + $0x148] sm:$0xff] }
 0x33f   : > { %v3078_v60 = vadd.f32 %v2703_v58, %v514_v52  ;;  %v2705_v62 = vpop.f32.mrb[11].mxu1  ;;  %3020 = vmatmul.mubr.f32.gmra.mrb[116].mxu1 %v982_v50  ;;  %3332 = vst [vmem:[#allocation7 + $0xa0] sm:$0xff] %v3076_v57  ;;  %v534_v58 = vld [vmem:[#allocation7 + $0x150] sm:$0xff] }
 0x340   : > { %v3079_v1 = vadd.f32 %v2705_v62, %v515_v56  ;;  %3025 = vmatprep.mubr.f32.mxu1 %v987_v54  ;;  %3333 = vst [vmem:[#allocation7 + $0xa8] sm:$0xff] %v3077_v61  ;;  %v1811_v5 = vpop.f32.mrb[12].mxu0  ;;  %v1002_v56 = vld [vmem:[%s4610_s18 + $0x7f0] sm:$0xff]  ;;  %v535_v61 = vld [vmem:[#allocation7 + $0x158] sm:$0xff] }
 0x341   : > { %3334 = vst [vmem:[#allocation7 + $0xb0] sm:$0xff] %v3078_v60  ;;  %v3080_v7 = vadd.f32 %v1811_v5, %v516_v63  ;;  %v1813_v9 = vpop.f32.mrb[13].mxu0  ;;  %2128 = vmatmul.mubr.f32.gmra.mrb[118].mxu0 %v986_v0 }
 0x342   : > { %3335 = vst [vmem:[#allocation7 + $0xb8] sm:$0xff] %v3079_v1  ;;  %v2709_v8 = vpop.f32.mrb[12].mxu1  ;;  %v3081_v11 = vadd.f32 %v1813_v9, %v517_v3  ;;  %2133 = vmatprep.mubr.f32.mxu0 %v991_v4  ;;  %v539_v9 = vld [vmem:[#allocation7 + $0x178] sm:$0xff] }
 0x343   : > { %v3082_v10 = vadd.f32 %v2709_v8, %v518_v2  ;;  %v2711_v12 = vpop.f32.mrb[13].mxu1  ;;  %3026 = vmatmul.mubr.f32.gmra.mrb[118].mxu1 %v986_v0  ;;  %3336 = vst [vmem:[#allocation7 + $0xc0] sm:$0xff] %v3080_v7  ;;  %v537_v7 = vld [vmem:[#allocation7 + $0x168] sm:$0xff] }
 0x344   : > { %v3083_v15 = vadd.f32 %v2711_v12, %v519_v6  ;;  %3031 = vmatprep.mubr.f32.mxu1 %v991_v4  ;;  %3337 = vst [vmem:[#allocation7 + $0xc8] sm:$0xff] %v3081_v11  ;;  %v1817_v19 = vpop.f32.mrb[14].mxu0  ;;  %v536_v4 = vld [vmem:[#allocation7 + $0x160] sm:$0xff]  ;;  %v538_v6 = vld [vmem:[#allocation7 + $0x170] sm:$0xff] }
 0x345   : > { %3338 = vst [vmem:[#allocation7 + $0xd0] sm:$0xff] %v3082_v10  ;;  %v3084_v21 = vadd.f32 %v1817_v19, %v520_v13  ;;  %v1819_v23 = vpop.f32.mrb[15].mxu0  ;;  %2134 = vmatmul.mubr.f32.gmra.mrb[120].mxu0 %v990_v14  ;;  %v541_v19 = vld [vmem:[#allocation7 + $0x188] sm:$0xff] }
 0x346   : > { %3339 = vst [vmem:[#allocation7 + $0xd8] sm:$0xff] %v3083_v15  ;;  %v2715_v22 = vpop.f32.mrb[14].mxu1  ;;  %v3085_v25 = vadd.f32 %v1819_v23, %v521_v17  ;;  %2139 = vmatprep.mubr.f32.mxu0 %v995_v18 }
 0x347   : > { %v3086_v24 = vadd.f32 %v2715_v22, %v522_v16  ;;  %v2717_v26 = vpop.f32.mrb[15].mxu1  ;;  %3032 = vmatmul.mubr.f32.gmra.mrb[120].mxu1 %v990_v14  ;;  %3340 = vst [vmem:[#allocation7 + $0xe0] sm:$0xff] %v3084_v21  ;;  %v540_v16 = vld [vmem:[#allocation7 + $0x180] sm:$0xff]  ;;  %v543_v21 = vld [vmem:[#allocation7 + $0x198] sm:$0xff] }
 0x348   : > { %v3087_v29 = vadd.f32 %v2717_v26, %v523_v20  ;;  %3037 = vmatprep.mubr.f32.mxu1 %v995_v18  ;;  %3341 = vst [vmem:[#allocation7 + $0xe8] sm:$0xff] %v3085_v25  ;;  %v1823_v33 = vpop.f32.mrb[16].mxu0  ;;  %v542_v18 = vld [vmem:[#allocation7 + $0x190] sm:$0xff] }
 0x349   : > { %3342 = vst [vmem:[#allocation7 + $0xf0] sm:$0xff] %v3086_v24  ;;  %v3088_v35 = vadd.f32 %v1823_v33, %v524_v27  ;;  %v1825_v37 = vpop.f32.mrb[17].mxu0  ;;  %2140 = vmatmul.mubr.f32.gmra.mrb[122].mxu0 %v994_v28  ;;  %v547_v33 = vld [vmem:[#allocation7 + $0x1b8] sm:$0xff] }
 0x34a   : > { %3343 = vst [vmem:[#allocation7 + $0xf8] sm:$0xff] %v3087_v29  ;;  %v2721_v36 = vpop.f32.mrb[16].mxu1  ;;  %v3089_v39 = vadd.f32 %v1825_v37, %v525_v31  ;;  %2145 = vmatprep.mubr.f32.mxu0 %v999_v32  ;;  %v545_v31 = vld [vmem:[#allocation7 + $0x1a8] sm:$0xff] }
 0x34b   : > { %v3090_v38 = vadd.f32 %v2721_v36, %v526_v30  ;;  %v2723_v40 = vpop.f32.mrb[17].mxu1  ;;  %3038 = vmatmul.mubr.f32.gmra.mrb[122].mxu1 %v994_v28  ;;  %3344 = vst [vmem:[#allocation7 + $0x100] sm:$0xff] %v3088_v35  ;;  %v544_v28 = vld [vmem:[#allocation7 + $0x1a0] sm:$0xff]  ;;  %v546_v30 = vld [vmem:[#allocation7 + $0x1b0] sm:$0xff] }
 0x34c   : > { %v3091_v43 = vadd.f32 %v2723_v40, %v527_v34  ;;  %3043 = vmatprep.mubr.f32.mxu1 %v999_v32  ;;  %3345 = vst [vmem:[#allocation7 + $0x108] sm:$0xff] %v3089_v39  ;;  %v1829_v47 = vpop.f32.mrb[18].mxu0  ;;  %v548_v40 = vld [vmem:[#allocation7 + $0x1c0] sm:$0xff] }
 0x34d   : > { %3346 = vst [vmem:[#allocation7 + $0x110] sm:$0xff] %v3090_v38  ;;  %v3092_v49 = vadd.f32 %v1829_v47, %v528_v41  ;;  %v1831_v51 = vpop.f32.mrb[19].mxu0  ;;  %2146 = vmatmul.mubr.f32.gmra.mrb[124].mxu0 %v998_v42 }
 0x34e   : > { %3347 = vst [vmem:[#allocation7 + $0x118] sm:$0xff] %v3091_v43  ;;  %v2727_v50 = vpop.f32.mrb[18].mxu1  ;;  %v3093_v53 = vadd.f32 %v1831_v51, %v529_v45  ;;  %2151 = vmatprep.mubr.f32.mxu0 %v1003_v46  ;;  %v549_v43 = vld [vmem:[#allocation7 + $0x1c8] sm:$0xff]  ;;  %v551_v45 = vld [vmem:[#allocation7 + $0x1d8] sm:$0xff] }
 0x34f   : > { %v3094_v52 = vadd.f32 %v2727_v50, %v530_v44  ;;  %v2729_v54 = vpop.f32.mrb[19].mxu1  ;;  %3044 = vmatmul.mubr.f32.gmra.mrb[124].mxu1 %v998_v42  ;;  %3348 = vst [vmem:[#allocation7 + $0x120] sm:$0xff] %v3092_v49  ;;  %v550_v42 = vld [vmem:[#allocation7 + $0x1d0] sm:$0xff] }
 0x350   : > { %v3095_v57 = vadd.f32 %v2729_v54, %v531_v48  ;;  %3049 = vmatprep.mubr.f32.mxu1 %v1003_v46  ;;  %3349 = vst [vmem:[#allocation7 + $0x128] sm:$0xff] %v3093_v53  ;;  %v1835_v60 = vpop.f32.mrb[20].mxu0  ;;  %v554_v54 = vld [vmem:[#allocation7 + $0x1f0] sm:$0xff] }
 0x351   : > { %3350 = vst [vmem:[#allocation7 + $0x130] sm:$0xff] %v3094_v52  ;;  %v3096_v62 = vadd.f32 %v1835_v60, %v532_v55  ;;  %v1837_v0 = vpop.f32.mrb[21].mxu0  ;;  %2152 = vmatmul.mubr.f32.gmra.mrb[126].mxu0 %v1002_v56  ;;  %v552_v52 = vld [vmem:[#allocation7 + $0x1e0] sm:$0xff]  ;;  %v553_v55 = vld [vmem:[#allocation7 + $0x1e8] sm:$0xff] }
 0x352   : > { %3351 = vst [vmem:[#allocation7 + $0x138] sm:$0xff] %v3095_v57  ;;  %v2733_v63 = vpop.f32.mrb[20].mxu1  ;;  %v3097_v2 = vadd.f32 %v1837_v0, %v533_v59  ;;  %v555_v57 = vld [vmem:[#allocation7 + $0x1f8] sm:$0xff]  ;;  %v556_v0 = vld [vmem:[#allocation7 + $0x200] sm:$0xff] }
 0x353   : > { %v3098_v1 = vadd.f32 %v2733_v63, %v534_v58  ;;  %v2735_v3 = vpop.f32.mrb[21].mxu1  ;;  %3050 = vmatmul.mubr.f32.gmra.mrb[126].mxu1 %v1002_v56  ;;  %3352 = vst [vmem:[#allocation7 + $0x140] sm:$0xff] %v3096_v62 }
 0x354   : > { %v3099_v5 = vadd.f32 %v2735_v3, %v535_v61  ;;  %3353 = vst [vmem:[#allocation7 + $0x148] sm:$0xff] %v3097_v2  ;;  %v1841_v8 = vpop.f32.mrb[22].mxu0  ;;  %v558_v2 = vld [vmem:[#allocation7 + $0x210] sm:$0xff]  ;;  %v557_v3 = vld [vmem:[#allocation7 + $0x208] sm:$0xff] }
 0x355   : > { %3354 = vst [vmem:[#allocation7 + $0x150] sm:$0xff] %v3098_v1  ;;  %v3100_v10 = vadd.f32 %v1841_v8, %v536_v4  ;;  %v1843_v12 = vpop.f32.mrb[23].mxu0 }
 0x356   : > { %3355 = vst [vmem:[#allocation7 + $0x158] sm:$0xff] %v3099_v5  ;;  %v2739_v11 = vpop.f32.mrb[22].mxu1  ;;  %v3101_v14 = vadd.f32 %v1843_v12, %v537_v7  ;;  %v559_v5 = vld [vmem:[#allocation7 + $0x218] sm:$0xff]  ;;  %v560_v12 = vld [vmem:[#allocation7 + $0x220] sm:$0xff] }
 0x357   : > { %v3102_v13 = vadd.f32 %v2739_v11, %v538_v6  ;;  %v2741_v15 = vpop.f32.mrb[23].mxu1  ;;  %3356 = vst [vmem:[#allocation7 + $0x160] sm:$0xff] %v3100_v10 }
 0x358   : > { %v3103_v17 = vadd.f32 %v2741_v15, %v539_v9  ;;  %3357 = vst [vmem:[#allocation7 + $0x168] sm:$0xff] %v3101_v14  ;;  %v1847_v20 = vpop.f32.mrb[24].mxu0  ;;  %v562_v14 = vld [vmem:[#allocation7 + $0x230] sm:$0xff]  ;;  %v561_v15 = vld [vmem:[#allocation7 + $0x228] sm:$0xff] }
 0x359   : > { %3358 = vst [vmem:[#allocation7 + $0x170] sm:$0xff] %v3102_v13  ;;  %v3104_v22 = vadd.f32 %v1847_v20, %v540_v16  ;;  %v1849_v24 = vpop.f32.mrb[25].mxu0 }
 0x35a   : > { %3359 = vst [vmem:[#allocation7 + $0x178] sm:$0xff] %v3103_v17  ;;  %v2745_v23 = vpop.f32.mrb[24].mxu1  ;;  %v3105_v26 = vadd.f32 %v1849_v24, %v541_v19  ;;  %v563_v17 = vld [vmem:[#allocation7 + $0x238] sm:$0xff]  ;;  %v564_v24 = vld [vmem:[#allocation7 + $0x240] sm:$0xff] }
 0x35b   : > { %v3106_v25 = vadd.f32 %v2745_v23, %v542_v18  ;;  %v2747_v27 = vpop.f32.mrb[25].mxu1  ;;  %3360 = vst [vmem:[#allocation7 + $0x180] sm:$0xff] %v3104_v22 }
 0x35c   : > { %v3107_v29 = vadd.f32 %v2747_v27, %v543_v21  ;;  %3361 = vst [vmem:[#allocation7 + $0x188] sm:$0xff] %v3105_v26  ;;  %v1853_v32 = vpop.f32.mrb[26].mxu0  ;;  %v566_v26 = vld [vmem:[#allocation7 + $0x250] sm:$0xff]  ;;  %v565_v27 = vld [vmem:[#allocation7 + $0x248] sm:$0xff] }
 0x35d   : > { %3362 = vst [vmem:[#allocation7 + $0x190] sm:$0xff] %v3106_v25  ;;  %v3108_v34 = vadd.f32 %v1853_v32, %v544_v28  ;;  %v1855_v36 = vpop.f32.mrb[27].mxu0 }
 0x35e   : > { %3363 = vst [vmem:[#allocation7 + $0x198] sm:$0xff] %v3107_v29  ;;  %v2751_v35 = vpop.f32.mrb[26].mxu1  ;;  %v3109_v38 = vadd.f32 %v1855_v36, %v545_v31  ;;  %v567_v29 = vld [vmem:[#allocation7 + $0x258] sm:$0xff]  ;;  %v568_v36 = vld [vmem:[#allocation7 + $0x260] sm:$0xff] }
 0x35f   : > { %v3110_v37 = vadd.f32 %v2751_v35, %v546_v30  ;;  %v2753_v39 = vpop.f32.mrb[27].mxu1  ;;  %3364 = vst [vmem:[#allocation7 + $0x1a0] sm:$0xff] %v3108_v34 }
 0x360   : > { %v3111_v41 = vadd.f32 %v2753_v39, %v547_v33  ;;  %3365 = vst [vmem:[#allocation7 + $0x1a8] sm:$0xff] %v3109_v38  ;;  %v1859_v44 = vpop.f32.mrb[28].mxu0  ;;  %v570_v38 = vld [vmem:[#allocation7 + $0x270] sm:$0xff]  ;;  %v569_v39 = vld [vmem:[#allocation7 + $0x268] sm:$0xff] }
 0x361   : > { %3366 = vst [vmem:[#allocation7 + $0x1b0] sm:$0xff] %v3110_v37  ;;  %v3112_v46 = vadd.f32 %v1859_v44, %v548_v40  ;;  %v1861_v48 = vpop.f32.mrb[29].mxu0 }
 0x362   : > { %3367 = vst [vmem:[#allocation7 + $0x1b8] sm:$0xff] %v3111_v41  ;;  %v2757_v47 = vpop.f32.mrb[28].mxu1  ;;  %v3113_v50 = vadd.f32 %v1861_v48, %v549_v43  ;;  %v571_v41 = vld [vmem:[#allocation7 + $0x278] sm:$0xff]  ;;  %v572_v48 = vld [vmem:[#allocation7 + $0x280] sm:$0xff] }
 0x363   : > { %v3114_v49 = vadd.f32 %v2757_v47, %v550_v42  ;;  %v2759_v51 = vpop.f32.mrb[29].mxu1  ;;  %3368 = vst [vmem:[#allocation7 + $0x1c0] sm:$0xff] %v3112_v46 }
 0x364   : > { %v3115_v53 = vadd.f32 %v2759_v51, %v551_v45  ;;  %3369 = vst [vmem:[#allocation7 + $0x1c8] sm:$0xff] %v3113_v50  ;;  %v1865_v56 = vpop.f32.mrb[30].mxu0  ;;  %v574_v50 = vld [vmem:[#allocation7 + $0x290] sm:$0xff]  ;;  %v573_v51 = vld [vmem:[#allocation7 + $0x288] sm:$0xff] }
 0x365   : > { %3370 = vst [vmem:[#allocation7 + $0x1d0] sm:$0xff] %v3114_v49  ;;  %v3116_v58 = vadd.f32 %v1865_v56, %v552_v52  ;;  %v1867_v60 = vpop.f32.mrb[31].mxu0 }
 0x366   : > { %3371 = vst [vmem:[#allocation7 + $0x1d8] sm:$0xff] %v3115_v53  ;;  %v2763_v59 = vpop.f32.mrb[30].mxu1  ;;  %v3117_v62 = vadd.f32 %v1867_v60, %v553_v55  ;;  %v575_v53 = vld [vmem:[#allocation7 + $0x298] sm:$0xff]  ;;  %v576_v60 = vld [vmem:[#allocation7 + $0x2a0] sm:$0xff] }
 0x367   : > { %v3118_v61 = vadd.f32 %v2763_v59, %v554_v54  ;;  %v2765_v63 = vpop.f32.mrb[31].mxu1  ;;  %3372 = vst [vmem:[#allocation7 + $0x1e0] sm:$0xff] %v3116_v58 }
 0x368   : > { %v3119_v1 = vadd.f32 %v2765_v63, %v555_v57  ;;  %3373 = vst [vmem:[#allocation7 + $0x1e8] sm:$0xff] %v3117_v62  ;;  %v1871_v4 = vpop.f32.mrb[32].mxu0  ;;  %v578_v62 = vld [vmem:[#allocation7 + $0x2b0] sm:$0xff]  ;;  %v577_v63 = vld [vmem:[#allocation7 + $0x2a8] sm:$0xff] }
 0x369   : > { %3374 = vst [vmem:[#allocation7 + $0x1f0] sm:$0xff] %v3118_v61  ;;  %v3120_v6 = vadd.f32 %v1871_v4, %v556_v0  ;;  %v1873_v8 = vpop.f32.mrb[33].mxu0 }
 0x36a   : > { %3375 = vst [vmem:[#allocation7 + $0x1f8] sm:$0xff] %v3119_v1  ;;  %v2769_v7 = vpop.f32.mrb[32].mxu1  ;;  %v3121_v10 = vadd.f32 %v1873_v8, %v557_v3  ;;  %v579_v1 = vld [vmem:[#allocation7 + $0x2b8] sm:$0xff]  ;;  %v580_v8 = vld [vmem:[#allocation7 + $0x2c0] sm:$0xff] }
 0x36b   : > { %v3122_v9 = vadd.f32 %v2769_v7, %v558_v2  ;;  %v2771_v11 = vpop.f32.mrb[33].mxu1  ;;  %3376 = vst [vmem:[#allocation7 + $0x200] sm:$0xff] %v3120_v6 }
 0x36c   : > { %v3123_v13 = vadd.f32 %v2771_v11, %v559_v5  ;;  %3377 = vst [vmem:[#allocation7 + $0x208] sm:$0xff] %v3121_v10  ;;  %v1877_v16 = vpop.f32.mrb[34].mxu0  ;;  %v582_v10 = vld [vmem:[#allocation7 + $0x2d0] sm:$0xff]  ;;  %v581_v11 = vld [vmem:[#allocation7 + $0x2c8] sm:$0xff] }
 0x36d   : > { %3378 = vst [vmem:[#allocation7 + $0x210] sm:$0xff] %v3122_v9  ;;  %v3124_v18 = vadd.f32 %v1877_v16, %v560_v12  ;;  %v1879_v20 = vpop.f32.mrb[35].mxu0 }
 0x36e   : > { %3379 = vst [vmem:[#allocation7 + $0x218] sm:$0xff] %v3123_v13  ;;  %v2775_v19 = vpop.f32.mrb[34].mxu1  ;;  %v3125_v22 = vadd.f32 %v1879_v20, %v561_v15  ;;  %v583_v13 = vld [vmem:[#allocation7 + $0x2d8] sm:$0xff]  ;;  %v584_v20 = vld [vmem:[#allocation7 + $0x2e0] sm:$0xff] }
 0x36f   : > { %v3126_v21 = vadd.f32 %v2775_v19, %v562_v14  ;;  %v2777_v23 = vpop.f32.mrb[35].mxu1  ;;  %3380 = vst [vmem:[#allocation7 + $0x220] sm:$0xff] %v3124_v18 }
 0x370   : > { %v3127_v25 = vadd.f32 %v2777_v23, %v563_v17  ;;  %3381 = vst [vmem:[#allocation7 + $0x228] sm:$0xff] %v3125_v22  ;;  %v1883_v28 = vpop.f32.mrb[36].mxu0  ;;  %v586_v22 = vld [vmem:[#allocation7 + $0x2f0] sm:$0xff]  ;;  %v585_v23 = vld [vmem:[#allocation7 + $0x2e8] sm:$0xff] }
 0x371   : > { %3382 = vst [vmem:[#allocation7 + $0x230] sm:$0xff] %v3126_v21  ;;  %v3128_v30 = vadd.f32 %v1883_v28, %v564_v24  ;;  %v1885_v32 = vpop.f32.mrb[37].mxu0 }
 0x372   : > { %3383 = vst [vmem:[#allocation7 + $0x238] sm:$0xff] %v3127_v25  ;;  %v2781_v31 = vpop.f32.mrb[36].mxu1  ;;  %v3129_v34 = vadd.f32 %v1885_v32, %v565_v27  ;;  %v587_v25 = vld [vmem:[#allocation7 + $0x2f8] sm:$0xff]  ;;  %v588_v32 = vld [vmem:[#allocation7 + $0x300] sm:$0xff] }
 0x373   : > { %v3130_v33 = vadd.f32 %v2781_v31, %v566_v26  ;;  %v2783_v35 = vpop.f32.mrb[37].mxu1  ;;  %3384 = vst [vmem:[#allocation7 + $0x240] sm:$0xff] %v3128_v30 }
 0x374   : > { %v3131_v37 = vadd.f32 %v2783_v35, %v567_v29  ;;  %3385 = vst [vmem:[#allocation7 + $0x248] sm:$0xff] %v3129_v34  ;;  %v1889_v40 = vpop.f32.mrb[38].mxu0  ;;  %v590_v34 = vld [vmem:[#allocation7 + $0x310] sm:$0xff]  ;;  %v589_v35 = vld [vmem:[#allocation7 + $0x308] sm:$0xff] }
 0x375   : > { %3386 = vst [vmem:[#allocation7 + $0x250] sm:$0xff] %v3130_v33  ;;  %v3132_v42 = vadd.f32 %v1889_v40, %v568_v36  ;;  %v1891_v44 = vpop.f32.mrb[39].mxu0 }
 0x376   : > { %3387 = vst [vmem:[#allocation7 + $0x258] sm:$0xff] %v3131_v37  ;;  %v2787_v43 = vpop.f32.mrb[38].mxu1  ;;  %v3133_v46 = vadd.f32 %v1891_v44, %v569_v39  ;;  %v591_v37 = vld [vmem:[#allocation7 + $0x318] sm:$0xff]  ;;  %v592_v44 = vld [vmem:[#allocation7 + $0x320] sm:$0xff] }
 0x377   : > { %v3134_v45 = vadd.f32 %v2787_v43, %v570_v38  ;;  %v2789_v47 = vpop.f32.mrb[39].mxu1  ;;  %3388 = vst [vmem:[#allocation7 + $0x260] sm:$0xff] %v3132_v42 }
 0x378   : > { %v3135_v49 = vadd.f32 %v2789_v47, %v571_v41  ;;  %3389 = vst [vmem:[#allocation7 + $0x268] sm:$0xff] %v3133_v46  ;;  %v1895_v52 = vpop.f32.mrb[40].mxu0  ;;  %v594_v46 = vld [vmem:[#allocation7 + $0x330] sm:$0xff]  ;;  %v593_v47 = vld [vmem:[#allocation7 + $0x328] sm:$0xff] }
 0x379   : > { %3390 = vst [vmem:[#allocation7 + $0x270] sm:$0xff] %v3134_v45  ;;  %v3136_v54 = vadd.f32 %v1895_v52, %v572_v48  ;;  %v1897_v56 = vpop.f32.mrb[41].mxu0 }
 0x37a   : > { %3391 = vst [vmem:[#allocation7 + $0x278] sm:$0xff] %v3135_v49  ;;  %v2793_v55 = vpop.f32.mrb[40].mxu1  ;;  %v3137_v58 = vadd.f32 %v1897_v56, %v573_v51  ;;  %v595_v49 = vld [vmem:[#allocation7 + $0x338] sm:$0xff]  ;;  %v596_v56 = vld [vmem:[#allocation7 + $0x340] sm:$0xff] }
 0x37b   : > { %v3138_v57 = vadd.f32 %v2793_v55, %v574_v50  ;;  %v2795_v59 = vpop.f32.mrb[41].mxu1  ;;  %3392 = vst [vmem:[#allocation7 + $0x280] sm:$0xff] %v3136_v54 }
 0x37c   : > { %v3139_v61 = vadd.f32 %v2795_v59, %v575_v53  ;;  %3393 = vst [vmem:[#allocation7 + $0x288] sm:$0xff] %v3137_v58  ;;  %v1901_v0 = vpop.f32.mrb[42].mxu0  ;;  %v598_v58 = vld [vmem:[#allocation7 + $0x350] sm:$0xff]  ;;  %v597_v59 = vld [vmem:[#allocation7 + $0x348] sm:$0xff] }
 0x37d   : > { %3394 = vst [vmem:[#allocation7 + $0x290] sm:$0xff] %v3138_v57  ;;  %v3140_v2 = vadd.f32 %v1901_v0, %v576_v60  ;;  %v1903_v4 = vpop.f32.mrb[43].mxu0 }
 0x37e   : > { %3395 = vst [vmem:[#allocation7 + $0x298] sm:$0xff] %v3139_v61  ;;  %v2799_v3 = vpop.f32.mrb[42].mxu1  ;;  %v3141_v6 = vadd.f32 %v1903_v4, %v577_v63  ;;  %v599_v61 = vld [vmem:[#allocation7 + $0x358] sm:$0xff]  ;;  %v600_v4 = vld [vmem:[#allocation7 + $0x360] sm:$0xff] }
 0x37f   : > { %v3142_v5 = vadd.f32 %v2799_v3, %v578_v62  ;;  %v2801_v7 = vpop.f32.mrb[43].mxu1  ;;  %3396 = vst [vmem:[#allocation7 + $0x2a0] sm:$0xff] %v3140_v2 }
 0x380   : > { %v3143_v9 = vadd.f32 %v2801_v7, %v579_v1  ;;  %3397 = vst [vmem:[#allocation7 + $0x2a8] sm:$0xff] %v3141_v6  ;;  %v1907_v12 = vpop.f32.mrb[44].mxu0  ;;  %v602_v6 = vld [vmem:[#allocation7 + $0x370] sm:$0xff]  ;;  %v601_v7 = vld [vmem:[#allocation7 + $0x368] sm:$0xff] }
 0x381   : > { %3398 = vst [vmem:[#allocation7 + $0x2b0] sm:$0xff] %v3142_v5  ;;  %v3144_v14 = vadd.f32 %v1907_v12, %v580_v8  ;;  %v1909_v16 = vpop.f32.mrb[45].mxu0 }
 0x382   : > { %3399 = vst [vmem:[#allocation7 + $0x2b8] sm:$0xff] %v3143_v9  ;;  %v2805_v15 = vpop.f32.mrb[44].mxu1  ;;  %v3145_v18 = vadd.f32 %v1909_v16, %v581_v11  ;;  %v603_v9 = vld [vmem:[#allocation7 + $0x378] sm:$0xff]  ;;  %v604_v16 = vld [vmem:[#allocation7 + $0x380] sm:$0xff] }
 0x383   : > { %v3146_v17 = vadd.f32 %v2805_v15, %v582_v10  ;;  %v2807_v19 = vpop.f32.mrb[45].mxu1  ;;  %3400 = vst [vmem:[#allocation7 + $0x2c0] sm:$0xff] %v3144_v14 }
 0x384   : > { %v3147_v21 = vadd.f32 %v2807_v19, %v583_v13  ;;  %3401 = vst [vmem:[#allocation7 + $0x2c8] sm:$0xff] %v3145_v18  ;;  %v1913_v24 = vpop.f32.mrb[46].mxu0  ;;  %v606_v18 = vld [vmem:[#allocation7 + $0x390] sm:$0xff]  ;;  %v605_v19 = vld [vmem:[#allocation7 + $0x388] sm:$0xff] }
 0x385   : > { %3402 = vst [vmem:[#allocation7 + $0x2d0] sm:$0xff] %v3146_v17  ;;  %v3148_v26 = vadd.f32 %v1913_v24, %v584_v20  ;;  %v1915_v28 = vpop.f32.mrb[47].mxu0 }
 0x386   : > { %3403 = vst [vmem:[#allocation7 + $0x2d8] sm:$0xff] %v3147_v21  ;;  %v2811_v27 = vpop.f32.mrb[46].mxu1  ;;  %v3149_v30 = vadd.f32 %v1915_v28, %v585_v23  ;;  %v607_v21 = vld [vmem:[#allocation7 + $0x398] sm:$0xff]  ;;  %v608_v28 = vld [vmem:[#allocation7 + $0x3a0] sm:$0xff] }
 0x387   : > { %v3150_v29 = vadd.f32 %v2811_v27, %v586_v22  ;;  %v2813_v31 = vpop.f32.mrb[47].mxu1  ;;  %3404 = vst [vmem:[#allocation7 + $0x2e0] sm:$0xff] %v3148_v26 }
 0x388   : > { %v3151_v33 = vadd.f32 %v2813_v31, %v587_v25  ;;  %3405 = vst [vmem:[#allocation7 + $0x2e8] sm:$0xff] %v3149_v30  ;;  %v1919_v36 = vpop.f32.mrb[48].mxu0  ;;  %v610_v30 = vld [vmem:[#allocation7 + $0x3b0] sm:$0xff]  ;;  %v609_v31 = vld [vmem:[#allocation7 + $0x3a8] sm:$0xff] }
 0x389   : > { %3406 = vst [vmem:[#allocation7 + $0x2f0] sm:$0xff] %v3150_v29  ;;  %v3152_v38 = vadd.f32 %v1919_v36, %v588_v32  ;;  %v1921_v40 = vpop.f32.mrb[49].mxu0 }
 0x38a   : > { %3407 = vst [vmem:[#allocation7 + $0x2f8] sm:$0xff] %v3151_v33  ;;  %v2817_v39 = vpop.f32.mrb[48].mxu1  ;;  %v3153_v42 = vadd.f32 %v1921_v40, %v589_v35  ;;  %v611_v33 = vld [vmem:[#allocation7 + $0x3b8] sm:$0xff]  ;;  %v612_v40 = vld [vmem:[#allocation7 + $0x3c0] sm:$0xff] }
 0x38b   : > { %v3154_v41 = vadd.f32 %v2817_v39, %v590_v34  ;;  %v2819_v43 = vpop.f32.mrb[49].mxu1  ;;  %3408 = vst [vmem:[#allocation7 + $0x300] sm:$0xff] %v3152_v38 }
 0x38c   : > { %v3155_v45 = vadd.f32 %v2819_v43, %v591_v37  ;;  %3409 = vst [vmem:[#allocation7 + $0x308] sm:$0xff] %v3153_v42  ;;  %v1925_v48 = vpop.f32.mrb[50].mxu0  ;;  %v614_v42 = vld [vmem:[#allocation7 + $0x3d0] sm:$0xff]  ;;  %v613_v43 = vld [vmem:[#allocation7 + $0x3c8] sm:$0xff] }
 0x38d   : > { %3410 = vst [vmem:[#allocation7 + $0x310] sm:$0xff] %v3154_v41  ;;  %v3156_v50 = vadd.f32 %v1925_v48, %v592_v44  ;;  %v1927_v52 = vpop.f32.mrb[51].mxu0 }
 0x38e   : > { %3411 = vst [vmem:[#allocation7 + $0x318] sm:$0xff] %v3155_v45  ;;  %v2823_v51 = vpop.f32.mrb[50].mxu1  ;;  %v3157_v54 = vadd.f32 %v1927_v52, %v593_v47  ;;  %v615_v45 = vld [vmem:[#allocation7 + $0x3d8] sm:$0xff]  ;;  %v616_v52 = vld [vmem:[#allocation7 + $0x3e0] sm:$0xff] }
 0x38f   : > { %v3158_v53 = vadd.f32 %v2823_v51, %v594_v46  ;;  %v2825_v55 = vpop.f32.mrb[51].mxu1  ;;  %3412 = vst [vmem:[#allocation7 + $0x320] sm:$0xff] %v3156_v50 }
 0x390   : > { %v3159_v57 = vadd.f32 %v2825_v55, %v595_v49  ;;  %3413 = vst [vmem:[#allocation7 + $0x328] sm:$0xff] %v3157_v54  ;;  %v1931_v60 = vpop.f32.mrb[52].mxu0  ;;  %v618_v54 = vld [vmem:[#allocation7 + $0x3f0] sm:$0xff]  ;;  %v617_v55 = vld [vmem:[#allocation7 + $0x3e8] sm:$0xff] }
 0x391   : > { %3414 = vst [vmem:[#allocation7 + $0x330] sm:$0xff] %v3158_v53  ;;  %v3160_v62 = vadd.f32 %v1931_v60, %v596_v56  ;;  %v1933_v0 = vpop.f32.mrb[53].mxu0 }
 0x392   : > { %3415 = vst [vmem:[#allocation7 + $0x338] sm:$0xff] %v3159_v57  ;;  %v2829_v63 = vpop.f32.mrb[52].mxu1  ;;  %v3161_v2 = vadd.f32 %v1933_v0, %v597_v59  ;;  %v619_v57 = vld [vmem:[#allocation7 + $0x3f8] sm:$0xff]  ;;  %v620_v0 = vld [vmem:[#allocation7 + $0x400] sm:$0xff] }
 0x393   : > { %v3162_v1 = vadd.f32 %v2829_v63, %v598_v58  ;;  %v2831_v3 = vpop.f32.mrb[53].mxu1  ;;  %3416 = vst [vmem:[#allocation7 + $0x340] sm:$0xff] %v3160_v62 }
 0x394   : > { %v3163_v5 = vadd.f32 %v2831_v3, %v599_v61  ;;  %3417 = vst [vmem:[#allocation7 + $0x348] sm:$0xff] %v3161_v2  ;;  %v1937_v8 = vpop.f32.mrb[54].mxu0  ;;  %v622_v2 = vld [vmem:[#allocation7 + $0x410] sm:$0xff]  ;;  %v621_v3 = vld [vmem:[#allocation7 + $0x408] sm:$0xff] }
 0x395   : > { %3418 = vst [vmem:[#allocation7 + $0x350] sm:$0xff] %v3162_v1  ;;  %v3164_v10 = vadd.f32 %v1937_v8, %v600_v4  ;;  %v1939_v12 = vpop.f32.mrb[55].mxu0 }
 0x396   : > { %3419 = vst [vmem:[#allocation7 + $0x358] sm:$0xff] %v3163_v5  ;;  %v2835_v11 = vpop.f32.mrb[54].mxu1  ;;  %v3165_v14 = vadd.f32 %v1939_v12, %v601_v7  ;;  %v623_v5 = vld [vmem:[#allocation7 + $0x418] sm:$0xff]  ;;  %v624_v12 = vld [vmem:[#allocation7 + $0x420] sm:$0xff] }
 0x397   : > { %v3166_v13 = vadd.f32 %v2835_v11, %v602_v6  ;;  %v2837_v15 = vpop.f32.mrb[55].mxu1  ;;  %3420 = vst [vmem:[#allocation7 + $0x360] sm:$0xff] %v3164_v10 }
 0x398   : > { %v3167_v17 = vadd.f32 %v2837_v15, %v603_v9  ;;  %3421 = vst [vmem:[#allocation7 + $0x368] sm:$0xff] %v3165_v14  ;;  %v1943_v20 = vpop.f32.mrb[56].mxu0  ;;  %v626_v14 = vld [vmem:[#allocation7 + $0x430] sm:$0xff]  ;;  %v625_v15 = vld [vmem:[#allocation7 + $0x428] sm:$0xff] }
 0x399   : > { %3422 = vst [vmem:[#allocation7 + $0x370] sm:$0xff] %v3166_v13  ;;  %v3168_v22 = vadd.f32 %v1943_v20, %v604_v16  ;;  %v1945_v24 = vpop.f32.mrb[57].mxu0 }
 0x39a   : > { %3423 = vst [vmem:[#allocation7 + $0x378] sm:$0xff] %v3167_v17  ;;  %v2841_v23 = vpop.f32.mrb[56].mxu1  ;;  %v3169_v26 = vadd.f32 %v1945_v24, %v605_v19  ;;  %v627_v17 = vld [vmem:[#allocation7 + $0x438] sm:$0xff]  ;;  %v628_v24 = vld [vmem:[#allocation7 + $0x440] sm:$0xff] }
 0x39b   : > { %v3170_v25 = vadd.f32 %v2841_v23, %v606_v18  ;;  %v2843_v27 = vpop.f32.mrb[57].mxu1  ;;  %3424 = vst [vmem:[#allocation7 + $0x380] sm:$0xff] %v3168_v22 }
 0x39c   : > { %v3171_v29 = vadd.f32 %v2843_v27, %v607_v21  ;;  %3425 = vst [vmem:[#allocation7 + $0x388] sm:$0xff] %v3169_v26  ;;  %v1949_v32 = vpop.f32.mrb[58].mxu0  ;;  %v630_v26 = vld [vmem:[#allocation7 + $0x450] sm:$0xff]  ;;  %v629_v27 = vld [vmem:[#allocation7 + $0x448] sm:$0xff] }
 0x39d   : > { %3426 = vst [vmem:[#allocation7 + $0x390] sm:$0xff] %v3170_v25  ;;  %v3172_v34 = vadd.f32 %v1949_v32, %v608_v28  ;;  %v1951_v36 = vpop.f32.mrb[59].mxu0 }
 0x39e   : > { %3427 = vst [vmem:[#allocation7 + $0x398] sm:$0xff] %v3171_v29  ;;  %v2847_v35 = vpop.f32.mrb[58].mxu1  ;;  %v3173_v38 = vadd.f32 %v1951_v36, %v609_v31  ;;  %v631_v29 = vld [vmem:[#allocation7 + $0x458] sm:$0xff]  ;;  %v632_v36 = vld [vmem:[#allocation7 + $0x460] sm:$0xff] }
 0x39f   : > { %v3174_v37 = vadd.f32 %v2847_v35, %v610_v30  ;;  %v2849_v39 = vpop.f32.mrb[59].mxu1  ;;  %3428 = vst [vmem:[#allocation7 + $0x3a0] sm:$0xff] %v3172_v34 }
 0x3a0   : > { %v3175_v41 = vadd.f32 %v2849_v39, %v611_v33  ;;  %3429 = vst [vmem:[#allocation7 + $0x3a8] sm:$0xff] %v3173_v38  ;;  %v1955_v44 = vpop.f32.mrb[60].mxu0  ;;  %v634_v38 = vld [vmem:[#allocation7 + $0x470] sm:$0xff]  ;;  %v633_v39 = vld [vmem:[#allocation7 + $0x468] sm:$0xff] }
 0x3a1   : > { %3430 = vst [vmem:[#allocation7 + $0x3b0] sm:$0xff] %v3174_v37  ;;  %v3176_v46 = vadd.f32 %v1955_v44, %v612_v40  ;;  %v1957_v48 = vpop.f32.mrb[61].mxu0 }
 0x3a2   : > { %3431 = vst [vmem:[#allocation7 + $0x3b8] sm:$0xff] %v3175_v41  ;;  %v2853_v47 = vpop.f32.mrb[60].mxu1  ;;  %v3177_v50 = vadd.f32 %v1957_v48, %v613_v43  ;;  %v635_v41 = vld [vmem:[#allocation7 + $0x478] sm:$0xff]  ;;  %v636_v48 = vld [vmem:[#allocation7 + $0x480] sm:$0xff] }
 0x3a3   : > { %v3178_v49 = vadd.f32 %v2853_v47, %v614_v42  ;;  %v2855_v51 = vpop.f32.mrb[61].mxu1  ;;  %3432 = vst [vmem:[#allocation7 + $0x3c0] sm:$0xff] %v3176_v46 }
 0x3a4   : > { %v3179_v53 = vadd.f32 %v2855_v51, %v615_v45  ;;  %3433 = vst [vmem:[#allocation7 + $0x3c8] sm:$0xff] %v3177_v50  ;;  %v1961_v56 = vpop.f32.mrb[62].mxu0  ;;  %v638_v50 = vld [vmem:[#allocation7 + $0x490] sm:$0xff]  ;;  %v637_v51 = vld [vmem:[#allocation7 + $0x488] sm:$0xff] }
 0x3a5   : > { %3434 = vst [vmem:[#allocation7 + $0x3d0] sm:$0xff] %v3178_v49  ;;  %v3180_v58 = vadd.f32 %v1961_v56, %v616_v52  ;;  %v1963_v60 = vpop.f32.mrb[63].mxu0 }
 0x3a6   : > { %3435 = vst [vmem:[#allocation7 + $0x3d8] sm:$0xff] %v3179_v53  ;;  %v2859_v59 = vpop.f32.mrb[62].mxu1  ;;  %v3181_v62 = vadd.f32 %v1963_v60, %v617_v55  ;;  %v639_v53 = vld [vmem:[#allocation7 + $0x498] sm:$0xff]  ;;  %v640_v60 = vld [vmem:[#allocation7 + $0x4a0] sm:$0xff] }
 0x3a7   : > { %v3182_v61 = vadd.f32 %v2859_v59, %v618_v54  ;;  %v2861_v63 = vpop.f32.mrb[63].mxu1  ;;  %3436 = vst [vmem:[#allocation7 + $0x3e0] sm:$0xff] %v3180_v58 }
 0x3a8   : > { %v3183_v1 = vadd.f32 %v2861_v63, %v619_v57  ;;  %3437 = vst [vmem:[#allocation7 + $0x3e8] sm:$0xff] %v3181_v62  ;;  %v1967_v4 = vpop.f32.mrb[64].mxu0  ;;  %v642_v62 = vld [vmem:[#allocation7 + $0x4b0] sm:$0xff]  ;;  %v641_v63 = vld [vmem:[#allocation7 + $0x4a8] sm:$0xff] }
 0x3a9   : > { %3438 = vst [vmem:[#allocation7 + $0x3f0] sm:$0xff] %v3182_v61  ;;  %v3184_v6 = vadd.f32 %v1967_v4, %v620_v0  ;;  %v1969_v8 = vpop.f32.mrb[65].mxu0 }
 0x3aa   : > { %3439 = vst [vmem:[#allocation7 + $0x3f8] sm:$0xff] %v3183_v1  ;;  %v2865_v7 = vpop.f32.mrb[64].mxu1  ;;  %v3185_v10 = vadd.f32 %v1969_v8, %v621_v3  ;;  %v643_v1 = vld [vmem:[#allocation7 + $0x4b8] sm:$0xff]  ;;  %v644_v8 = vld [vmem:[#allocation7 + $0x4c0] sm:$0xff] }
 0x3ab   : > { %v3186_v9 = vadd.f32 %v2865_v7, %v622_v2  ;;  %v2867_v11 = vpop.f32.mrb[65].mxu1  ;;  %3440 = vst [vmem:[#allocation7 + $0x400] sm:$0xff] %v3184_v6 }
 0x3ac   : > { %v3187_v13 = vadd.f32 %v2867_v11, %v623_v5  ;;  %3441 = vst [vmem:[#allocation7 + $0x408] sm:$0xff] %v3185_v10  ;;  %v1973_v16 = vpop.f32.mrb[66].mxu0  ;;  %v646_v10 = vld [vmem:[#allocation7 + $0x4d0] sm:$0xff]  ;;  %v645_v11 = vld [vmem:[#allocation7 + $0x4c8] sm:$0xff] }
 0x3ad   : > { %3442 = vst [vmem:[#allocation7 + $0x410] sm:$0xff] %v3186_v9  ;;  %v3188_v18 = vadd.f32 %v1973_v16, %v624_v12  ;;  %v1975_v20 = vpop.f32.mrb[67].mxu0 }
 0x3ae   : > { %3443 = vst [vmem:[#allocation7 + $0x418] sm:$0xff] %v3187_v13  ;;  %v2871_v19 = vpop.f32.mrb[66].mxu1  ;;  %v3189_v22 = vadd.f32 %v1975_v20, %v625_v15  ;;  %v647_v13 = vld [vmem:[#allocation7 + $0x4d8] sm:$0xff]  ;;  %v648_v20 = vld [vmem:[#allocation7 + $0x4e0] sm:$0xff] }
 0x3af   : > { %v3190_v21 = vadd.f32 %v2871_v19, %v626_v14  ;;  %v2873_v23 = vpop.f32.mrb[67].mxu1  ;;  %3444 = vst [vmem:[#allocation7 + $0x420] sm:$0xff] %v3188_v18 }
 0x3b0   : > { %v3191_v25 = vadd.f32 %v2873_v23, %v627_v17  ;;  %3445 = vst [vmem:[#allocation7 + $0x428] sm:$0xff] %v3189_v22  ;;  %v1979_v28 = vpop.f32.mrb[68].mxu0  ;;  %v650_v22 = vld [vmem:[#allocation7 + $0x4f0] sm:$0xff]  ;;  %v649_v23 = vld [vmem:[#allocation7 + $0x4e8] sm:$0xff] }
 0x3b1   : > { %3446 = vst [vmem:[#allocation7 + $0x430] sm:$0xff] %v3190_v21  ;;  %v3192_v30 = vadd.f32 %v1979_v28, %v628_v24  ;;  %v1981_v32 = vpop.f32.mrb[69].mxu0 }
 0x3b2   : > { %3447 = vst [vmem:[#allocation7 + $0x438] sm:$0xff] %v3191_v25  ;;  %v2877_v31 = vpop.f32.mrb[68].mxu1  ;;  %v3193_v34 = vadd.f32 %v1981_v32, %v629_v27  ;;  %v651_v25 = vld [vmem:[#allocation7 + $0x4f8] sm:$0xff]  ;;  %v652_v32 = vld [vmem:[#allocation7 + $0x500] sm:$0xff] }
 0x3b3   : > { %v3194_v33 = vadd.f32 %v2877_v31, %v630_v26  ;;  %v2879_v35 = vpop.f32.mrb[69].mxu1  ;;  %3448 = vst [vmem:[#allocation7 + $0x440] sm:$0xff] %v3192_v30 }
 0x3b4   : > { %v3195_v37 = vadd.f32 %v2879_v35, %v631_v29  ;;  %3449 = vst [vmem:[#allocation7 + $0x448] sm:$0xff] %v3193_v34  ;;  %v1985_v40 = vpop.f32.mrb[70].mxu0  ;;  %v654_v34 = vld [vmem:[#allocation7 + $0x510] sm:$0xff]  ;;  %v653_v35 = vld [vmem:[#allocation7 + $0x508] sm:$0xff] }
 0x3b5   : > { %3450 = vst [vmem:[#allocation7 + $0x450] sm:$0xff] %v3194_v33  ;;  %v3196_v42 = vadd.f32 %v1985_v40, %v632_v36  ;;  %v1987_v44 = vpop.f32.mrb[71].mxu0 }
 0x3b6   : > { %3451 = vst [vmem:[#allocation7 + $0x458] sm:$0xff] %v3195_v37  ;;  %v2883_v43 = vpop.f32.mrb[70].mxu1  ;;  %v3197_v46 = vadd.f32 %v1987_v44, %v633_v39  ;;  %v655_v37 = vld [vmem:[#allocation7 + $0x518] sm:$0xff]  ;;  %v656_v44 = vld [vmem:[#allocation7 + $0x520] sm:$0xff] }
 0x3b7   : > { %v3198_v45 = vadd.f32 %v2883_v43, %v634_v38  ;;  %v2885_v47 = vpop.f32.mrb[71].mxu1  ;;  %3452 = vst [vmem:[#allocation7 + $0x460] sm:$0xff] %v3196_v42 }
 0x3b8   : > { %v3199_v49 = vadd.f32 %v2885_v47, %v635_v41  ;;  %3453 = vst [vmem:[#allocation7 + $0x468] sm:$0xff] %v3197_v46  ;;  %v1991_v52 = vpop.f32.mrb[72].mxu0  ;;  %v658_v46 = vld [vmem:[#allocation7 + $0x530] sm:$0xff]  ;;  %v657_v47 = vld [vmem:[#allocation7 + $0x528] sm:$0xff] }
 0x3b9   : > { %3454 = vst [vmem:[#allocation7 + $0x470] sm:$0xff] %v3198_v45  ;;  %v3200_v54 = vadd.f32 %v1991_v52, %v636_v48  ;;  %v1993_v56 = vpop.f32.mrb[73].mxu0 }
 0x3ba   : > { %3455 = vst [vmem:[#allocation7 + $0x478] sm:$0xff] %v3199_v49  ;;  %v2889_v55 = vpop.f32.mrb[72].mxu1  ;;  %v3201_v58 = vadd.f32 %v1993_v56, %v637_v51  ;;  %v659_v49 = vld [vmem:[#allocation7 + $0x538] sm:$0xff]  ;;  %v660_v56 = vld [vmem:[#allocation7 + $0x540] sm:$0xff] }
 0x3bb   : > { %v3202_v57 = vadd.f32 %v2889_v55, %v638_v50  ;;  %v2891_v59 = vpop.f32.mrb[73].mxu1  ;;  %3456 = vst [vmem:[#allocation7 + $0x480] sm:$0xff] %v3200_v54 }
 0x3bc   : > { %v3203_v61 = vadd.f32 %v2891_v59, %v639_v53  ;;  %3457 = vst [vmem:[#allocation7 + $0x488] sm:$0xff] %v3201_v58  ;;  %v1997_v0 = vpop.f32.mrb[74].mxu0  ;;  %v662_v58 = vld [vmem:[#allocation7 + $0x550] sm:$0xff]  ;;  %v661_v59 = vld [vmem:[#allocation7 + $0x548] sm:$0xff] }
 0x3bd   : > { %3458 = vst [vmem:[#allocation7 + $0x490] sm:$0xff] %v3202_v57  ;;  %v3204_v2 = vadd.f32 %v1997_v0, %v640_v60  ;;  %v1999_v4 = vpop.f32.mrb[75].mxu0 }
 0x3be   : > { %3459 = vst [vmem:[#allocation7 + $0x498] sm:$0xff] %v3203_v61  ;;  %v2895_v3 = vpop.f32.mrb[74].mxu1  ;;  %v3205_v6 = vadd.f32 %v1999_v4, %v641_v63  ;;  %v663_v61 = vld [vmem:[#allocation7 + $0x558] sm:$0xff]  ;;  %v664_v4 = vld [vmem:[#allocation7 + $0x560] sm:$0xff] }
 0x3bf   : > { %v3206_v5 = vadd.f32 %v2895_v3, %v642_v62  ;;  %v2897_v7 = vpop.f32.mrb[75].mxu1  ;;  %3460 = vst [vmem:[#allocation7 + $0x4a0] sm:$0xff] %v3204_v2 }
 0x3c0   : > { %v3207_v9 = vadd.f32 %v2897_v7, %v643_v1  ;;  %3461 = vst [vmem:[#allocation7 + $0x4a8] sm:$0xff] %v3205_v6  ;;  %v2003_v12 = vpop.f32.mrb[76].mxu0  ;;  %v666_v6 = vld [vmem:[#allocation7 + $0x570] sm:$0xff]  ;;  %v665_v7 = vld [vmem:[#allocation7 + $0x568] sm:$0xff] }
 0x3c1   : > { %3462 = vst [vmem:[#allocation7 + $0x4b0] sm:$0xff] %v3206_v5  ;;  %v3208_v14 = vadd.f32 %v2003_v12, %v644_v8  ;;  %v2005_v16 = vpop.f32.mrb[77].mxu0 }
 0x3c2   : > { %3463 = vst [vmem:[#allocation7 + $0x4b8] sm:$0xff] %v3207_v9  ;;  %v2901_v15 = vpop.f32.mrb[76].mxu1  ;;  %v3209_v18 = vadd.f32 %v2005_v16, %v645_v11  ;;  %v667_v9 = vld [vmem:[#allocation7 + $0x578] sm:$0xff]  ;;  %v668_v16 = vld [vmem:[#allocation7 + $0x580] sm:$0xff] }
 0x3c3   : > { %v3210_v17 = vadd.f32 %v2901_v15, %v646_v10  ;;  %v2903_v19 = vpop.f32.mrb[77].mxu1  ;;  %3464 = vst [vmem:[#allocation7 + $0x4c0] sm:$0xff] %v3208_v14 }
 0x3c4   : > { %v3211_v21 = vadd.f32 %v2903_v19, %v647_v13  ;;  %3465 = vst [vmem:[#allocation7 + $0x4c8] sm:$0xff] %v3209_v18  ;;  %v2009_v24 = vpop.f32.mrb[78].mxu0  ;;  %v670_v18 = vld [vmem:[#allocation7 + $0x590] sm:$0xff]  ;;  %v669_v19 = vld [vmem:[#allocation7 + $0x588] sm:$0xff] }
 0x3c5   : > { %3466 = vst [vmem:[#allocation7 + $0x4d0] sm:$0xff] %v3210_v17  ;;  %v3212_v26 = vadd.f32 %v2009_v24, %v648_v20  ;;  %v2011_v28 = vpop.f32.mrb[79].mxu0 }
 0x3c6   : > { %3467 = vst [vmem:[#allocation7 + $0x4d8] sm:$0xff] %v3211_v21  ;;  %v2907_v27 = vpop.f32.mrb[78].mxu1  ;;  %v3213_v30 = vadd.f32 %v2011_v28, %v649_v23  ;;  %v671_v21 = vld [vmem:[#allocation7 + $0x598] sm:$0xff]  ;;  %v672_v28 = vld [vmem:[#allocation7 + $0x5a0] sm:$0xff] }
 0x3c7   : > { %v3214_v29 = vadd.f32 %v2907_v27, %v650_v22  ;;  %v2909_v31 = vpop.f32.mrb[79].mxu1  ;;  %3468 = vst [vmem:[#allocation7 + $0x4e0] sm:$0xff] %v3212_v26 }
 0x3c8   : > { %v3215_v33 = vadd.f32 %v2909_v31, %v651_v25  ;;  %3469 = vst [vmem:[#allocation7 + $0x4e8] sm:$0xff] %v3213_v30  ;;  %v2015_v36 = vpop.f32.mrb[80].mxu0  ;;  %v674_v30 = vld [vmem:[#allocation7 + $0x5b0] sm:$0xff]  ;;  %v673_v31 = vld [vmem:[#allocation7 + $0x5a8] sm:$0xff] }
 0x3c9   : > { %3470 = vst [vmem:[#allocation7 + $0x4f0] sm:$0xff] %v3214_v29  ;;  %v3216_v38 = vadd.f32 %v2015_v36, %v652_v32  ;;  %v2017_v40 = vpop.f32.mrb[81].mxu0 }
 0x3ca   : > { %3471 = vst [vmem:[#allocation7 + $0x4f8] sm:$0xff] %v3215_v33  ;;  %v2913_v39 = vpop.f32.mrb[80].mxu1  ;;  %v3217_v42 = vadd.f32 %v2017_v40, %v653_v35  ;;  %v675_v33 = vld [vmem:[#allocation7 + $0x5b8] sm:$0xff]  ;;  %v676_v40 = vld [vmem:[#allocation7 + $0x5c0] sm:$0xff] }
 0x3cb   : > { %v3218_v41 = vadd.f32 %v2913_v39, %v654_v34  ;;  %v2915_v43 = vpop.f32.mrb[81].mxu1  ;;  %3472 = vst [vmem:[#allocation7 + $0x500] sm:$0xff] %v3216_v38 }
 0x3cc   : > { %v3219_v45 = vadd.f32 %v2915_v43, %v655_v37  ;;  %3473 = vst [vmem:[#allocation7 + $0x508] sm:$0xff] %v3217_v42  ;;  %v2021_v48 = vpop.f32.mrb[82].mxu0  ;;  %v678_v42 = vld [vmem:[#allocation7 + $0x5d0] sm:$0xff]  ;;  %v677_v43 = vld [vmem:[#allocation7 + $0x5c8] sm:$0xff] }
 0x3cd   : > { %3474 = vst [vmem:[#allocation7 + $0x510] sm:$0xff] %v3218_v41  ;;  %v3220_v50 = vadd.f32 %v2021_v48, %v656_v44  ;;  %v2023_v52 = vpop.f32.mrb[83].mxu0 }
 0x3ce   : > { %3475 = vst [vmem:[#allocation7 + $0x518] sm:$0xff] %v3219_v45  ;;  %v2919_v51 = vpop.f32.mrb[82].mxu1  ;;  %v3221_v54 = vadd.f32 %v2023_v52, %v657_v47  ;;  %v679_v45 = vld [vmem:[#allocation7 + $0x5d8] sm:$0xff]  ;;  %v680_v52 = vld [vmem:[#allocation7 + $0x5e0] sm:$0xff] }
 0x3cf   : > { %v3222_v53 = vadd.f32 %v2919_v51, %v658_v46  ;;  %v2921_v55 = vpop.f32.mrb[83].mxu1  ;;  %3476 = vst [vmem:[#allocation7 + $0x520] sm:$0xff] %v3220_v50 }
 0x3d0   : > { %v3223_v57 = vadd.f32 %v2921_v55, %v659_v49  ;;  %3477 = vst [vmem:[#allocation7 + $0x528] sm:$0xff] %v3221_v54  ;;  %v2027_v60 = vpop.f32.mrb[84].mxu0  ;;  %v682_v54 = vld [vmem:[#allocation7 + $0x5f0] sm:$0xff]  ;;  %v681_v55 = vld [vmem:[#allocation7 + $0x5e8] sm:$0xff] }
 0x3d1   : > { %3478 = vst [vmem:[#allocation7 + $0x530] sm:$0xff] %v3222_v53  ;;  %v3224_v62 = vadd.f32 %v2027_v60, %v660_v56  ;;  %v2029_v0 = vpop.f32.mrb[85].mxu0 }
 0x3d2   : > { %3479 = vst [vmem:[#allocation7 + $0x538] sm:$0xff] %v3223_v57  ;;  %v2925_v63 = vpop.f32.mrb[84].mxu1  ;;  %v3225_v2 = vadd.f32 %v2029_v0, %v661_v59  ;;  %v683_v57 = vld [vmem:[#allocation7 + $0x5f8] sm:$0xff]  ;;  %v684_v0 = vld [vmem:[#allocation7 + $0x600] sm:$0xff] }
 0x3d3   : > { %v3226_v1 = vadd.f32 %v2925_v63, %v662_v58  ;;  %v2927_v3 = vpop.f32.mrb[85].mxu1  ;;  %3480 = vst [vmem:[#allocation7 + $0x540] sm:$0xff] %v3224_v62 }
 0x3d4   : > { %v3227_v5 = vadd.f32 %v2927_v3, %v663_v61  ;;  %3481 = vst [vmem:[#allocation7 + $0x548] sm:$0xff] %v3225_v2  ;;  %v2033_v8 = vpop.f32.mrb[86].mxu0  ;;  %v686_v2 = vld [vmem:[#allocation7 + $0x610] sm:$0xff]  ;;  %v685_v3 = vld [vmem:[#allocation7 + $0x608] sm:$0xff] }
 0x3d5   : > { %3482 = vst [vmem:[#allocation7 + $0x550] sm:$0xff] %v3226_v1  ;;  %v3228_v10 = vadd.f32 %v2033_v8, %v664_v4  ;;  %v2035_v12 = vpop.f32.mrb[87].mxu0 }
 0x3d6   : > { %3483 = vst [vmem:[#allocation7 + $0x558] sm:$0xff] %v3227_v5  ;;  %v2931_v11 = vpop.f32.mrb[86].mxu1  ;;  %v3229_v14 = vadd.f32 %v2035_v12, %v665_v7  ;;  %v687_v5 = vld [vmem:[#allocation7 + $0x618] sm:$0xff]  ;;  %v688_v12 = vld [vmem:[#allocation7 + $0x620] sm:$0xff] }
 0x3d7   : > { %v3230_v13 = vadd.f32 %v2931_v11, %v666_v6  ;;  %v2933_v15 = vpop.f32.mrb[87].mxu1  ;;  %3484 = vst [vmem:[#allocation7 + $0x560] sm:$0xff] %v3228_v10 }
 0x3d8   : > { %v3231_v17 = vadd.f32 %v2933_v15, %v667_v9  ;;  %3485 = vst [vmem:[#allocation7 + $0x568] sm:$0xff] %v3229_v14  ;;  %v2039_v20 = vpop.f32.mrb[88].mxu0  ;;  %v690_v14 = vld [vmem:[#allocation7 + $0x630] sm:$0xff]  ;;  %v689_v15 = vld [vmem:[#allocation7 + $0x628] sm:$0xff] }
 0x3d9   : > { %3486 = vst [vmem:[#allocation7 + $0x570] sm:$0xff] %v3230_v13  ;;  %v3232_v22 = vadd.f32 %v2039_v20, %v668_v16  ;;  %v2041_v24 = vpop.f32.mrb[89].mxu0 }
 0x3da   : > { %3487 = vst [vmem:[#allocation7 + $0x578] sm:$0xff] %v3231_v17  ;;  %v2937_v23 = vpop.f32.mrb[88].mxu1  ;;  %v3233_v26 = vadd.f32 %v2041_v24, %v669_v19  ;;  %v691_v17 = vld [vmem:[#allocation7 + $0x638] sm:$0xff]  ;;  %v692_v24 = vld [vmem:[#allocation7 + $0x640] sm:$0xff] }
 0x3db   : > { %v3234_v25 = vadd.f32 %v2937_v23, %v670_v18  ;;  %v2939_v27 = vpop.f32.mrb[89].mxu1  ;;  %3488 = vst [vmem:[#allocation7 + $0x580] sm:$0xff] %v3232_v22 }
 0x3dc   : > { %v3235_v29 = vadd.f32 %v2939_v27, %v671_v21  ;;  %3489 = vst [vmem:[#allocation7 + $0x588] sm:$0xff] %v3233_v26  ;;  %v2045_v32 = vpop.f32.mrb[90].mxu0  ;;  %v694_v26 = vld [vmem:[#allocation7 + $0x650] sm:$0xff]  ;;  %v693_v27 = vld [vmem:[#allocation7 + $0x648] sm:$0xff] }
 0x3dd   : > { %3490 = vst [vmem:[#allocation7 + $0x590] sm:$0xff] %v3234_v25  ;;  %v3236_v34 = vadd.f32 %v2045_v32, %v672_v28  ;;  %v2047_v36 = vpop.f32.mrb[91].mxu0 }
 0x3de   : > { %3491 = vst [vmem:[#allocation7 + $0x598] sm:$0xff] %v3235_v29  ;;  %v2943_v35 = vpop.f32.mrb[90].mxu1  ;;  %v3237_v38 = vadd.f32 %v2047_v36, %v673_v31  ;;  %v695_v29 = vld [vmem:[#allocation7 + $0x658] sm:$0xff]  ;;  %v696_v36 = vld [vmem:[#allocation7 + $0x660] sm:$0xff] }
 0x3df   : > { %v3238_v37 = vadd.f32 %v2943_v35, %v674_v30  ;;  %v2945_v39 = vpop.f32.mrb[91].mxu1  ;;  %3492 = vst [vmem:[#allocation7 + $0x5a0] sm:$0xff] %v3236_v34 }
 0x3e0   : > { %v3239_v41 = vadd.f32 %v2945_v39, %v675_v33  ;;  %3493 = vst [vmem:[#allocation7 + $0x5a8] sm:$0xff] %v3237_v38  ;;  %v2051_v44 = vpop.f32.mrb[92].mxu0  ;;  %v698_v38 = vld [vmem:[#allocation7 + $0x670] sm:$0xff]  ;;  %v697_v39 = vld [vmem:[#allocation7 + $0x668] sm:$0xff] }
 0x3e1   : > { %3494 = vst [vmem:[#allocation7 + $0x5b0] sm:$0xff] %v3238_v37  ;;  %v3240_v46 = vadd.f32 %v2051_v44, %v676_v40  ;;  %v2053_v48 = vpop.f32.mrb[93].mxu0 }
 0x3e2   : > { %3495 = vst [vmem:[#allocation7 + $0x5b8] sm:$0xff] %v3239_v41  ;;  %v2949_v47 = vpop.f32.mrb[92].mxu1  ;;  %v3241_v50 = vadd.f32 %v2053_v48, %v677_v43  ;;  %v699_v41 = vld [vmem:[#allocation7 + $0x678] sm:$0xff]  ;;  %v700_v48 = vld [vmem:[#allocation7 + $0x680] sm:$0xff] }
 0x3e3   : > { %v3242_v49 = vadd.f32 %v2949_v47, %v678_v42  ;;  %v2951_v51 = vpop.f32.mrb[93].mxu1  ;;  %3496 = vst [vmem:[#allocation7 + $0x5c0] sm:$0xff] %v3240_v46 }
 0x3e4   : > { %v3243_v53 = vadd.f32 %v2951_v51, %v679_v45  ;;  %3497 = vst [vmem:[#allocation7 + $0x5c8] sm:$0xff] %v3241_v50  ;;  %v2057_v56 = vpop.f32.mrb[94].mxu0  ;;  %v702_v50 = vld [vmem:[#allocation7 + $0x690] sm:$0xff]  ;;  %v701_v51 = vld [vmem:[#allocation7 + $0x688] sm:$0xff] }
 0x3e5   : > { %3498 = vst [vmem:[#allocation7 + $0x5d0] sm:$0xff] %v3242_v49  ;;  %v3244_v58 = vadd.f32 %v2057_v56, %v680_v52  ;;  %v2059_v60 = vpop.f32.mrb[95].mxu0 }
 0x3e6   : > { %3499 = vst [vmem:[#allocation7 + $0x5d8] sm:$0xff] %v3243_v53  ;;  %v2955_v59 = vpop.f32.mrb[94].mxu1  ;;  %v3245_v62 = vadd.f32 %v2059_v60, %v681_v55  ;;  %v703_v53 = vld [vmem:[#allocation7 + $0x698] sm:$0xff]  ;;  %v704_v60 = vld [vmem:[#allocation7 + $0x6a0] sm:$0xff] }
 0x3e7   : > { %v3246_v61 = vadd.f32 %v2955_v59, %v682_v54  ;;  %v2957_v63 = vpop.f32.mrb[95].mxu1  ;;  %3500 = vst [vmem:[#allocation7 + $0x5e0] sm:$0xff] %v3244_v58 }
 0x3e8   : > { %v3247_v1 = vadd.f32 %v2957_v63, %v683_v57  ;;  %3501 = vst [vmem:[#allocation7 + $0x5e8] sm:$0xff] %v3245_v62  ;;  %v2063_v4 = vpop.f32.mrb[96].mxu0  ;;  %v706_v62 = vld [vmem:[#allocation7 + $0x6b0] sm:$0xff]  ;;  %v705_v63 = vld [vmem:[#allocation7 + $0x6a8] sm:$0xff] }
 0x3e9   : > { %3502 = vst [vmem:[#allocation7 + $0x5f0] sm:$0xff] %v3246_v61  ;;  %v3248_v6 = vadd.f32 %v2063_v4, %v684_v0  ;;  %v2065_v8 = vpop.f32.mrb[97].mxu0 }
 0x3ea   : > { %3503 = vst [vmem:[#allocation7 + $0x5f8] sm:$0xff] %v3247_v1  ;;  %v2961_v7 = vpop.f32.mrb[96].mxu1  ;;  %v3249_v10 = vadd.f32 %v2065_v8, %v685_v3  ;;  %v707_v1 = vld [vmem:[#allocation7 + $0x6b8] sm:$0xff]  ;;  %v708_v8 = vld [vmem:[#allocation7 + $0x6c0] sm:$0xff] }
 0x3eb   : > { %v3250_v9 = vadd.f32 %v2961_v7, %v686_v2  ;;  %v2963_v11 = vpop.f32.mrb[97].mxu1  ;;  %3504 = vst [vmem:[#allocation7 + $0x600] sm:$0xff] %v3248_v6 }
 0x3ec   : > { %v3251_v13 = vadd.f32 %v2963_v11, %v687_v5  ;;  %3505 = vst [vmem:[#allocation7 + $0x608] sm:$0xff] %v3249_v10  ;;  %v2069_v16 = vpop.f32.mrb[98].mxu0  ;;  %v710_v10 = vld [vmem:[#allocation7 + $0x6d0] sm:$0xff]  ;;  %v709_v11 = vld [vmem:[#allocation7 + $0x6c8] sm:$0xff] }
 0x3ed   : > { %3506 = vst [vmem:[#allocation7 + $0x610] sm:$0xff] %v3250_v9  ;;  %v3252_v18 = vadd.f32 %v2069_v16, %v688_v12  ;;  %v2071_v20 = vpop.f32.mrb[99].mxu0 }
 0x3ee   : > { %3507 = vst [vmem:[#allocation7 + $0x618] sm:$0xff] %v3251_v13  ;;  %v2967_v19 = vpop.f32.mrb[98].mxu1  ;;  %v3253_v22 = vadd.f32 %v2071_v20, %v689_v15  ;;  %v711_v13 = vld [vmem:[#allocation7 + $0x6d8] sm:$0xff]  ;;  %v712_v20 = vld [vmem:[#allocation7 + $0x6e0] sm:$0xff] }
 0x3ef   : > { %v3254_v21 = vadd.f32 %v2967_v19, %v690_v14  ;;  %v2969_v23 = vpop.f32.mrb[99].mxu1  ;;  %3508 = vst [vmem:[#allocation7 + $0x620] sm:$0xff] %v3252_v18 }
 0x3f0   : > { %v3255_v25 = vadd.f32 %v2969_v23, %v691_v17  ;;  %3509 = vst [vmem:[#allocation7 + $0x628] sm:$0xff] %v3253_v22  ;;  %v2075_v28 = vpop.f32.mrb[100].mxu0  ;;  %v714_v22 = vld [vmem:[#allocation7 + $0x6f0] sm:$0xff]  ;;  %v713_v23 = vld [vmem:[#allocation7 + $0x6e8] sm:$0xff] }
 0x3f1   : > { %3510 = vst [vmem:[#allocation7 + $0x630] sm:$0xff] %v3254_v21  ;;  %v3256_v30 = vadd.f32 %v2075_v28, %v692_v24  ;;  %v2077_v32 = vpop.f32.mrb[101].mxu0 }
 0x3f2   : > { %3511 = vst [vmem:[#allocation7 + $0x638] sm:$0xff] %v3255_v25  ;;  %v2973_v31 = vpop.f32.mrb[100].mxu1  ;;  %v3257_v34 = vadd.f32 %v2077_v32, %v693_v27  ;;  %v715_v25 = vld [vmem:[#allocation7 + $0x6f8] sm:$0xff]  ;;  %v716_v32 = vld [vmem:[#allocation7 + $0x700] sm:$0xff] }
 0x3f3   : > { %v3258_v33 = vadd.f32 %v2973_v31, %v694_v26  ;;  %v2975_v35 = vpop.f32.mrb[101].mxu1  ;;  %3512 = vst [vmem:[#allocation7 + $0x640] sm:$0xff] %v3256_v30 }
 0x3f4   : > { %v3259_v37 = vadd.f32 %v2975_v35, %v695_v29  ;;  %3513 = vst [vmem:[#allocation7 + $0x648] sm:$0xff] %v3257_v34  ;;  %v2081_v40 = vpop.f32.mrb[102].mxu0  ;;  %v718_v34 = vld [vmem:[#allocation7 + $0x710] sm:$0xff]  ;;  %v717_v35 = vld [vmem:[#allocation7 + $0x708] sm:$0xff] }
 0x3f5   : > { %3514 = vst [vmem:[#allocation7 + $0x650] sm:$0xff] %v3258_v33  ;;  %v3260_v42 = vadd.f32 %v2081_v40, %v696_v36  ;;  %v2083_v44 = vpop.f32.mrb[103].mxu0 }
 0x3f6   : > { %3515 = vst [vmem:[#allocation7 + $0x658] sm:$0xff] %v3259_v37  ;;  %v2979_v43 = vpop.f32.mrb[102].mxu1  ;;  %v3261_v46 = vadd.f32 %v2083_v44, %v697_v39  ;;  %v719_v37 = vld [vmem:[#allocation7 + $0x718] sm:$0xff]  ;;  %v720_v44 = vld [vmem:[#allocation7 + $0x720] sm:$0xff] }
 0x3f7   : > { %v3262_v45 = vadd.f32 %v2979_v43, %v698_v38  ;;  %v2981_v47 = vpop.f32.mrb[103].mxu1  ;;  %3516 = vst [vmem:[#allocation7 + $0x660] sm:$0xff] %v3260_v42 }
 0x3f8   : > { %v3263_v49 = vadd.f32 %v2981_v47, %v699_v41  ;;  %3517 = vst [vmem:[#allocation7 + $0x668] sm:$0xff] %v3261_v46  ;;  %v2087_v52 = vpop.f32.mrb[104].mxu0  ;;  %v722_v46 = vld [vmem:[#allocation7 + $0x730] sm:$0xff]  ;;  %v721_v47 = vld [vmem:[#allocation7 + $0x728] sm:$0xff] }
 0x3f9   : > { %3518 = vst [vmem:[#allocation7 + $0x670] sm:$0xff] %v3262_v45  ;;  %v3264_v54 = vadd.f32 %v2087_v52, %v700_v48  ;;  %v2089_v56 = vpop.f32.mrb[105].mxu0 }
 0x3fa   : > { %3519 = vst [vmem:[#allocation7 + $0x678] sm:$0xff] %v3263_v49  ;;  %v2985_v55 = vpop.f32.mrb[104].mxu1  ;;  %v3265_v58 = vadd.f32 %v2089_v56, %v701_v51  ;;  %v723_v49 = vld [vmem:[#allocation7 + $0x738] sm:$0xff]  ;;  %v724_v56 = vld [vmem:[#allocation7 + $0x740] sm:$0xff] }
 0x3fb   : > { %v3266_v57 = vadd.f32 %v2985_v55, %v702_v50  ;;  %v2987_v59 = vpop.f32.mrb[105].mxu1  ;;  %3520 = vst [vmem:[#allocation7 + $0x680] sm:$0xff] %v3264_v54 }
 0x3fc   : > { %v3267_v61 = vadd.f32 %v2987_v59, %v703_v53  ;;  %3521 = vst [vmem:[#allocation7 + $0x688] sm:$0xff] %v3265_v58  ;;  %v2093_v0 = vpop.f32.mrb[106].mxu0  ;;  %v726_v58 = vld [vmem:[#allocation7 + $0x750] sm:$0xff]  ;;  %v725_v59 = vld [vmem:[#allocation7 + $0x748] sm:$0xff] }
 0x3fd   : > { %3522 = vst [vmem:[#allocation7 + $0x690] sm:$0xff] %v3266_v57  ;;  %v3268_v2 = vadd.f32 %v2093_v0, %v704_v60  ;;  %v2095_v4 = vpop.f32.mrb[107].mxu0 }
 0x3fe   : > { %3523 = vst [vmem:[#allocation7 + $0x698] sm:$0xff] %v3267_v61  ;;  %v2991_v3 = vpop.f32.mrb[106].mxu1  ;;  %v3269_v6 = vadd.f32 %v2095_v4, %v705_v63  ;;  %v727_v61 = vld [vmem:[#allocation7 + $0x758] sm:$0xff]  ;;  %v728_v4 = vld [vmem:[#allocation7 + $0x760] sm:$0xff] }
 0x3ff   : > { %v3270_v5 = vadd.f32 %v2991_v3, %v706_v62  ;;  %v2993_v7 = vpop.f32.mrb[107].mxu1  ;;  %3524 = vst [vmem:[#allocation7 + $0x6a0] sm:$0xff] %v3268_v2 }
 0x400   : > { %v3271_v9 = vadd.f32 %v2993_v7, %v707_v1  ;;  %3525 = vst [vmem:[#allocation7 + $0x6a8] sm:$0xff] %v3269_v6  ;;  %v2099_v12 = vpop.f32.mrb[108].mxu0  ;;  %v730_v6 = vld [vmem:[#allocation7 + $0x770] sm:$0xff]  ;;  %v729_v7 = vld [vmem:[#allocation7 + $0x768] sm:$0xff] }
 0x401   : > { %3526 = vst [vmem:[#allocation7 + $0x6b0] sm:$0xff] %v3270_v5  ;;  %v3272_v14 = vadd.f32 %v2099_v12, %v708_v8  ;;  %v2101_v16 = vpop.f32.mrb[109].mxu0 }
 0x402   : > { %3527 = vst [vmem:[#allocation7 + $0x6b8] sm:$0xff] %v3271_v9  ;;  %v2997_v15 = vpop.f32.mrb[108].mxu1  ;;  %v3273_v18 = vadd.f32 %v2101_v16, %v709_v11  ;;  %v731_v9 = vld [vmem:[#allocation7 + $0x778] sm:$0xff]  ;;  %v732_v16 = vld [vmem:[#allocation7 + $0x780] sm:$0xff] }
 0x403   : > { %v3274_v17 = vadd.f32 %v2997_v15, %v710_v10  ;;  %v2999_v19 = vpop.f32.mrb[109].mxu1  ;;  %3528 = vst [vmem:[#allocation7 + $0x6c0] sm:$0xff] %v3272_v14 }
 0x404   : > { %v3275_v21 = vadd.f32 %v2999_v19, %v711_v13  ;;  %3529 = vst [vmem:[#allocation7 + $0x6c8] sm:$0xff] %v3273_v18  ;;  %v2105_v24 = vpop.f32.mrb[110].mxu0  ;;  %v734_v18 = vld [vmem:[#allocation7 + $0x790] sm:$0xff]  ;;  %v733_v19 = vld [vmem:[#allocation7 + $0x788] sm:$0xff] }
 0x405   : > { %3530 = vst [vmem:[#allocation7 + $0x6d0] sm:$0xff] %v3274_v17  ;;  %v3276_v26 = vadd.f32 %v2105_v24, %v712_v20  ;;  %v2107_v28 = vpop.f32.mrb[111].mxu0 }
 0x406   : > { %3531 = vst [vmem:[#allocation7 + $0x6d8] sm:$0xff] %v3275_v21  ;;  %v3003_v27 = vpop.f32.mrb[110].mxu1  ;;  %v3277_v30 = vadd.f32 %v2107_v28, %v713_v23  ;;  %v735_v21 = vld [vmem:[#allocation7 + $0x798] sm:$0xff]  ;;  %v736_v28 = vld [vmem:[#allocation7 + $0x7a0] sm:$0xff] }
 0x407   : > { %v3278_v29 = vadd.f32 %v3003_v27, %v714_v22  ;;  %v3005_v31 = vpop.f32.mrb[111].mxu1  ;;  %3532 = vst [vmem:[#allocation7 + $0x6e0] sm:$0xff] %v3276_v26 }
 0x408   : > { %v3279_v33 = vadd.f32 %v3005_v31, %v715_v25  ;;  %3533 = vst [vmem:[#allocation7 + $0x6e8] sm:$0xff] %v3277_v30  ;;  %v2111_v36 = vpop.f32.mrb[112].mxu0  ;;  %v738_v30 = vld [vmem:[#allocation7 + $0x7b0] sm:$0xff]  ;;  %v737_v31 = vld [vmem:[#allocation7 + $0x7a8] sm:$0xff] }
 0x409   : > { %3534 = vst [vmem:[#allocation7 + $0x6f0] sm:$0xff] %v3278_v29  ;;  %v3280_v38 = vadd.f32 %v2111_v36, %v716_v32  ;;  %v2113_v40 = vpop.f32.mrb[113].mxu0 }
 0x40a   : > { %3535 = vst [vmem:[#allocation7 + $0x6f8] sm:$0xff] %v3279_v33  ;;  %v3009_v39 = vpop.f32.mrb[112].mxu1  ;;  %v3281_v42 = vadd.f32 %v2113_v40, %v717_v35  ;;  %v739_v33 = vld [vmem:[#allocation7 + $0x7b8] sm:$0xff]  ;;  %v740_v40 = vld [vmem:[#allocation7 + $0x7c0] sm:$0xff] }
 0x40b   : > { %v3282_v41 = vadd.f32 %v3009_v39, %v718_v34  ;;  %v3011_v43 = vpop.f32.mrb[113].mxu1  ;;  %3536 = vst [vmem:[#allocation7 + $0x700] sm:$0xff] %v3280_v38 }
 0x40c   : > { %v3283_v45 = vadd.f32 %v3011_v43, %v719_v37  ;;  %3537 = vst [vmem:[#allocation7 + $0x708] sm:$0xff] %v3281_v42  ;;  %v2117_v48 = vpop.f32.mrb[114].mxu0  ;;  %v742_v42 = vld [vmem:[#allocation7 + $0x7d0] sm:$0xff]  ;;  %v741_v43 = vld [vmem:[#allocation7 + $0x7c8] sm:$0xff] }
 0x40d   : > { %3538 = vst [vmem:[#allocation7 + $0x710] sm:$0xff] %v3282_v41  ;;  %v3284_v50 = vadd.f32 %v2117_v48, %v720_v44  ;;  %v2119_v52 = vpop.f32.mrb[115].mxu0 }
 0x40e   : > { %3539 = vst [vmem:[#allocation7 + $0x718] sm:$0xff] %v3283_v45  ;;  %v3015_v51 = vpop.f32.mrb[114].mxu1  ;;  %v3285_v54 = vadd.f32 %v2119_v52, %v721_v47  ;;  %v743_v45 = vld [vmem:[#allocation7 + $0x7d8] sm:$0xff]  ;;  %v744_v52 = vld [vmem:[#allocation7 + $0x7e0] sm:$0xff] }
 0x40f   : > { %v3286_v53 = vadd.f32 %v3015_v51, %v722_v46  ;;  %v3017_v55 = vpop.f32.mrb[115].mxu1  ;;  %3540 = vst [vmem:[#allocation7 + $0x720] sm:$0xff] %v3284_v50 }
 0x410   : > { %v3287_v57 = vadd.f32 %v3017_v55, %v723_v49  ;;  %3541 = vst [vmem:[#allocation7 + $0x728] sm:$0xff] %v3285_v54  ;;  %v2123_v60 = vpop.f32.mrb[116].mxu0  ;;  %v746_v54 = vld [vmem:[#allocation7 + $0x7f0] sm:$0xff]  ;;  %v745_v55 = vld [vmem:[#allocation7 + $0x7e8] sm:$0xff] }
 0x411   : > { %3542 = vst [vmem:[#allocation7 + $0x730] sm:$0xff] %v3286_v53  ;;  %v3288_v62 = vadd.f32 %v2123_v60, %v724_v56  ;;  %v2125_v0 = vpop.f32.mrb[117].mxu0 }
 0x412   : > { %3543 = vst [vmem:[#allocation7 + $0x738] sm:$0xff] %v3287_v57  ;;  %v3021_v63 = vpop.f32.mrb[116].mxu1  ;;  %v3289_v2 = vadd.f32 %v2125_v0, %v725_v59  ;;  %v747_v57 = vld [vmem:[#allocation7 + $0x7f8] sm:$0xff] }
 0x413   : > { %v3290_v1 = vadd.f32 %v3021_v63, %v726_v58  ;;  %v3023_v3 = vpop.f32.mrb[117].mxu1  ;;  %3544 = vst [vmem:[#allocation7 + $0x740] sm:$0xff] %v3288_v62 }
 0x414   : > { %v3291_v5 = vadd.f32 %v3023_v3, %v727_v61  ;;  %3545 = vst [vmem:[#allocation7 + $0x748] sm:$0xff] %v3289_v2  ;;  %v2129_v8 = vpop.f32.mrb[118].mxu0 }
 0x415   : > { %3546 = vst [vmem:[#allocation7 + $0x750] sm:$0xff] %v3290_v1  ;;  %v3292_v10 = vadd.f32 %v2129_v8, %v728_v4  ;;  %v2131_v12 = vpop.f32.mrb[119].mxu0 }
 0x416   : > { %3547 = vst [vmem:[#allocation7 + $0x758] sm:$0xff] %v3291_v5  ;;  %v3027_v11 = vpop.f32.mrb[118].mxu1  ;;  %v3293_v14 = vadd.f32 %v2131_v12, %v729_v7 }
 0x417   : > { %v3294_v13 = vadd.f32 %v3027_v11, %v730_v6  ;;  %v3029_v15 = vpop.f32.mrb[119].mxu1  ;;  %3548 = vst [vmem:[#allocation7 + $0x760] sm:$0xff] %v3292_v10 }
 0x418   : > { %v3295_v17 = vadd.f32 %v3029_v15, %v731_v9  ;;  %3549 = vst [vmem:[#allocation7 + $0x768] sm:$0xff] %v3293_v14  ;;  %v2135_v20 = vpop.f32.mrb[120].mxu0 }
 0x419   : > { %3550 = vst [vmem:[#allocation7 + $0x770] sm:$0xff] %v3294_v13  ;;  %v3296_v22 = vadd.f32 %v2135_v20, %v732_v16  ;;  %v2137_v24 = vpop.f32.mrb[121].mxu0 }
 0x41a   : > { %3551 = vst [vmem:[#allocation7 + $0x778] sm:$0xff] %v3295_v17  ;;  %v3033_v23 = vpop.f32.mrb[120].mxu1  ;;  %v3297_v26 = vadd.f32 %v2137_v24, %v733_v19 }
 0x41b   : > { %v3298_v25 = vadd.f32 %v3033_v23, %v734_v18  ;;  %v3035_v27 = vpop.f32.mrb[121].mxu1  ;;  %3552 = vst [vmem:[#allocation7 + $0x780] sm:$0xff] %v3296_v22 }
 0x41c   : > { %v3299_v29 = vadd.f32 %v3035_v27, %v735_v21  ;;  %3553 = vst [vmem:[#allocation7 + $0x788] sm:$0xff] %v3297_v26  ;;  %v2141_v32 = vpop.f32.mrb[122].mxu0 }
 0x41d   : > { %3554 = vst [vmem:[#allocation7 + $0x790] sm:$0xff] %v3298_v25  ;;  %v3300_v34 = vadd.f32 %v2141_v32, %v736_v28  ;;  %v2143_v36 = vpop.f32.mrb[123].mxu0 }
 0x41e   : > { %3555 = vst [vmem:[#allocation7 + $0x798] sm:$0xff] %v3299_v29  ;;  %v3039_v35 = vpop.f32.mrb[122].mxu1  ;;  %v3301_v38 = vadd.f32 %v2143_v36, %v737_v31 }
 0x41f   : > { %v3302_v37 = vadd.f32 %v3039_v35, %v738_v30  ;;  %v3041_v39 = vpop.f32.mrb[123].mxu1  ;;  %3556 = vst [vmem:[#allocation7 + $0x7a0] sm:$0xff] %v3300_v34 }
 0x420   : > { %v3303_v41 = vadd.f32 %v3041_v39, %v739_v33  ;;  %3557 = vst [vmem:[#allocation7 + $0x7a8] sm:$0xff] %v3301_v38  ;;  %v2147_v44 = vpop.f32.mrb[124].mxu0 }
 0x421   : > { %3558 = vst [vmem:[#allocation7 + $0x7b0] sm:$0xff] %v3302_v37  ;;  %v3304_v46 = vadd.f32 %v2147_v44, %v740_v40  ;;  %v2149_v48 = vpop.f32.mrb[125].mxu0 }
 0x422   : > { %3559 = vst [vmem:[#allocation7 + $0x7b8] sm:$0xff] %v3303_v41  ;;  %v3045_v47 = vpop.f32.mrb[124].mxu1  ;;  %v3305_v50 = vadd.f32 %v2149_v48, %v741_v43 }
 0x423   : > { %v3306_v49 = vadd.f32 %v3045_v47, %v742_v42  ;;  %v3047_v51 = vpop.f32.mrb[125].mxu1  ;;  %3560 = vst [vmem:[#allocation7 + $0x7c0] sm:$0xff] %v3304_v46 }
 0x424   : > { %v3307_v53 = vadd.f32 %v3047_v51, %v743_v45  ;;  %3561 = vst [vmem:[#allocation7 + $0x7c8] sm:$0xff] %v3305_v50  ;;  %v2153_v56 = vpop.f32.mrb[126].mxu0 }
 0x425   : > { %3562 = vst [vmem:[#allocation7 + $0x7d0] sm:$0xff] %v3306_v49  ;;  %v3308_v58 = vadd.f32 %v2153_v56, %v744_v52  ;;  %v2155_v60 = vpop.f32.mrb[127].mxu0 }
 0x426   : > { %3563 = vst [vmem:[#allocation7 + $0x7d8] sm:$0xff] %v3307_v53  ;;  %v3051_v59 = vpop.f32.mrb[126].mxu1  ;;  %v3309_v62 = vadd.f32 %v2155_v60, %v745_v55 }
 0x427   : > { %v3310_v61 = vadd.f32 %v3051_v59, %v746_v54  ;;  %v3053_v63 = vpop.f32.mrb[127].mxu1  ;;  %3564 = vst [vmem:[#allocation7 + $0x7e0] sm:$0xff] %v3308_v58 }
 0x428   : > { %v3311_v0 = vadd.f32 %v3053_v63, %v747_v57  ;;  %3565 = vst [vmem:[#allocation7 + $0x7e8] sm:$0xff] %v3309_v62 }
 0x429   : > { %3566 = vst [vmem:[#allocation7 + $0x7f0] sm:$0xff] %v3310_v61 }
 0x42a   : > { %3567 = vst [vmem:[#allocation7 + $0x7f8] sm:$0xff] %v3311_v0 }
 0x42b   : > { %4356 = shalt.err (!%p4353_p5)
}
 0x42c   : > { %s4357_s7 = scalar_lea.hbm %s5439_s2, 32768 }
 0x42d   : > { %p4358_p6 = scmp.ne.s32.totalorder %s5439_s2, %s4357_s7  ;;  %p4363_p1 = scmp.lt.u32.totalorder %s4357_s7, %s5439_s2 }
 0x42f   : > { %p4359_p11 = pnand %p4358_p6, %p5393_p12 }
 0x431   : > { %p4360_p13 = pneg %p4359_p11 }
 0x433   : > { %p4365_p7 = pnand %p4363_p1, %p4360_p13 }
 0x435   : > { %4368 = shalt.err (!%p4365_p7)
}
 0x436   : > { %s4436_s25 = smov 512   ;;  %s4437_s24 = smov 32  }
 0x437   : > { %4215 = dma.vmem_to_hbm [thread:$0]  (%p5393_p12), %s3581_s20, 32768, %s5439_s2, [#allocation4], %s4436_s25, %s4436_s25, %s4437_s24  }
 0x438   : > { %4402 = dma.done.wait (%p5393_p12), [#allocation4], 32768  }
 0x439   : > { %4404 = vsyncadd (%p5393_p12), [#allocation4], 4294934528 }
 0x43a PF: > { %s19_s14 = sadd.s32 1, %s4427_s14   ;;  %s5448_s9 = smov %s4411_s10 }
 0x43b   : > { %p16_p9 = scmp.ge.s32.totalorder %s19_s14, 4   ;;  %s5449_s10 = smov %s4415_s11 }
 0x43c   : > { %s5450_s11 = smov %s4504_s21  ;;  %s5451_s12 = smov %s4423_s13 }
 0x43d   : > { %s5452_s13 = smov %s5454_s16  ;;  %18 = sbr.rel (!%p16_p9) target bundleno = 7 (0x7), region = 83 }
 0x444   :  { %3596 = vsyncpa [#allocation3], 1 }
 0x445   :  { %3598 = vsyncpa [#allocation3 + $0x1], 1 }
 0x446   :  { %3599 = vsyncpa [#allocation6], 1 }
 0x447   :  { %3601 = vsyncpa [#allocation6 + $0x1], 1 }
 0x448   :  { %3602 = vsyncpa [#allocation4], 1 }
 0x449   :  { %3604 = vsyncpa [#allocation4 + $0x1], 1 }

</bundles_post_ra>
